<compile_context>
chip_gen: v5e
topology: v5e:2x2
jax: 0.10.0
libtpu: 0.0.40
codegen_flags: <defaults>
</compile_context>

<pallas_src>
import functools

import jax
import jax.numpy as jnp
from jax import lax
from jax.experimental import pallas as pl
from jax.experimental.pallas import tpu as pltpu

BN_EPS = 1e-5
LANE = 128          # lane width: channel dims padded to multiples of this
SUB = 8             # f32 sublane quantum (stats rows)
ROW_QUANT = 32      # row-tile quantum: covers f32 (8) and bf16 (16) sublanes
MAX_TILE_M = 2048   # upper bound on rows per grid step for 1x1 / elementwise


# ------------------------------ small helpers ------------------------------ #

def _rup(x, m):
    return (x + m - 1) // m * m


def _vmem_budget_bytes():
    """VMEM limit from the actual chip (v5e/v6e: 128 MiB -> ~96 MiB,
    v7x: 64 MiB/TC -> 48 MiB). Falls back to a safe 48 MiB."""
    try:
        cap = int(pltpu.get_tpu_info().vmem_capacity_bytes)
    except Exception:
        cap = 64 * 1024 * 1024
    return max(32 * 1024 * 1024, min(cap * 3 // 4, 100 * 1024 * 1024))


VMEM_BUDGET = _vmem_budget_bytes()


def _probe_single_buffer():
    """Check whether pipeline_mode=pl.Buffered(1) is available & lowers."""
    if not hasattr(pl, "Buffered"):
        return False
    try:
        def k(x_ref, o_ref):
            o_ref[...] = x_ref[...] + 1.0
        spec = pl.BlockSpec((8, 128), lambda i: (0, 0),
                            pipeline_mode=pl.Buffered(1))
        f = pl.pallas_call(
            k, grid=(2,), in_specs=[spec],
            out_specs=pl.BlockSpec((8, 128), lambda i: (0, 0)),
            out_shape=jax.ShapeDtypeStruct((8, 128), jnp.float32))
        jax.block_until_ready(f(jnp.zeros((8, 128), jnp.float32)))
        return True
    except Exception:
        return False


_SINGLE_BUFFER_OK = _probe_single_buffer()


def _spec(shape, index_map, resident=False):
    """BlockSpec; grid-invariant (resident) blocks are single-buffered when
    supported, reclaiming VMEM (matters most on v7x's 64 MiB/TC)."""
    if resident and _SINGLE_BUFFER_OK:
        return pl.BlockSpec(shape, index_map, pipeline_mode=pl.Buffered(1))
    return pl.BlockSpec(shape, index_map)


def _cparams(dim_sems):
    return pltpu.CompilerParams(dimension_semantics=dim_sems,
                                vmem_limit_bytes=VMEM_BUDGET)


def _choose_tile_m(m, per_row_bytes, resident_bytes):
    """Largest row tile (multiple of 32) whose double-buffered footprint plus
    resident blocks fits the VMEM budget.  Grid = cdiv(m, tile); the caller
    zero-pads M up to a tile multiple (no divisor-search performance cliffs)."""
    tile = MAX_TILE_M
    while tile > ROW_QUANT and 2 * tile * per_row_bytes + resident_bytes > VMEM_BUDGET:
        tile //= 2
    return max(ROW_QUANT, min(tile, _rup(m, ROW_QUANT)))


def _pad_rows(a, rows):
    if a.shape[0] == rows:
        return a
    return jnp.pad(a, ((0, rows - a.shape[0]), (0, 0)))


def _pad_channels(a, c_p):
    if a.shape[-1] == c_p:
        return a
    pad = [(0, 0)] * (a.ndim - 1) + [(0, c_p - a.shape[-1])]
    return jnp.pad(a, pad)


# ----------------------------- Pallas kernels ------------------------------ #

def _mm_stats_kernel(*refs, fuse_pre, mask_rows, m_true, tile_m):
    """1x1-conv tile: [optional fused previous-BN affine + ReLU] -> bf16 MXU
    matmul -> bf16 y tile + per-tile per-channel f32 sum / sum-of-squares."""
    if fuse_pre:
        x_ref, w_ref, ps_ref, pb_ref, y_ref, st_ref = refs
    else:
        x_ref, w_ref, y_ref, st_ref = refs

    x = x_ref[...]
    if fuse_pre:
        x = jnp.maximum(x.astype(jnp.float32) * ps_ref[...] + pb_ref[...], 0.0)
        if mask_rows:  # zero M-padding rows so they do not pollute the stats
            row = pl.program_id(0) * tile_m + lax.broadcasted_iota(
                jnp.int32, x.shape, 0)
            x = jnp.where(row < m_true, x, 0.0)

    y = jnp.dot(x.astype(jnp.bfloat16), w_ref[...],
                preferred_element_type=jnp.float32)
    y_ref[...] = y.astype(y_ref.dtype)                 # bf16 activation out

    s1 = jnp.sum(y, axis=0, keepdims=True)             # f32 stats (exact)
    s2 = jnp.sum(y * y, axis=0, keepdims=True)
    ridx = lax.broadcasted_iota(jnp.int32, st_ref.shape, 0)
    st_ref[...] = jnp.where(ridx == 0, s1, jnp.where(ridx == 1, s2, 0.0))


def _conv2_kernel(*refs, ktap, tile_ho, wo, h, w, fused):
    """3x3 conv (stride already collapsed) over one output row block.

    fused==True: the input is the *raw* conv1 output (bf16); bn1 affine +
    ReLU + 1px zero pad are applied in-kernel into a per-image VMEM scratch
    (built once per image at row-block 0), removing two HBM passes."""
    if fused:
        x_ref, s_ref, b_ref, w_ref, y_ref, st_ref, act_ref = refs
    else:
        x_ref, w_ref, y_ref, st_ref = refs

    rb = pl.program_id(1)

    if fused:
        @pl.when(rb == 0)
        def _():
            act_ref[...] = jnp.zeros_like(act_ref)
            r = 0
            while r < h:                       # static, unrolled row chunks
                rc = min(8, h - r)
                a = x_ref[0, pl.ds(r, rc), :, :].astype(jnp.float32)
                a = jnp.maximum(a * s_ref[...] + b_ref[...], 0.0)
                act_ref[pl.ds(1 + r, rc), pl.ds(1, w), :] = a.astype(act_ref.dtype)
                r += rc

    cout = w_ref.shape[-1]
    row0 = rb * tile_ho

    def tap(ai, aj):
        if fused:
            lhs = act_ref[pl.ds(row0 + ai, tile_ho), pl.ds(aj, wo), :]
        else:
            lhs = x_ref[0, pl.ds(row0 + ai, tile_ho), pl.ds(aj, wo), :]
        return lhs.reshape(tile_ho * wo, lhs.shape[-1]).astype(jnp.bfloat16)

    acc = jnp.zeros((tile_ho * wo, cout), jnp.float32)
    for ai in range(ktap):
        for aj in range(ktap):
            acc = acc + jnp.dot(tap(ai, aj), w_ref[ai * ktap + aj],
                                preferred_element_type=jnp.float32)

    y_ref[...] = acc[None].astype(y_ref.dtype)

    s1 = jnp.sum(acc, axis=0, keepdims=True)
    s2 = jnp.sum(acc * acc, axis=0, keepdims=True)
    ridx = lax.broadcasted_iota(jnp.int32, (SUB, cout), 0)
    st_ref[...] = jnp.where(ridx == 0, s1, jnp.where(ridx == 1, s2, 0.0))[None]


def _final_kernel(*refs, res_affine):
    """bn3 affine + (shortcut bn affine) + residual add + final ReLU."""
    if res_affine:
        y_ref, s_ref, b_ref, r_ref, rs_ref, rb_ref, o_ref = refs
    else:
        y_ref, s_ref, b_ref, r_ref, o_ref = refs
    out = y_ref[...].astype(jnp.float32) * s_ref[...] + b_ref[...]
    r = r_ref[...].astype(jnp.float32)
    if res_affine:
        r = r * rs_ref[...] + rb_ref[...]
    o_ref[...] = jnp.maximum(out + r, 0.0)


# ----------------------------- kernel wrappers ------------------------------ #

def _conv1x1_stats(x2d, w_bf16, pre=None):
    """x2d: (M, Cin_p), w: (Cin_p, Cout_p) bf16, pre: optional (scale, shift)
    each (1, Cin_p) f32.  Returns bf16 y (M, Cout_p) and (2, Cout_p) sums."""
    m, cin = x2d.shape
    cout = w_bf16.shape[1]
    in_b = x2d.dtype.itemsize
    per_row = cin * in_b + cout * 2                     # x tile + bf16 y tile
    resident = cin * cout * 2 + 2 * SUB * cout * 4
    tm = _choose_tile_m(m, per_row, resident)
    nt = -(-m // tm)
    m_pad = nt * tm
    xp = _pad_rows(x2d, m_pad)

    fuse_pre = pre is not None
    args = [xp, w_bf16] + (list(pre) if fuse_pre else [])
    in_specs = [pl.BlockSpec((tm, cin), lambda i: (i, 0)),
                _spec((cin, cout), lambda i: (0, 0), resident=True)]
    if fuse_pre:
        in_specs += [_spec((1, cin), lambda i: (0, 0), resident=True)] * 2

    kernel = functools.partial(
        _mm_stats_kernel, fuse_pre=fuse_pre,
        mask_rows=fuse_pre and (m_pad != m), m_true=m, tile_m=tm)

    flops = 2 * m_pad * cin * cout
    bytes_acc = m_pad * cin * in_b + m_pad * cout * 2 + cin * cout * 2

    y, st = pl.pallas_call(
        kernel,
        grid=(nt,),
        in_specs=in_specs,
        out_specs=(pl.BlockSpec((tm, cout), lambda i: (i, 0)),
                   pl.BlockSpec((SUB, cout), lambda i: (i, 0))),
        out_shape=(jax.ShapeDtypeStruct((m_pad, cout), jnp.bfloat16),
                   jax.ShapeDtypeStruct((nt * SUB, cout), jnp.float32)),
        compiler_params=_cparams(("parallel",)),
        cost_estimate=pl.CostEstimate(flops=flops, transcendentals=0,
                                      bytes_accessed=bytes_acc),
    )(*args)

    sums = st.reshape(nt, SUB, cout)[:, :2, :].sum(axis=0)   # global (2, Cout_p)
    return y[:m], sums


def _conv2(x_img, w_taps, *, ho, wo, ktap, pre=None, spatial=None):
    """Row-block tiled 3x3 conv.  `pre` given (stride==1): x_img is the raw
    (n, h, w, cin) bf16 conv1 output; bn1+ReLU+zero-pad are fused in-kernel.
    Otherwise x_img is the pre-collapsed (n, hq, wq, cin') bf16 input."""
    n = x_img.shape[0]
    cin = x_img.shape[-1]
    cout = w_taps.shape[-1]
    fused = pre is not None
    h, w = (spatial if fused else (None, None))
    hq, wq = ho + ktap - 1, wo + ktap - 1

    # output row-block: keep the f32 accumulator <= ~256 KiB
    rows_target = max(SUB, min(512, 65536 // cout))
    tile_ho = 1
    for d in range(1, ho + 1):
        if ho % d == 0 and d * wo <= rows_target:
            tile_ho = d
    nrb = ho // tile_ho

    if fused:
        in_specs = [
            pl.BlockSpec((1, h, w, cin), lambda i, rb: (i, 0, 0, 0)),
            _spec((1, cin), lambda i, rb: (0, 0), resident=True),
            _spec((1, cin), lambda i, rb: (0, 0), resident=True),
            _spec((ktap * ktap, cin, cout), lambda i, rb: (0, 0, 0),
                  resident=True),
        ]
        args = [x_img, pre[0], pre[1], w_taps]
        scratch = [pltpu.VMEM((hq, wq, cin), jnp.bfloat16)]
    else:
        in_specs = [
            pl.BlockSpec((1, hq, wq, cin), lambda i, rb: (i, 0, 0, 0)),
            _spec((ktap * ktap, cin, cout), lambda i, rb: (0, 0, 0),
                  resident=True),
        ]
        args = [x_img, w_taps]
        scratch = []

    kernel = functools.partial(_conv2_kernel, ktap=ktap, tile_ho=tile_ho,
                               wo=wo, h=h, w=w, fused=fused)

    flops = 2 * n * ho * wo * ktap * ktap * cin * cout
    bytes_acc = (x_img.size * x_img.dtype.itemsize + w_taps.size * 2
                 + n * ho * wo * cout * 2)

    y, st = pl.pallas_call(
        kernel,
        grid=(n, nrb),
        in_specs=in_specs,
        out_specs=(pl.BlockSpec((1, tile_ho * wo, cout),
                                lambda i, rb: (i * nrb + rb, 0, 0)),
                   pl.BlockSpec((1, SUB, cout),
                                lambda i, rb: (i * nrb + rb, 0, 0))),
        out_shape=(jax.ShapeDtypeStruct((n * nrb, tile_ho * wo, cout),
                                        jnp.bfloat16),
                   jax.ShapeDtypeStruct((n * nrb, SUB, cout), jnp.float32)),
        scratch_shapes=scratch,
        compiler_params=_cparams(("parallel", "arbitrary")),
        cost_estimate=pl.CostEstimate(flops=flops, transcendentals=0,
                                      bytes_accessed=bytes_acc),
    )(*args)

    sums = st[:, :2, :].sum(axis=0)
    return y.reshape(n * ho * wo, cout), sums


def _bn_add_relu(y, scale, shift, res, res_scale=None, res_shift=None):
    """out = relu(y*scale + shift + [res*res_scale + res_shift | res])."""
    m, c = y.shape
    per_row = c * (y.dtype.itemsize + res.dtype.itemsize + 4)
    tm = _choose_tile_m(m, per_row, 6 * c * 4)
    nt = -(-m // tm)
    m_pad = nt * tm
    yp = _pad_rows(y, m_pad)
    rp = _pad_rows(res, m_pad)

    res_affine = res_scale is not None
    args = [yp, scale, shift, rp] + ([res_scale, res_shift] if res_affine else [])
    vec = _spec((1, c), lambda i: (0, 0), resident=True)
    tile = pl.BlockSpec((tm, c), lambda i: (i, 0))
    in_specs = [tile, vec, vec, tile] + ([vec, vec] if res_affine else [])

    out = pl.pallas_call(
        functools.partial(_final_kernel, res_affine=res_affine),
        grid=(nt,),
        in_specs=in_specs,
        out_specs=tile,
        out_shape=jax.ShapeDtypeStruct((m_pad, c), jnp.float32),
        compiler_params=_cparams(("parallel",)),
    )(*args)
    return out[:m]


# ------------------------------- glue (JAX) -------------------------------- #

def _bn_affine(sums, gamma_p, beta_p, m_true):
    """Global (sum, sumsq) -> per-channel (scale, shift) of training-mode
    BatchNorm (biased variance, matching PyTorch)."""
    mean = sums[0] / m_true
    var = jnp.maximum(sums[1] / m_true - mean * mean, 0.0)
    scale = gamma_p * lax.rsqrt(var + BN_EPS)
    shift = beta_p - mean * scale
    return scale.reshape(1, -1), shift.reshape(1, -1)


def _prep_1x1_weights(w_oihw, cin_p, cout_p):
    p_out, p_in = w_oihw.shape[:2]
    wm = jnp.zeros((cin_p, cout_p), jnp.float32)
    wm = wm.at[:p_in, :p_out].set(jnp.transpose(w_oihw[:, :, 0, 0]))
    return wm.astype(jnp.bfloat16)


def _prep_conv2_input(act, stride):
    """Zero-pad spatially and stride-collapse (space-to-depth) the bn1+relu
    activation so the 3x3/stride-s conv becomes a ktap x ktap stride-1 conv."""
    n, h, w, c = act.shape
    ho = (h - 1) // stride + 1
    wo = (w - 1) // stride + 1
    ktap = -(-3 // stride)            # ceil(3 / stride)
    hq = ho + ktap - 1
    wq = wo + ktap - 1
    xp = jnp.pad(act, ((0, 0),
                       (1, stride * hq - h - 1),
                       (1, stride * wq - w - 1),
                       (0, 0)))
    if stride == 1:
        return xp, ho, wo, ktap
    subs = [xp[:, r::stride, c0::stride, :][:, :hq, :wq, :]
            for r in range(stride) for c0 in range(stride)]
    return jnp.concatenate(subs, axis=-1), ho, wo, ktap


def _prep_conv2_weights(w_oihw, stride, cin_block, cout_p):
    """(planes, planes, 3, 3) -> (ktap**2, stride**2 * cin_block, cout_p) bf16
    matching _prep_conv2_input's channel-block layout (stride=1: plain taps)."""
    p_out, p_in, kh, kw = w_oihw.shape
    ktap = -(-kh // stride)
    wt = jnp.zeros((ktap * ktap, stride * stride * cin_block, cout_p),
                   jnp.float32)
    for ai in range(ktap):
        for aj in range(ktap):
            for r in range(stride):
                for c0 in range(stride):
                    di = stride * ai + r
                    dj = stride * aj + c0
                    if di < kh and dj < kw:
                        blk = (r * stride + c0) * cin_block
                        wt = wt.at[ai * ktap + aj,
                                   blk:blk + p_in,
                                   :p_out].set(jnp.transpose(w_oihw[:, :, di, dj]))
    return wt.astype(jnp.bfloat16)


def init_bottleneck_params(key, in_planes, planes, stride):
    exp = 4
    ks = jax.random.split(key, 12)
    p = {
        "conv1_w": 0.1 * jax.random.normal(ks[0], (planes, in_planes, 1, 1), jnp.float32),
        "bn1_g": 1.0 + 0.1 * jax.random.normal(ks[1], (planes,), jnp.float32),
        "bn1_b": 0.1 * jax.random.normal(ks[2], (planes,), jnp.float32),
        "conv2_w": 0.1 * jax.random.normal(ks[3], (planes, planes, 3, 3), jnp.float32),
        "bn2_g": 1.0 + 0.1 * jax.random.normal(ks[4], (planes,), jnp.float32),
        "bn2_b": 0.1 * jax.random.normal(ks[5], (planes,), jnp.float32),
        "conv3_w": 0.1 * jax.random.normal(ks[6], (exp * planes, planes, 1, 1), jnp.float32),
        "bn3_g": 1.0 + 0.1 * jax.random.normal(ks[7], (exp * planes,), jnp.float32),
        "bn3_b": 0.1 * jax.random.normal(ks[8], (exp * planes,), jnp.float32),
    }
    if stride != 1 or in_planes != exp * planes:
        p["convs_w"] = 0.1 * jax.random.normal(ks[9], (exp * planes, in_planes, 1, 1), jnp.float32)
        p["bns_g"] = 1.0 + 0.1 * jax.random.normal(ks[10], (exp * planes,), jnp.float32)
        p["bns_b"] = 0.1 * jax.random.normal(ks[11], (exp * planes,), jnp.float32)
    return p


def bottleneck_forward_nhwc(x_nhwc, p, stride):
    x = x_nhwc.astype(jnp.float32)
    n, h, w, cin = x.shape
    planes = p["conv1_w"].shape[0]
    cout = 4 * planes
    cin_p, pln_p, cout_p = _rup(cin, LANE), _rup(planes, LANE), _rup(cout, LANE)

    xc = _pad_channels(x, cin_p)                                    # lane-dense
    m1 = n * h * w

    # ---- conv1 (1x1): bf16 MXU matmul -> bf16 y1 + f32 batch stats ----
    w1 = _prep_1x1_weights(p["conv1_w"], cin_p, pln_p)
    y1, s1 = _conv1x1_stats(xc.reshape(m1, cin_p), w1)
    sc1, sh1 = _bn_affine(s1, _pad_channels(p["bn1_g"], pln_p),
                          _pad_channels(p["bn1_b"], pln_p), m1)

    # ---- conv2 (3x3, stride) ----
    w2 = _prep_conv2_weights(p["conv2_w"], stride, pln_p, pln_p)
    if stride == 1:
        # bn1 affine + ReLU + 1px zero pad are fused inside the conv2 kernel.
        ho, wo, ktap = h, w, 3
        y2, s2 = _conv2(y1.reshape(n, h, w, pln_p), w2, ho=ho, wo=wo,
                        ktap=ktap, pre=(sc1, sh1), spatial=(h, w))
    else:
        # stride collapsed via one bf16 space-to-depth pass (bn1+ReLU fused
        # by XLA into that same pass).
        act1 = jnp.maximum(
            y1.astype(jnp.float32).reshape(n, h, w, pln_p) * sc1 + sh1,
            0.0).astype(jnp.bfloat16)
        xs, ho, wo, ktap = _prep_conv2_input(act1, stride)
        y2, s2 = _conv2(xs, w2, ho=ho, wo=wo, ktap=ktap)
    m2 = n * ho * wo
    sc2, sh2 = _bn_affine(s2, _pad_channels(p["bn2_g"], pln_p),
                          _pad_channels(p["bn2_b"], pln_p), m2)

    # ---- conv3 (1x1) with bn2 + ReLU fused as the in-kernel pre-affine ----
    w3 = _prep_1x1_weights(p["conv3_w"], pln_p, cout_p)
    y3, s3 = _conv1x1_stats(y2, w3, pre=(sc2, sh2))
    sc3, sh3 = _bn_affine(s3, _pad_channels(p["bn3_g"], cout_p),
                          _pad_channels(p["bn3_b"], cout_p), m2)

    # ---- shortcut, bn3, residual add, final ReLU (fused) ----
    if "convs_w" in p:
        ws = _prep_1x1_weights(p["convs_w"], cin_p, cout_p)
        # TODO(synk): move the ::stride subsample into the shortcut kernel's
        # DMA pattern instead of an XLA gather (saves one HBM pass).
        xsub = _pad_channels(x[:, ::stride, ::stride, :], cin_p).reshape(m2, cin_p)
        ysc, ss = _conv1x1_stats(xsub, ws)
        scs, shs = _bn_affine(ss, _pad_channels(p["bns_g"], cout_p),
                              _pad_channels(p["bns_b"], cout_p), m2)
        out = _bn_add_relu(y3, sc3, sh3, ysc, scs, shs)
    else:
        res = xc.reshape(m2, cout_p)        # identity: stride==1, cin==cout
        out = _bn_add_relu(y3, sc3, sh3, res)

    return out.reshape(n, ho, wo, cout_p)[:, :, :, :cout]


def bottleneck_forward(x_nchw, p, stride):
    x = jnp.transpose(x_nchw, (0, 2, 3, 1))                         # NHWC
    out = bottleneck_forward_nhwc(x, p, stride)
    return jnp.transpose(out, (0, 3, 1, 2))                         # NCHW


# ------------------------- pure-JAX reference check ------------------------ #

def _ref_forward(x_nchw, p, stride):
    def conv(x, w, s, pad):
        return lax.conv_general_dilated(
            x, w, (s, s), [(pad, pad), (pad, pad)],
            dimension_numbers=("NCHW", "OIHW", "NCHW"))

    def bn(y, g, b):
        mu = jnp.mean(y, axis=(0, 2, 3), keepdims=True)
        var = jnp.mean((y - mu) ** 2, axis=(0, 2, 3), keepdims=True)
        return (y - mu) * lax.rsqrt(var + BN_EPS) * g.reshape(1, -1, 1, 1) \
            + b.reshape(1, -1, 1, 1)

    out = jax.nn.relu(bn(conv(x_nchw, p["conv1_w"], 1, 0), p["bn1_g"], p["bn1_b"]))
    out = jax.nn.relu(bn(conv(out, p["conv2_w"], stride, 1), p["bn2_g"], p["bn2_b"]))
    out = bn(conv(out, p["conv3_w"], 1, 0), p["bn3_g"], p["bn3_b"])
    if "convs_w" in p:
        sc = bn(conv(x_nchw, p["convs_w"], stride, 0), p["bns_g"], p["bns_b"])
    else:
        sc = x_nchw
    return jax.nn.relu(out + sc)


if __name__ == "__main__":
    key = jax.random.PRNGKey(0)

    configs = [
        # conv-shortcut branch + strided (space-to-depth collapsed) conv2
        (4, 8, 2, 16),
        # identity shortcut + fused (bn1+relu+pad in-kernel) stride-1 conv2
        (32, 8, 1, 16),
    ]
    for idx, (in_planes, planes, stride, hw) in enumerate(configs):
        kx, kp = jax.random.split(jax.random.fold_in(key, idx))
        x = jax.random.normal(kx, (2, in_planes, hw, hw), jnp.float32)
        params = init_bottleneck_params(kp, in_planes, planes, stride)

        fwd = jax.jit(functools.partial(bottleneck_forward, stride=stride))
        out = jax.block_until_ready(fwd(x, params))

        ref = _ref_forward(x, params, stride)
        assert out.shape == ref.shape, (out.shape, ref.shape)
        # bf16 MXU operands + bf16 intermediate activations => loose tolerance
        err = jnp.max(jnp.abs(out - ref))
        assert jnp.allclose(out, ref, atol=8e-2, rtol=8e-2), \
            f"config {idx}: mismatch vs reference (max abs err {err})"

    print("KERNEL_OK")
</pallas_src>

<mosaic_0001>
module attributes {stable_mosaic.version = 11 : i64} {
  func.func @k(%arg0: i32, %arg1: memref<8x128xf32, #tpu.memory_space<vmem>>, %arg2: memref<8x128xf32, #tpu.memory_space<vmem>>) attributes {dimension_semantics = [#tpu.dimension_semantics<arbitrary>], iteration_bounds = array<i64: 2>, scalar_prefetch = 0 : i64, scratch_operands = 0 : i64, tpu.core_type = #tpu.core_type<tc>, window_params = [{pipeline_mode = #tpu.pipeline_mode<synchronous>, transform_indices = @transform_0, window_bounds = array<i64: 8, 128>}, {pipeline_mode = #tpu.pipeline_mode<synchronous>, transform_indices = @transform_1, window_bounds = array<i64: 8, 128>}]} {
    %c0 = arith.constant 0 : index
    %c0_0 = arith.constant 0 : index
    %0 = vector.load %arg1[%c0, %c0_0] : memref<8x128xf32, #tpu.memory_space<vmem>>, vector<8x128xf32>
    %cst = arith.constant 1.000000e+00 : f32
    %1 = vector.broadcast %cst : f32 to vector<8x128xf32>
    %2 = arith.addf %0, %1 : vector<8x128xf32>
    %c0_1 = arith.constant 0 : index
    %c0_2 = arith.constant 0 : index
    %3 = vector.load %arg2[%c0_1, %c0_2] : memref<8x128xf32, #tpu.memory_space<vmem>>, vector<8x128xf32>
    tpu.vector_store %arg2[%c0_1, %c0_2], %2 {strides = array<i32>} : memref<8x128xf32, #tpu.memory_space<vmem>>, vector<8x128xf32>,
    return
  }
  func.func @transform_0(%arg0: i32) -> (i32, i32) {
    %c0_i32 = arith.constant 0 : i32
    %c0_i32_0 = arith.constant 0 : i32
    %c0_i32_1 = arith.constant 0 : i32
    return %c0_i32, %c0_i32_0 : i32, i32
  }
  func.func @transform_1(%arg0: i32) -> (i32, i32) {
    %c0_i32 = arith.constant 0 : i32
    %c0_i32_0 = arith.constant 0 : i32
    %c0_i32_1 = arith.constant 0 : i32
    return %c0_i32, %c0_i32_0 : i32, i32
  }
}

module attributes {stable_mosaic.version = 11 : i64} {
  func.func @_mm_stats_kernel(%arg0: i32, %arg1: memref<512x128xf32, #tpu.memory_space<vmem>>, %arg2: memref<128x128xbf16, #tpu.memory_space<vmem>>, %arg3: memref<512x128xbf16, #tpu.memory_space<vmem>>, %arg4: memref<8x128xf32, #tpu.memory_space<vmem>>) attributes {dimension_semantics = [#tpu.dimension_semantics<parallel>], iteration_bounds = array<i64: 1>, scalar_prefetch = 0 : i64, scratch_operands = 0 : i64, tpu.core_type = #tpu.core_type<tc>, window_params = [{transform_indices = @transform_0, window_bounds = array<i64: 512, 128>}, {pipeline_mode = #tpu.pipeline_mode<synchronous>, transform_indices = @transform_1, window_bounds = array<i64: 128, 128>}, {transform_indices = @transform_2, window_bounds = array<i64: 512, 128>}, {transform_indices = @transform_3, window_bounds = array<i64: 8, 128>}]} {
    %c0 = arith.constant 0 : index
    %c0_0 = arith.constant 0 : index
    %0 = vector.load %arg1[%c0, %c0_0] : memref<512x128xf32, #tpu.memory_space<vmem>>, vector<512x128xf32>
    %1 = arith.truncf %0 : vector<512x128xf32> to vector<512x128xbf16>
    %c0_1 = arith.constant 0 : index
    %c0_2 = arith.constant 0 : index
    %2 = vector.load %arg2[%c0_1, %c0_2] : memref<128x128xbf16, #tpu.memory_space<vmem>>, vector<128x128xbf16>
    %cst = arith.constant dense<0.000000e+00> : vector<512x128xf32>
    %3 = tpu.matmul %1, %2, %cst {dimension_numbers = #tpu.dot_dimension_numbers<[1], [0], [0], [1], [0, 0, 1, 1], [], []>} : vector<512x128xbf16>, vector<128x128xbf16>, vector<512x128xf32> -> vector<512x128xf32>
    %4 = arith.truncf %3 : vector<512x128xf32> to vector<512x128xbf16>
    %c0_3 = arith.constant 0 : index
    %c0_4 = arith.constant 0 : index
    %5 = vector.load %arg3[%c0_3, %c0_4] : memref<512x128xbf16, #tpu.memory_space<vmem>>, vector<512x128xbf16>
    tpu.vector_store %arg3[%c0_3, %c0_4], %4 {strides = array<i32>} : memref<512x128xbf16, #tpu.memory_space<vmem>>, vector<512x128xbf16>,
    %cst_5 = arith.constant dense<0.000000e+00> : vector<128xf32>
    %6 = vector.multi_reduction <add>, %3, %cst_5 [0] : vector<512x128xf32> to vector<128xf32>
    %7 = vector.shape_cast %6 : vector<128xf32> to vector<1x128xf32>
    %8 = arith.mulf %3, %3 : vector<512x128xf32>
    %cst_6 = arith.constant dense<0.000000e+00> : vector<128xf32>
    %9 = vector.multi_reduction <add>, %8, %cst_6 [0] : vector<512x128xf32> to vector<128xf32>
    %10 = vector.shape_cast %9 : vector<128xf32> to vector<1x128xf32>
    %11 = tpu.iota {dimensions = array<i32: 0>} : vector<8x128xi32>
    %c0_i32 = arith.constant 0 : i32
    %12 = vector.broadcast %c0_i32 : i32 to vector<8x128xi32>
    %13 = arith.cmpi eq, %11, %12 : vector<8x128xi32>
    %c1_i32 = arith.constant 1 : i32
    %14 = vector.broadcast %c1_i32 : i32 to vector<8x128xi32>
    %15 = arith.cmpi eq, %11, %14 : vector<8x128xi32>
    %cst_7 = arith.constant 0.000000e+00 : f32
    %16 = vector.shape_cast %10 : vector<1x128xf32> to vector<1x128xf32>
    %17 = vector.broadcast %16 : vector<1x128xf32> to vector<8x128xf32>
    %18 = vector.broadcast %cst_7 : f32 to vector<8x128xf32>
    %19 = arith.select %15, %17, %18 : vector<8x128xi1>, vector<8x128xf32>
    %20 = vector.shape_cast %7 : vector<1x128xf32> to vector<1x128xf32>
    %21 = vector.broadcast %20 : vector<1x128xf32> to vector<8x128xf32>
    %22 = arith.select %13, %21, %19 : vector<8x128xi1>, vector<8x128xf32>
    %c0_8 = arith.constant 0 : index
    %c0_9 = arith.constant 0 : index
    %23 = vector.load %arg4[%c0_8, %c0_9] : memref<8x128xf32, #tpu.memory_space<vmem>>, vector<8x128xf32>
    tpu.vector_store %arg4[%c0_8, %c0_9], %22 {strides = array<i32>} : memref<8x128xf32, #tpu.memory_space<vmem>>, vector<8x128xf32>,
    return
  }
  func.func @transform_0(%arg0: i32) -> (i32, i32) {
    %c0_i32 = arith.constant 0 : i32
    %c0_i32_0 = arith.constant 0 : i32
    return %arg0, %c0_i32 : i32, i32
  }
  func.func @transform_1(%arg0: i32) -> (i32, i32) {
    %c0_i32 = arith.constant 0 : i32
    %c0_i32_0 = arith.constant 0 : i32
    %c0_i32_1 = arith.constant 0 : i32
    return %c0_i32, %c0_i32_0 : i32, i32
  }
  func.func @transform_2(%arg0: i32) -> (i32, i32) {
    %c0_i32 = arith.constant 0 : i32
    %c0_i32_0 = arith.constant 0 : i32
    return %arg0, %c0_i32 : i32, i32
  }
  func.func @transform_3(%arg0: i32) -> (i32, i32) {
    %c0_i32 = arith.constant 0 : i32
    %c0_i32_0 = arith.constant 0 : i32
    return %arg0, %c0_i32 : i32, i32
  }
}

module attributes {stable_mosaic.version = 11 : i64} {
  func.func @_conv2_kernel(%arg0: i32, %arg1: i32, %arg2: memref<1x9x9x512xbf16, #tpu.memory_space<vmem>>, %arg3: memref<4x512x128xbf16, #tpu.memory_space<vmem>>, %arg4: memref<1x64x128xbf16, #tpu.memory_space<vmem>>, %arg5: memref<1x8x128xf32, #tpu.memory_space<vmem>>) attributes {dimension_semantics = [#tpu.dimension_semantics<parallel>, #tpu.dimension_semantics<arbitrary>], iteration_bounds = array<i64: 2, 1>, scalar_prefetch = 0 : i64, scratch_operands = 0 : i64, tpu.core_type = #tpu.core_type<tc>, window_params = [{transform_indices = @transform_0, window_bounds = array<i64: 1, 9, 9, 512>}, {pipeline_mode = #tpu.pipeline_mode<synchronous>, transform_indices = @transform_1, window_bounds = array<i64: 4, 512, 128>}, {transform_indices = @transform_2, window_bounds = array<i64: 1, 64, 128>}, {transform_indices = @transform_3, window_bounds = array<i64: 1, 8, 128>}]} {
    %c8_i32 = arith.constant 8 : i32
    %0 = arith.muli %arg1, %c8_i32 : i32
    %cst = arith.constant 0.000000e+00 : f32
    %1 = vector.broadcast %cst : f32 to vector<64x128xf32>
    %c0_i32 = arith.constant 0 : i32
    %2 = arith.addi %0, %c0_i32 : i32
    %c0 = arith.constant 0 : index
    %3 = arith.index_cast %2 : i32 to index
    %c0_0 = arith.constant 0 : index
    %c0_1 = arith.constant 0 : index
    %4 = vector.load %arg2[%c0, %3, %c0_0, %c0_1] : memref<1x9x9x512xbf16, #tpu.memory_space<vmem>>, vector<1x8x8x512xbf16>
    %5 = vector.shape_cast %4 : vector<1x8x8x512xbf16> to vector<8x8x512xbf16>
    %6 = vector.shape_cast %5 : vector<8x8x512xbf16> to vector<64x512xbf16>
    %c0_2 = arith.constant 0 : index
    %c0_3 = arith.constant 0 : index
    %c0_4 = arith.constant 0 : index
    %7 = vector.load %arg3[%c0_2, %c0_3, %c0_4] : memref<4x512x128xbf16, #tpu.memory_space<vmem>>, vector<1x512x128xbf16>
    %8 = vector.shape_cast %7 : vector<1x512x128xbf16> to vector<512x128xbf16>
    %cst_5 = arith.constant dense<0.000000e+00> : vector<64x128xf32>
    %9 = tpu.matmul %6, %8, %cst_5 {dimension_numbers = #tpu.dot_dimension_numbers<[1], [0], [0], [1], [0, 0, 1, 1], [], []>} : vector<64x512xbf16>, vector<512x128xbf16>, vector<64x128xf32> -> vector<64x128xf32>
    %10 = arith.addf %1, %9 : vector<64x128xf32>
    %c0_i32_6 = arith.constant 0 : i32
    %11 = arith.addi %0, %c0_i32_6 : i32
    %c0_7 = arith.constant 0 : index
    %12 = arith.index_cast %11 : i32 to index
    %c1 = arith.constant 1 : index
    %c0_8 = arith.constant 0 : index
    %13 = vector.load %arg2[%c0_7, %12, %c1, %c0_8] : memref<1x9x9x512xbf16, #tpu.memory_space<vmem>>, vector<1x8x8x512xbf16>
    %14 = vector.shape_cast %13 : vector<1x8x8x512xbf16> to vector<8x8x512xbf16>
    %15 = vector.shape_cast %14 : vector<8x8x512xbf16> to vector<64x512xbf16>
    %c1_9 = arith.constant 1 : index
    %c0_10 = arith.constant 0 : index
    %c0_11 = arith.constant 0 : index
    %16 = vector.load %arg3[%c1_9, %c0_10, %c0_11] : memref<4x512x128xbf16, #tpu.memory_space<vmem>>, vector<1x512x128xbf16>
    %17 = vector.shape_cast %16 : vector<1x512x128xbf16> to vector<512x128xbf16>
    %cst_12 = arith.constant dense<0.000000e+00> : vector<64x128xf32>
    %18 = tpu.matmul %15, %17, %cst_12 {dimension_numbers = #tpu.dot_dimension_numbers<[1], [0], [0], [1], [0, 0, 1, 1], [], []>} : vector<64x512xbf16>, vector<512x128xbf16>, vector<64x128xf32> -> vector<64x128xf32>
    %19 = arith.addf %10, %18 : vector<64x128xf32>
    %c1_i32 = arith.constant 1 : i32
    %20 = arith.addi %0, %c1_i32 : i32
    %c0_13 = arith.constant 0 : index
    %21 = arith.index_cast %20 : i32 to index
    %c0_14 = arith.constant 0 : index
    %c0_15 = arith.constant 0 : index
    %22 = vector.load %arg2[%c0_13, %21, %c0_14, %c0_15] : memref<1x9x9x512xbf16, #tpu.memory_space<vmem>>, vector<1x8x8x512xbf16>
    %23 = vector.shape_cast %22 : vector<1x8x8x512xbf16> to vector<8x8x512xbf16>
    %24 = vector.shape_cast %23 : vector<8x8x512xbf16> to vector<64x512xbf16>
    %c2 = arith.constant 2 : index
    %c0_16 = arith.constant 0 : index
    %c0_17 = arith.constant 0 : index
    %25 = vector.load %arg3[%c2, %c0_16, %c0_17] : memref<4x512x128xbf16, #tpu.memory_space<vmem>>, vector<1x512x128xbf16>
    %26 = vector.shape_cast %25 : vector<1x512x128xbf16> to vector<512x128xbf16>
    %cst_18 = arith.constant dense<0.000000e+00> : vector<64x128xf32>
    %27 = tpu.matmul %24, %26, %cst_18 {dimension_numbers = #tpu.dot_dimension_numbers<[1], [0], [0], [1], [0, 0, 1, 1], [], []>} : vector<64x512xbf16>, vector<512x128xbf16>, vector<64x128xf32> -> vector<64x128xf32>
    %28 = arith.addf %19, %27 : vector<64x128xf32>
    %c1_i32_19 = arith.constant 1 : i32
    %29 = arith.addi %0, %c1_i32_19 : i32
    %c0_20 = arith.constant 0 : index
    %30 = arith.index_cast %29 : i32 to index
    %c1_21 = arith.constant 1 : index
    %c0_22 = arith.constant 0 : index
    %31 = vector.load %arg2[%c0_20, %30, %c1_21, %c0_22] : memref<1x9x9x512xbf16, #tpu.memory_space<vmem>>, vector<1x8x8x512xbf16>
    %32 = vector.shape_cast %31 : vector<1x8x8x512xbf16> to vector<8x8x512xbf16>
    %33 = vector.shape_cast %32 : vector<8x8x512xbf16> to vector<64x512xbf16>
    %c3 = arith.constant 3 : index
    %c0_23 = arith.constant 0 : index
    %c0_24 = arith.constant 0 : index
    %34 = vector.load %arg3[%c3, %c0_23, %c0_24] : memref<4x512x128xbf16, #tpu.memory_space<vmem>>, vector<1x512x128xbf16>
    %35 = vector.shape_cast %34 : vector<1x512x128xbf16> to vector<512x128xbf16>
    %cst_25 = arith.constant dense<0.000000e+00> : vector<64x128xf32>
    %36 = tpu.matmul %33, %35, %cst_25 {dimension_numbers = #tpu.dot_dimension_numbers<[1], [0], [0], [1], [0, 0, 1, 1], [], []>} : vector<64x512xbf16>, vector<512x128xbf16>, vector<64x128xf32> -> vector<64x128xf32>
    %37 = arith.addf %28, %36 : vector<64x128xf32>
    %38 = vector.shape_cast %37 : vector<64x128xf32> to vector<1x64x128xf32>
    %39 = arith.truncf %38 : vector<1x64x128xf32> to vector<1x64x128xbf16>
    %c0_26 = arith.constant 0 : index
    %c0_27 = arith.constant 0 : index
    %c0_28 = arith.constant 0 : index
    %40 = vector.load %arg4[%c0_26, %c0_27, %c0_28] : memref<1x64x128xbf16, #tpu.memory_space<vmem>>, vector<1x64x128xbf16>
    tpu.vector_store %arg4[%c0_26, %c0_27, %c0_28], %39 {strides = array<i32>} : memref<1x64x128xbf16, #tpu.memory_space<vmem>>, vector<1x64x128xbf16>,
    %cst_29 = arith.constant dense<0.000000e+00> : vector<128xf32>
    %41 = vector.multi_reduction <add>, %37, %cst_29 [0] : vector<64x128xf32> to vector<128xf32>
    %42 = vector.shape_cast %41 : vector<128xf32> to vector<1x128xf32>
    %43 = arith.mulf %37, %37 : vector<64x128xf32>
    %cst_30 = arith.constant dense<0.000000e+00> : vector<128xf32>
    %44 = vector.multi_reduction <add>, %43, %cst_30 [0] : vector<64x128xf32> to vector<128xf32>
    %45 = vector.shape_cast %44 : vector<128xf32> to vector<1x128xf32>
    %46 = tpu.iota {dimensions = array<i32: 0>} : vector<8x128xi32>
    %c0_i32_31 = arith.constant 0 : i32
    %47 = vector.broadcast %c0_i32_31 : i32 to vector<8x128xi32>
    %48 = arith.cmpi eq, %46, %47 : vector<8x128xi32>
    %c1_i32_32 = arith.constant 1 : i32
    %49 = vector.broadcast %c1_i32_32 : i32 to vector<8x128xi32>
    %50 = arith.cmpi eq, %46, %49 : vector<8x128xi32>
    %cst_33 = arith.constant 0.000000e+00 : f32
    %51 = vector.shape_cast %45 : vector<1x128xf32> to vector<1x128xf32>
    %52 = vector.broadcast %51 : vector<1x128xf32> to vector<8x128xf32>
    %53 = vector.broadcast %cst_33 : f32 to vector<8x128xf32>
    %54 = arith.select %50, %52, %53 : vector<8x128xi1>, vector<8x128xf32>
    %55 = vector.shape_cast %42 : vector<1x128xf32> to vector<1x128xf32>
    %56 = vector.broadcast %55 : vector<1x128xf32> to vector<8x128xf32>
    %57 = arith.select %48, %56, %54 : vector<8x128xi1>, vector<8x128xf32>
    %58 = vector.shape_cast %57 : vector<8x128xf32> to vector<1x8x128xf32>
    %c0_34 = arith.constant 0 : index
    %c0_35 = arith.constant 0 : index
    %c0_36 = arith.constant 0 : index
    %59 = vector.load %arg5[%c0_34, %c0_35, %c0_36] : memref<1x8x128xf32, #tpu.memory_space<vmem>>, vector<1x8x128xf32>
    tpu.vector_store %arg5[%c0_34, %c0_35, %c0_36], %58 {strides = array<i32>} : memref<1x8x128xf32, #tpu.memory_space<vmem>>, vector<1x8x128xf32>,
    return
  }
  func.func @transform_0(%arg0: i32, %arg1: i32) -> (i32, i32, i32, i32) {
    %c0_i32 = arith.constant 0 : i32
    %c0_i32_0 = arith.constant 0 : i32
    %c0_i32_1 = arith.constant 0 : i32
    %c0_i32_2 = arith.constant 0 : i32
    return %arg0, %c0_i32, %c0_i32_0, %c0_i32_1 : i32, i32, i32, i32
  }
  func.func @transform_1(%arg0: i32, %arg1: i32) -> (i32, i32, i32) {
    %c0_i32 = arith.constant 0 : i32
    %c0_i32_0 = arith.constant 0 : i32
    %c0_i32_1 = arith.constant 0 : i32
    %c0_i32_2 = arith.constant 0 : i32
    return %c0_i32, %c0_i32_0, %c0_i32_1 : i32, i32, i32
  }
  func.func @transform_2(%arg0: i32, %arg1: i32) -> (i32, i32, i32) {
    %c1_i32 = arith.constant 1 : i32
    %0 = arith.muli %arg0, %c1_i32 : i32
    %1 = arith.addi %0, %arg1 : i32
    %c0_i32 = arith.constant 0 : i32
    %c0_i32_0 = arith.constant 0 : i32
    %c0_i32_1 = arith.constant 0 : i32
    return %1, %c0_i32, %c0_i32_0 : i32, i32, i32
  }
  func.func @transform_3(%arg0: i32, %arg1: i32) -> (i32, i32, i32) {
    %c1_i32 = arith.constant 1 : i32
    %0 = arith.muli %arg0, %c1_i32 : i32
    %1 = arith.addi %0, %arg1 : i32
    %c0_i32 = arith.constant 0 : i32
    %c0_i32_0 = arith.constant 0 : i32
    %c0_i32_1 = arith.constant 0 : i32
    return %1, %c0_i32, %c0_i32_0 : i32, i32, i32
  }
}

module attributes {stable_mosaic.version = 11 : i64} {
  func.func @_mm_stats_kernel(%arg0: i32, %arg1: memref<128x128xbf16, #tpu.memory_space<vmem>>, %arg2: memref<128x128xbf16, #tpu.memory_space<vmem>>, %arg3: memref<1x128xf32, #tpu.memory_space<vmem>>, %arg4: memref<1x128xf32, #tpu.memory_space<vmem>>, %arg5: memref<128x128xbf16, #tpu.memory_space<vmem>>, %arg6: memref<8x128xf32, #tpu.memory_space<vmem>>) attributes {dimension_semantics = [#tpu.dimension_semantics<parallel>], iteration_bounds = array<i64: 1>, scalar_prefetch = 0 : i64, scratch_operands = 0 : i64, tpu.core_type = #tpu.core_type<tc>, window_params = [{transform_indices = @transform_0, window_bounds = array<i64: 128, 128>}, {pipeline_mode = #tpu.pipeline_mode<synchronous>, transform_indices = @transform_1, window_bounds = array<i64: 128, 128>}, {pipeline_mode = #tpu.pipeline_mode<synchronous>, transform_indices = @transform_2, window_bounds = array<i64: 1, 128>}, {pipeline_mode = #tpu.pipeline_mode<synchronous>, transform_indices = @transform_3, window_bounds = array<i64: 1, 128>}, {transform_indices = @transform_4, window_bounds = array<i64: 128, 128>}, {transform_indices = @transform_5, window_bounds = array<i64: 8, 128>}]} {
    %c0 = arith.constant 0 : index
    %c0_0 = arith.constant 0 : index
    %0 = vector.load %arg1[%c0, %c0_0] : memref<128x128xbf16, #tpu.memory_space<vmem>>, vector<128x128xbf16>
    %1 = arith.extf %0 : vector<128x128xbf16> to vector<128x128xf32>
    %c0_1 = arith.constant 0 : index
    %c0_2 = arith.constant 0 : index
    %2 = vector.load %arg3[%c0_1, %c0_2] : memref<1x128xf32, #tpu.memory_space<vmem>>, vector<1x128xf32>
    %3 = vector.broadcast %2 : vector<1x128xf32> to vector<128x128xf32>
    %4 = arith.mulf %1, %3 : vector<128x128xf32>
    %c0_3 = arith.constant 0 : index
    %c0_4 = arith.constant 0 : index
    %5 = vector.load %arg4[%c0_3, %c0_4] : memref<1x128xf32, #tpu.memory_space<vmem>>, vector<1x128xf32>
    %6 = vector.broadcast %5 : vector<1x128xf32> to vector<128x128xf32>
    %7 = arith.addf %4, %6 : vector<128x128xf32>
    %cst = arith.constant 0.000000e+00 : f32
    %8 = vector.broadcast %cst : f32 to vector<128x128xf32>
    %9 = arith.maximumf %7, %8 : vector<128x128xf32>
    %10 = arith.truncf %9 : vector<128x128xf32> to vector<128x128xbf16>
    %c0_5 = arith.constant 0 : index
    %c0_6 = arith.constant 0 : index
    %11 = vector.load %arg2[%c0_5, %c0_6] : memref<128x128xbf16, #tpu.memory_space<vmem>>, vector<128x128xbf16>
    %cst_7 = arith.constant dense<0.000000e+00> : vector<128x128xf32>
    %12 = tpu.matmul %10, %11, %cst_7 {dimension_numbers = #tpu.dot_dimension_numbers<[1], [0], [0], [1], [0, 0, 1, 1], [], []>} : vector<128x128xbf16>, vector<128x128xbf16>, vector<128x128xf32> -> vector<128x128xf32>
    %13 = arith.truncf %12 : vector<128x128xf32> to vector<128x128xbf16>
    %c0_8 = arith.constant 0 : index
    %c0_9 = arith.constant 0 : index
    %14 = vector.load %arg5[%c0_8, %c0_9] : memref<128x128xbf16, #tpu.memory_space<vmem>>, vector<128x128xbf16>
    tpu.vector_store %arg5[%c0_8, %c0_9], %13 {strides = array<i32>} : memref<128x128xbf16, #tpu.memory_space<vmem>>, vector<128x128xbf16>,
    %cst_10 = arith.constant dense<0.000000e+00> : vector<128xf32>
    %15 = vector.multi_reduction <add>, %12, %cst_10 [0] : vector<128x128xf32> to vector<128xf32>
    %16 = vector.shape_cast %15 : vector<128xf32> to vector<1x128xf32>
    %17 = arith.mulf %12, %12 : vector<128x128xf32>
    %cst_11 = arith.constant dense<0.000000e+00> : vector<128xf32>
    %18 = vector.multi_reduction <add>, %17, %cst_11 [0] : vector<128x128xf32> to vector<128xf32>
    %19 = vector.shape_cast %18 : vector<128xf32> to vector<1x128xf32>
    %20 = tpu.iota {dimensions = array<i32: 0>} : vector<8x128xi32>
    %c0_i32 = arith.constant 0 : i32
    %21 = vector.broadcast %c0_i32 : i32 to vector<8x128xi32>
    %22 = arith.cmpi eq, %20, %21 : vector<8x128xi32>
    %c1_i32 = arith.constant 1 : i32
    %23 = vector.broadcast %c1_i32 : i32 to vector<8x128xi32>
    %24 = arith.cmpi eq, %20, %23 : vector<8x128xi32>
    %cst_12 = arith.constant 0.000000e+00 : f32
    %25 = vector.shape_cast %19 : vector<1x128xf32> to vector<1x128xf32>
    %26 = vector.broadcast %25 : vector<1x128xf32> to vector<8x128xf32>
    %27 = vector.broadcast %cst_12 : f32 to vector<8x128xf32>
    %28 = arith.select %24, %26, %27 : vector<8x128xi1>, vector<8x128xf32>
    %29 = vector.shape_cast %16 : vector<1x128xf32> to vector<1x128xf32>
    %30 = vector.broadcast %29 : vector<1x128xf32> to vector<8x128xf32>
    %31 = arith.select %22, %30, %28 : vector<8x128xi1>, vector<8x128xf32>
    %c0_13 = arith.constant 0 : index
    %c0_14 = arith.constant 0 : index
    %32 = vector.load %arg6[%c0_13, %c0_14] : memref<8x128xf32, #tpu.memory_space<vmem>>, vector<8x128xf32>
    tpu.vector_store %arg6[%c0_13, %c0_14], %31 {strides = array<i32>} : memref<8x128xf32, #tpu.memory_space<vmem>>, vector<8x128xf32>,
    return
  }
  func.func @transform_0(%arg0: i32) -> (i32, i32) {
    %c0_i32 = arith.constant 0 : i32
    %c0_i32_0 = arith.constant 0 : i32
    return %arg0, %c0_i32 : i32, i32
  }
  func.func @transform_1(%arg0: i32) -> (i32, i32) {
    %c0_i32 = arith.constant 0 : i32
    %c0_i32_0 = arith.constant 0 : i32
    %c0_i32_1 = arith.constant 0 : i32
    return %c0_i32, %c0_i32_0 : i32, i32
  }
  func.func @transform_2(%arg0: i32) -> (i32, i32) {
    %c0_i32 = arith.constant 0 : i32
    %c0_i32_0 = arith.constant 0 : i32
    %c0_i32_1 = arith.constant 0 : i32
    return %c0_i32, %c0_i32_0 : i32, i32
  }
  func.func @transform_3(%arg0: i32) -> (i32, i32) {
    %c0_i32 = arith.constant 0 : i32
    %c0_i32_0 = arith.constant 0 : i32
    %c0_i32_1 = arith.constant 0 : i32
    return %c0_i32, %c0_i32_0 : i32, i32
  }
  func.func @transform_4(%arg0: i32) -> (i32, i32) {
    %c0_i32 = arith.constant 0 : i32
    %c0_i32_0 = arith.constant 0 : i32
    return %arg0, %c0_i32 : i32, i32
  }
  func.func @transform_5(%arg0: i32) -> (i32, i32) {
    %c0_i32 = arith.constant 0 : i32
    %c0_i32_0 = arith.constant 0 : i32
    return %arg0, %c0_i32 : i32, i32
  }
}

module attributes {stable_mosaic.version = 11 : i64} {
  func.func @_final_kernel(%arg0: i32, %arg1: memref<128x128xbf16, #tpu.memory_space<vmem>>, %arg2: memref<1x128xf32, #tpu.memory_space<vmem>>, %arg3: memref<1x128xf32, #tpu.memory_space<vmem>>, %arg4: memref<128x128xbf16, #tpu.memory_space<vmem>>, %arg5: memref<1x128xf32, #tpu.memory_space<vmem>>, %arg6: memref<1x128xf32, #tpu.memory_space<vmem>>, %arg7: memref<128x128xf32, #tpu.memory_space<vmem>>) attributes {dimension_semantics = [#tpu.dimension_semantics<parallel>], iteration_bounds = array<i64: 1>, scalar_prefetch = 0 : i64, scratch_operands = 0 : i64, tpu.core_type = #tpu.core_type<tc>, window_params = [{transform_indices = @transform_0, window_bounds = array<i64: 128, 128>}, {pipeline_mode = #tpu.pipeline_mode<synchronous>, transform_indices = @transform_1, window_bounds = array<i64: 1, 128>}, {pipeline_mode = #tpu.pipeline_mode<synchronous>, transform_indices = @transform_2, window_bounds = array<i64: 1, 128>}, {transform_indices = @transform_3, window_bounds = array<i64: 128, 128>}, {pipeline_mode = #tpu.pipeline_mode<synchronous>, transform_indices = @transform_4, window_bounds = array<i64: 1, 128>}, {pipeline_mode = #tpu.pipeline_mode<synchronous>, transform_indices = @transform_5, window_bounds = array<i64: 1, 128>}, {transform_indices = @transform_6, window_bounds = array<i64: 128, 128>}]} {
    %c0 = arith.constant 0 : index
    %c0_0 = arith.constant 0 : index
    %0 = vector.load %arg1[%c0, %c0_0] : memref<128x128xbf16, #tpu.memory_space<vmem>>, vector<128x128xbf16>
    %1 = arith.extf %0 : vector<128x128xbf16> to vector<128x128xf32>
    %c0_1 = arith.constant 0 : index
    %c0_2 = arith.constant 0 : index
    %2 = vector.load %arg2[%c0_1, %c0_2] : memref<1x128xf32, #tpu.memory_space<vmem>>, vector<1x128xf32>
    %3 = vector.broadcast %2 : vector<1x128xf32> to vector<128x128xf32>
    %4 = arith.mulf %1, %3 : vector<128x128xf32>
    %c0_3 = arith.constant 0 : index
    %c0_4 = arith.constant 0 : index
    %5 = vector.load %arg3[%c0_3, %c0_4] : memref<1x128xf32, #tpu.memory_space<vmem>>, vector<1x128xf32>
    %6 = vector.broadcast %5 : vector<1x128xf32> to vector<128x128xf32>
    %7 = arith.addf %4, %6 : vector<128x128xf32>
    %c0_5 = arith.constant 0 : index
    %c0_6 = arith.constant 0 : index
    %8 = vector.load %arg4[%c0_5, %c0_6] : memref<128x128xbf16, #tpu.memory_space<vmem>>, vector<128x128xbf16>
    %9 = arith.extf %8 : vector<128x128xbf16> to vector<128x128xf32>
    %c0_7 = arith.constant 0 : index
    %c0_8 = arith.constant 0 : index
    %10 = vector.load %arg5[%c0_7, %c0_8] : memref<1x128xf32, #tpu.memory_space<vmem>>, vector<1x128xf32>
    %11 = vector.broadcast %10 : vector<1x128xf32> to vector<128x128xf32>
    %12 = arith.mulf %9, %11 : vector<128x128xf32>
    %c0_9 = arith.constant 0 : index
    %c0_10 = arith.constant 0 : index
    %13 = vector.load %arg6[%c0_9, %c0_10] : memref<1x128xf32, #tpu.memory_space<vmem>>, vector<1x128xf32>
    %14 = vector.broadcast %13 : vector<1x128xf32> to vector<128x128xf32>
    %15 = arith.addf %12, %14 : vector<128x128xf32>
    %16 = arith.addf %7, %15 : vector<128x128xf32>
    %cst = arith.constant 0.000000e+00 : f32
    %17 = vector.broadcast %cst : f32 to vector<128x128xf32>
    %18 = arith.maximumf %16, %17 : vector<128x128xf32>
    %c0_11 = arith.constant 0 : index
    %c0_12 = arith.constant 0 : index
    %19 = vector.load %arg7[%c0_11, %c0_12] : memref<128x128xf32, #tpu.memory_space<vmem>>, vector<128x128xf32>
    tpu.vector_store %arg7[%c0_11, %c0_12], %18 {strides = array<i32>} : memref<128x128xf32, #tpu.memory_space<vmem>>, vector<128x128xf32>,
    return
  }
  func.func @transform_0(%arg0: i32) -> (i32, i32) {
    %c0_i32 = arith.constant 0 : i32
    %c0_i32_0 = arith.constant 0 : i32
    return %arg0, %c0_i32 : i32, i32
  }
  func.func @transform_1(%arg0: i32) -> (i32, i32) {
    %c0_i32 = arith.constant 0 : i32
    %c0_i32_0 = arith.constant 0 : i32
    %c0_i32_1 = arith.constant 0 : i32
    return %c0_i32, %c0_i32_0 : i32, i32
  }
  func.func @transform_2(%arg0: i32) -> (i32, i32) {
    %c0_i32 = arith.constant 0 : i32
    %c0_i32_0 = arith.constant 0 : i32
    %c0_i32_1 = arith.constant 0 : i32
    return %c0_i32, %c0_i32_0 : i32, i32
  }
  func.func @transform_3(%arg0: i32) -> (i32, i32) {
    %c0_i32 = arith.constant 0 : i32
    %c0_i32_0 = arith.constant 0 : i32
    return %arg0, %c0_i32 : i32, i32
  }
  func.func @transform_4(%arg0: i32) -> (i32, i32) {
    %c0_i32 = arith.constant 0 : i32
    %c0_i32_0 = arith.constant 0 : i32
    %c0_i32_1 = arith.constant 0 : i32
    return %c0_i32, %c0_i32_0 : i32, i32
  }
  func.func @transform_5(%arg0: i32) -> (i32, i32) {
    %c0_i32 = arith.constant 0 : i32
    %c0_i32_0 = arith.constant 0 : i32
    %c0_i32_1 = arith.constant 0 : i32
    return %c0_i32, %c0_i32_0 : i32, i32
  }
  func.func @transform_6(%arg0: i32) -> (i32, i32) {
    %c0_i32 = arith.constant 0 : i32
    %c0_i32_0 = arith.constant 0 : i32
    return %arg0, %c0_i32 : i32, i32
  }
}

module attributes {stable_mosaic.version = 11 : i64} {
  func.func @_mm_stats_kernel(%arg0: i32, %arg1: memref<128x128xf32, #tpu.memory_space<vmem>>, %arg2: memref<128x128xbf16, #tpu.memory_space<vmem>>, %arg3: memref<128x128xbf16, #tpu.memory_space<vmem>>, %arg4: memref<8x128xf32, #tpu.memory_space<vmem>>) attributes {dimension_semantics = [#tpu.dimension_semantics<parallel>], iteration_bounds = array<i64: 1>, scalar_prefetch = 0 : i64, scratch_operands = 0 : i64, tpu.core_type = #tpu.core_type<tc>, window_params = [{transform_indices = @transform_0, window_bounds = array<i64: 128, 128>}, {pipeline_mode = #tpu.pipeline_mode<synchronous>, transform_indices = @transform_1, window_bounds = array<i64: 128, 128>}, {transform_indices = @transform_2, window_bounds = array<i64: 128, 128>}, {transform_indices = @transform_3, window_bounds = array<i64: 8, 128>}]} {
    %c0 = arith.constant 0 : index
    %c0_0 = arith.constant 0 : index
    %0 = vector.load %arg1[%c0, %c0_0] : memref<128x128xf32, #tpu.memory_space<vmem>>, vector<128x128xf32>
    %1 = arith.truncf %0 : vector<128x128xf32> to vector<128x128xbf16>
    %c0_1 = arith.constant 0 : index
    %c0_2 = arith.constant 0 : index
    %2 = vector.load %arg2[%c0_1, %c0_2] : memref<128x128xbf16, #tpu.memory_space<vmem>>, vector<128x128xbf16>
    %cst = arith.constant dense<0.000000e+00> : vector<128x128xf32>
    %3 = tpu.matmul %1, %2, %cst {dimension_numbers = #tpu.dot_dimension_numbers<[1], [0], [0], [1], [0, 0, 1, 1], [], []>} : vector<128x128xbf16>, vector<128x128xbf16>, vector<128x128xf32> -> vector<128x128xf32>
    %4 = arith.truncf %3 : vector<128x128xf32> to vector<128x128xbf16>
    %c0_3 = arith.constant 0 : index
    %c0_4 = arith.constant 0 : index
    %5 = vector.load %arg3[%c0_3, %c0_4] : memref<128x128xbf16, #tpu.memory_space<vmem>>, vector<128x128xbf16>
    tpu.vector_store %arg3[%c0_3, %c0_4], %4 {strides = array<i32>} : memref<128x128xbf16, #tpu.memory_space<vmem>>, vector<128x128xbf16>,
    %cst_5 = arith.constant dense<0.000000e+00> : vector<128xf32>
    %6 = vector.multi_reduction <add>, %3, %cst_5 [0] : vector<128x128xf32> to vector<128xf32>
    %7 = vector.shape_cast %6 : vector<128xf32> to vector<1x128xf32>
    %8 = arith.mulf %3, %3 : vector<128x128xf32>
    %cst_6 = arith.constant dense<0.000000e+00> : vector<128xf32>
    %9 = vector.multi_reduction <add>, %8, %cst_6 [0] : vector<128x128xf32> to vector<128xf32>
    %10 = vector.shape_cast %9 : vector<128xf32> to vector<1x128xf32>
    %11 = tpu.iota {dimensions = array<i32: 0>} : vector<8x128xi32>
    %c0_i32 = arith.constant 0 : i32
    %12 = vector.broadcast %c0_i32 : i32 to vector<8x128xi32>
    %13 = arith.cmpi eq, %11, %12 : vector<8x128xi32>
    %c1_i32 = arith.constant 1 : i32
    %14 = vector.broadcast %c1_i32 : i32 to vector<8x128xi32>
    %15 = arith.cmpi eq, %11, %14 : vector<8x128xi32>
    %cst_7 = arith.constant 0.000000e+00 : f32
    %16 = vector.shape_cast %10 : vector<1x128xf32> to vector<1x128xf32>
    %17 = vector.broadcast %16 : vector<1x128xf32> to vector<8x128xf32>
    %18 = vector.broadcast %cst_7 : f32 to vector<8x128xf32>
    %19 = arith.select %15, %17, %18 : vector<8x128xi1>, vector<8x128xf32>
    %20 = vector.shape_cast %7 : vector<1x128xf32> to vector<1x128xf32>
    %21 = vector.broadcast %20 : vector<1x128xf32> to vector<8x128xf32>
    %22 = arith.select %13, %21, %19 : vector<8x128xi1>, vector<8x128xf32>
    %c0_8 = arith.constant 0 : index
    %c0_9 = arith.constant 0 : index
    %23 = vector.load %arg4[%c0_8, %c0_9] : memref<8x128xf32, #tpu.memory_space<vmem>>, vector<8x128xf32>
    tpu.vector_store %arg4[%c0_8, %c0_9], %22 {strides = array<i32>} : memref<8x128xf32, #tpu.memory_space<vmem>>, vector<8x128xf32>,
    return
  }
  func.func @transform_0(%arg0: i32) -> (i32, i32) {
    %c0_i32 = arith.constant 0 : i32
    %c0_i32_0 = arith.constant 0 : i32
    return %arg0, %c0_i32 : i32, i32
  }
  func.func @transform_1(%arg0: i32) -> (i32, i32) {
    %c0_i32 = arith.constant 0 : i32
    %c0_i32_0 = arith.constant 0 : i32
    %c0_i32_1 = arith.constant 0 : i32
    return %c0_i32, %c0_i32_0 : i32, i32
  }
  func.func @transform_2(%arg0: i32) -> (i32, i32) {
    %c0_i32 = arith.constant 0 : i32
    %c0_i32_0 = arith.constant 0 : i32
    return %arg0, %c0_i32 : i32, i32
  }
  func.func @transform_3(%arg0: i32) -> (i32, i32) {
    %c0_i32 = arith.constant 0 : i32
    %c0_i32_0 = arith.constant 0 : i32
    return %arg0, %c0_i32 : i32, i32
  }
}

</mosaic_0001>

<bundles_post_ra>
// kernel: tpu_custom_call.1
= control target key start
LH: loop header
LB: loop body
LE: loop exit
PB: predicated region body
PF: predicated region fallthrough
CT: control target
= control target key end

     0   :  { %6 = vsyncpa [#allocation3], 0  ;;  %s287_s0 = inlined_call_operand.hbm [shape: f32[8,128], index: 0, kind: input, shape index: {}]   ;;  %s288_s1 = inlined_call_operand.hbm [shape: f32[8,128], index: 1, kind: output, shape index: {}]  }
   0x1   :  { %7 = vsyncpa [#allocation4], 0  ;;  %s270_s6 = smov 0  }
   0x2 LB: > { %s149_s7 = sadd.s32 4294967295, %s256_s6   ;;  %p150_p0 = scmp.ge.s32.totalorder %s256_s6, 1  ;;  %s256_s6 = sphi %s270_s6, %s13_s6  }
   0x3   : > { %p60_p1 = scmp.lt.s32.totalorder %s256_s6, 3  ;;  %s72_s10 = sshll.u32 %s287_s0, 4  ;;  %s73_s10 = int_to_ptr.hbm [resolvable:$true] %s72_s10 }
   0x4   : > { %p170_p3 = scmp.eq.s32.totalorder %s149_s7, 0  ;;  %s258_s11 = smov [#allocation2]  }
   0x5   : > { %p61_p2 = pnand %p150_p0, %p60_p1  ;;  %s74_s12 = sshll.u32 %s258_s11, 4  ;;  %s75_s12 = int_to_ptr.vmem [resolvable:$true] %s74_s12 }
   0x7   : > { %p166_p4 = pneg %p61_p2  ;;  %87 = sbr.rel (%p61_p2) target bundleno = 20 (0x14), region = 24 }
   0x9   : > { %p167_p5 = pnand %p170_p3, %p166_p4 }
   0xb   : > { %169 = dma.hbm_to_vmem [thread:$0]  (!%p167_p5), %s73_s10, 128, %s75_s12, [#allocation3]  }
   0xc   : > { %247 = dma.done.wait (%p170_p3), [#allocation3], 128  }
   0xd   : > { %249 = vsyncadd (%p170_p3), [#allocation3], 4294967168  ;;  %s259_s13 = smov [#allocation5]   ;;  %s109_s17 = sshll.u32 %s288_s1, 4  ;;  %v98_v0 = vld [vmem:[#allocation2] sm:$0xff]  ;;  %s110_s17 = int_to_ptr.hbm [resolvable:$true] %s109_s17 }
   0xe   : > { %s107_s14 = sshll.u32 %s259_s13, 4  ;;  %p172_p6 = scmp.eq.s32.totalorder %s149_s7, 1  ;;  %v99_v1 = vadd.f32 1.0, %v98_v0  ;;  %s108_s14 = int_to_ptr.vmem [resolvable:$true] %s107_s14 }
  0x10   : > { %100 = vst [vmem:[#allocation5] sm:$0xff] %v99_v1 }
  0x11   : > { %163 = dma.vmem_to_hbm [thread:$0]  (%p172_p6), %s108_s14, 128, %s110_s17, [#allocation4]  }
  0x12   : > { %251 = dma.done.wait (%p172_p6), [#allocation4], 128  }
  0x13   : > { %253 = vsyncadd (%p172_p6), [#allocation4], 4294967168 }
  0x14 PF: > { %s13_s6 = sadd.s32 1, %s256_s6  }
  0x15   : > { %p10_p7 = scmp.ge.s32.totalorder %s13_s6, 4  }
  0x17   :  { %12 = sbr.rel (!%p10_p7) target bundleno = 2 (0x2), region = 53 }
  0x1c   :  { %123 = vsyncpa [#allocation3], 1 }
  0x1d   :  { %125 = vsyncpa [#allocation3 + $0x1], 1 }
  0x1e   :  { %126 = vsyncpa [#allocation4], 1 }
  0x1f   :  { %128 = vsyncpa [#allocation4 + $0x1], 1 }

// kernel: bottleneck_forward.5
= control target key start
LH: loop header
LB: loop body
LE: loop exit
PB: predicated region body
PF: predicated region fallthrough
CT: control target
= control target key end

     0   :  { %s1565_s1 = inlined_call_operand.vmem [shape: bf16[128,128], index: 1, kind: input, shape index: {}]   ;;  %s1566_s0 = inlined_call_operand.vmem [shape: f32[512,128], index: 0, kind: input, shape index: {}]   ;;  %s1567_s2 = inlined_call_operand.vmem [shape: bf16[512,128], index: 2, kind: output, shape index: {0}]   ;;  %s1568_s3 = inlined_call_operand.vmem [shape: f32[8,128], index: 3, kind: output, shape index: {1}]  }
   0x1   :  { %v726_v0 = vld [vmem:[%s1565_s1 + $0x38] sm:$0xff]  ;;  %v725_v1 = vld [vmem:[%s1565_s1 + $0x30] sm:$0xff]  ;;  %v724_v2 = vld [vmem:[%s1565_s1 + $0x28] sm:$0xff] }
   0x2   :  { %173 = vmatpush.bf16.msra.mxu0 %v726_v0  ;;  %918 = vmatpush.bf16.msra.mxu1 %v726_v0  ;;  %v723_v3 = vld [vmem:[%s1565_s1 + $0x20] sm:$0xff]  ;;  %v722_v4 = vld [vmem:[%s1565_s1 + $0x18] sm:$0xff]  ;;  %v721_v5 = vld [vmem:[%s1565_s1 + $0x10] sm:$0xff] }
   0x3   :  { %919 = vmatpush.bf16.msra.mxu2 %v726_v0  ;;  %920 = vmatpush.bf16.msra.mxu3 %v726_v0  ;;  %v720_v6 = vld [vmem:[%s1565_s1 + $0x8] sm:$0xff]  ;;  %v719_v7 = vld [vmem:[%s1565_s1] sm:$0xff]  ;;  %v15_v14 = vld [vmem:[%s1566_s0 + $0x10] sm:$0xff] }
   0x4   :  { %v13_v8 = vld [vmem:[%s1566_s0] sm:$0xff]  ;;  %v14_v9 = vld [vmem:[%s1566_s0 + $0x8] sm:$0xff]  ;;  %v16_v15 = vld [vmem:[%s1566_s0 + $0x18] sm:$0xff] }
   0x5   :  { %v29_v10 = vld [vmem:[%s1566_s0 + $0x80] sm:$0xff]  ;;  %v30_v11 = vld [vmem:[%s1566_s0 + $0x88] sm:$0xff]  ;;  %v77_v12 = vpack.c.bf16 %v14_v9, %v13_v8  ;;  %v31_v16 = vld [vmem:[%s1566_s0 + $0x90] sm:$0xff]  ;;  %v78_v18 = vpack.c.bf16 %v16_v15, %v15_v14 }
   0x6   :  { %174 = vmatpush.bf16.msra.mxu0 %v725_v1  ;;  %921 = vmatpush.bf16.msra.mxu1 %v725_v1  ;;  %v85_v13 = vpack.c.bf16 %v30_v11, %v29_v10  ;;  %v32_v17 = vld [vmem:[%s1566_s0 + $0x98] sm:$0xff]  ;;  %v45_v20 = vld [vmem:[%s1566_s0 + $0x100] sm:$0xff]  ;;  %v46_v21 = vld [vmem:[%s1566_s0 + $0x108] sm:$0xff] }
   0x7   :  { %922 = vmatpush.bf16.msra.mxu2 %v725_v1  ;;  %923 = vmatpush.bf16.msra.mxu3 %v725_v1  ;;  %v86_v19 = vpack.c.bf16 %v32_v17, %v31_v16  ;;  %v93_v22 = vpack.c.bf16 %v46_v21, %v45_v20  ;;  %v17_v23 = vld [vmem:[%s1566_s0 + $0x20] sm:$0xff]  ;;  %v18_v24 = vld [vmem:[%s1566_s0 + $0x28] sm:$0xff]  ;;  %v47_v29 = vld [vmem:[%s1566_s0 + $0x110] sm:$0xff] }
   0x8   :  { %v33_v25 = vld [vmem:[%s1566_s0 + $0xa0] sm:$0xff]  ;;  %v34_v26 = vld [vmem:[%s1566_s0 + $0xa8] sm:$0xff]  ;;  %v79_v27 = vpack.c.bf16 %v18_v24, %v17_v23  ;;  %v48_v30 = vld [vmem:[%s1566_s0 + $0x118] sm:$0xff] }
   0x9   :  { %v87_v28 = vpack.c.bf16 %v34_v26, %v33_v25  ;;  %v94_v31 = vpack.c.bf16 %v48_v30, %v47_v29  ;;  %v19_v32 = vld [vmem:[%s1566_s0 + $0x30] sm:$0xff]  ;;  %v20_v33 = vld [vmem:[%s1566_s0 + $0x38] sm:$0xff]  ;;  %v49_v38 = vld [vmem:[%s1566_s0 + $0x120] sm:$0xff] }
   0xa   :  { %175 = vmatpush.bf16.msra.mxu0 %v724_v2  ;;  %924 = vmatpush.bf16.msra.mxu1 %v724_v2  ;;  %v35_v34 = vld [vmem:[%s1566_s0 + $0xb0] sm:$0xff]  ;;  %v36_v35 = vld [vmem:[%s1566_s0 + $0xb8] sm:$0xff]  ;;  %v80_v36 = vpack.c.bf16 %v20_v33, %v19_v32  ;;  %v50_v39 = vld [vmem:[%s1566_s0 + $0x128] sm:$0xff] }
   0xb   :  { %925 = vmatpush.bf16.msra.mxu2 %v724_v2  ;;  %926 = vmatpush.bf16.msra.mxu3 %v724_v2  ;;  %v88_v37 = vpack.c.bf16 %v36_v35, %v35_v34  ;;  %v61_v40 = vld [vmem:[%s1566_s0 + $0x180] sm:$0xff]  ;;  %v95_v41 = vpack.c.bf16 %v50_v39, %v49_v38  ;;  %v62_v42 = vld [vmem:[%s1566_s0 + $0x188] sm:$0xff]  ;;  %v51_v50 = vld [vmem:[%s1566_s0 + $0x130] sm:$0xff] }
   0xc   :  { %v101_v43 = vpack.c.bf16 %v62_v42, %v61_v40  ;;  %v21_v44 = vld [vmem:[%s1566_s0 + $0x40] sm:$0xff]  ;;  %v22_v45 = vld [vmem:[%s1566_s0 + $0x48] sm:$0xff]  ;;  %v52_v51 = vld [vmem:[%s1566_s0 + $0x138] sm:$0xff] }
   0xd   :  { %v37_v46 = vld [vmem:[%s1566_s0 + $0xc0] sm:$0xff]  ;;  %v38_v47 = vld [vmem:[%s1566_s0 + $0xc8] sm:$0xff]  ;;  %v81_v48 = vpack.c.bf16 %v22_v45, %v21_v44  ;;  %v63_v52 = vld [vmem:[%s1566_s0 + $0x190] sm:$0xff]  ;;  %v96_v53 = vpack.c.bf16 %v52_v51, %v51_v50 }
   0xe   :  { %176 = vmatpush.bf16.msra.mxu0 %v723_v3  ;;  %927 = vmatpush.bf16.msra.mxu1 %v723_v3  ;;  %v89_v49 = vpack.c.bf16 %v38_v47, %v37_v46  ;;  %v64_v54 = vld [vmem:[%s1566_s0 + $0x198] sm:$0xff]  ;;  %v23_v56 = vld [vmem:[%s1566_s0 + $0x50] sm:$0xff]  ;;  %v53_v62 = vld [vmem:[%s1566_s0 + $0x140] sm:$0xff] }
   0xf   :  { %928 = vmatpush.bf16.msra.mxu2 %v723_v3  ;;  %929 = vmatpush.bf16.msra.mxu3 %v723_v3  ;;  %v102_v55 = vpack.c.bf16 %v64_v54, %v63_v52  ;;  %v24_v57 = vld [vmem:[%s1566_s0 + $0x58] sm:$0xff]  ;;  %v39_v58 = vld [vmem:[%s1566_s0 + $0xd0] sm:$0xff]  ;;  %v54_v63 = vld [vmem:[%s1566_s0 + $0x148] sm:$0xff] }
  0x10   :  { %v40_v59 = vld [vmem:[%s1566_s0 + $0xd8] sm:$0xff]  ;;  %v82_v60 = vpack.c.bf16 %v24_v57, %v23_v56  ;;  %v65_v0 = vld [vmem:[%s1566_s0 + $0x1a0] sm:$0xff]  ;;  %v97_v1 = vpack.c.bf16 %v54_v63, %v53_v62  ;;  %v66_v2 = vld [vmem:[%s1566_s0 + $0x1a8] sm:$0xff] }
  0x11   :  { %v90_v61 = vpack.c.bf16 %v40_v59, %v39_v58  ;;  %v103_v3 = vpack.c.bf16 %v66_v2, %v65_v0  ;;  %v55_v10 = vld [vmem:[%s1566_s0 + $0x150] sm:$0xff]  ;;  %v56_v11 = vld [vmem:[%s1566_s0 + $0x158] sm:$0xff]  ;;  %v58_v23 = vld [vmem:[%s1566_s0 + $0x168] sm:$0xff] }
  0x12   :  { %177 = vmatpush.bf16.msra.mxu0 %v722_v4  ;;  %930 = vmatpush.bf16.msra.mxu1 %v722_v4  ;;  %v68_v14 = vld [vmem:[%s1566_s0 + $0x1b8] sm:$0xff]  ;;  %v27_v16 = vld [vmem:[%s1566_s0 + $0x70] sm:$0xff]  ;;  %v69_v24 = vld [vmem:[%s1566_s0 + $0x1c0] sm:$0xff] }
  0x13   :  { %931 = vmatpush.bf16.msra.mxu2 %v722_v4  ;;  %932 = vmatpush.bf16.msra.mxu3 %v722_v4  ;;  %v25_v4 = vld [vmem:[%s1566_s0 + $0x60] sm:$0xff]  ;;  %v28_v17 = vld [vmem:[%s1566_s0 + $0x78] sm:$0xff]  ;;  %v70_v26 = vld [vmem:[%s1566_s0 + $0x1c8] sm:$0xff] }
  0x14   :  { %v84_v20 = vpack.c.bf16 %v28_v17, %v27_v16  ;;  %v59_v30 = vld [vmem:[%s1566_s0 + $0x170] sm:$0xff]  ;;  %v72_v34 = vld [vmem:[%s1566_s0 + $0x1d8] sm:$0xff] }
  0x15   :  { %v71_v32 = vld [vmem:[%s1566_s0 + $0x1d0] sm:$0xff] }
  0x16   :  { %178 = vmatpush.bf16.msra.mxu0 %v721_v5  ;;  %933 = vmatpush.bf16.msra.mxu1 %v721_v5  ;;  %v106_v35 = vpack.c.bf16 %v72_v34, %v71_v32  ;;  %v75_v2 = vld [vmem:[%s1566_s0 + $0x1f0] sm:$0xff] }
  0x17   :  { %934 = vmatpush.bf16.msra.mxu2 %v721_v5  ;;  %935 = vmatpush.bf16.msra.mxu3 %v721_v5  ;;  %v26_v5 = vld [vmem:[%s1566_s0 + $0x68] sm:$0xff] }
  0x18   :  { %v83_v8 = vpack.c.bf16 %v26_v5, %v25_v4 }
  0x1a   :  { %179 = vmatpush.bf16.msra.mxu0 %v720_v6  ;;  %936 = vmatpush.bf16.msra.mxu1 %v720_v6 }
  0x1b   :  { %937 = vmatpush.bf16.msra.mxu2 %v720_v6  ;;  %938 = vmatpush.bf16.msra.mxu3 %v720_v6  ;;  %v41_v6 = vld [vmem:[%s1566_s0 + $0xe0] sm:$0xff] }
  0x1e   :  { %180 = vmatpush.bf16.msra.mxu0 %v719_v7  ;;  %939 = vmatpush.bf16.msra.mxu1 %v719_v7 }
  0x1f   :  { %940 = vmatpush.bf16.msra.mxu2 %v719_v7  ;;  %941 = vmatpush.bf16.msra.mxu3 %v719_v7  ;;  %v42_v7 = vld [vmem:[%s1566_s0 + $0xe8] sm:$0xff] }
  0x20   :  { %v91_v9 = vpack.c.bf16 %v42_v7, %v41_v6 }
  0x21   :  { %181 = vmatmul.bf16.vlgmr.msra.gmra.mxu0 %v77_v12  ;;  %221 = vmatmul.bf16.vlgmr.msra.gmra.mxu1 %v85_v13  ;;  %v67_v12 = vld [vmem:[%s1566_s0 + $0x1b0] sm:$0xff]  ;;  %v98_v13 = vpack.c.bf16 %v56_v11, %v55_v10 }
  0x22   :  { %261 = vmatmul.bf16.vlgmr.msra.gmra.mxu2 %v93_v22  ;;  %301 = vmatmul.bf16.vlgmr.msra.gmra.mxu3 %v101_v43  ;;  %v104_v15 = vpack.c.bf16 %v68_v14, %v67_v12  ;;  %v57_v22 = vld [vmem:[%s1566_s0 + $0x160] sm:$0xff] }
  0x23   :  { %v99_v25 = vpack.c.bf16 %v58_v23, %v57_v22 }
  0x31   :  { %186 = vmatmul.bf16.gmra.mxu0 %v78_v18  ;;  %226 = vmatmul.bf16.gmra.mxu1 %v86_v19  ;;  %v43_v18 = vld [vmem:[%s1566_s0 + $0xf0] sm:$0xff]  ;;  %v44_v19 = vld [vmem:[%s1566_s0 + $0xf8] sm:$0xff] }
  0x32   :  { %266 = vmatmul.bf16.gmra.mxu2 %v94_v31  ;;  %306 = vmatmul.bf16.gmra.mxu3 %v102_v55  ;;  %v92_v21 = vpack.c.bf16 %v44_v19, %v43_v18  ;;  %v60_v31 = vld [vmem:[%s1566_s0 + $0x178] sm:$0xff] }
  0x33   :  { %v100_v33 = vpack.c.bf16 %v60_v31, %v59_v30 }
  0x41   :  { %191 = vmatmul.bf16.gmra.mxu0 %v79_v27  ;;  %231 = vmatmul.bf16.gmra.mxu1 %v87_v28  ;;  %v105_v27 = vpack.c.bf16 %v70_v26, %v69_v24 }
  0x42   :  { %271 = vmatmul.bf16.gmra.mxu2 %v95_v41  ;;  %311 = vmatmul.bf16.gmra.mxu3 %v103_v3  ;;  %v76_v3 = vld [vmem:[%s1566_s0 + $0x1f8] sm:$0xff] }
  0x43   :  { %v108_v5 = vpack.c.bf16 %v76_v3, %v75_v2 }
  0x51   :  { %196 = vmatmul.bf16.gmra.mxu0 %v80_v36  ;;  %236 = vmatmul.bf16.gmra.mxu1 %v88_v37 }
  0x52   :  { %276 = vmatmul.bf16.gmra.mxu2 %v96_v53  ;;  %316 = vmatmul.bf16.gmra.mxu3 %v104_v15 }
  0x61   :  { %201 = vmatmul.bf16.gmra.mxu0 %v81_v48  ;;  %241 = vmatmul.bf16.gmra.mxu1 %v89_v49  ;;  %v73_v48 = vld [vmem:[%s1566_s0 + $0x1e0] sm:$0xff]  ;;  %v74_v49 = vld [vmem:[%s1566_s0 + $0x1e8] sm:$0xff] }
  0x62   :  { %281 = vmatmul.bf16.gmra.mxu2 %v97_v1  ;;  %321 = vmatmul.bf16.gmra.mxu3 %v105_v27  ;;  %v107_v51 = vpack.c.bf16 %v74_v49, %v73_v48 }
  0x71   :  { %206 = vmatmul.bf16.gmra.mxu0 %v82_v60  ;;  %246 = vmatmul.bf16.gmra.mxu1 %v90_v61 }
  0x72   :  { %286 = vmatmul.bf16.gmra.mxu2 %v98_v13  ;;  %326 = vmatmul.bf16.gmra.mxu3 %v106_v35 }
  0x81   :  { %211 = vmatmul.bf16.gmra.mxu0 %v83_v8  ;;  %251 = vmatmul.bf16.gmra.mxu1 %v91_v9 }
  0x82   :  { %291 = vmatmul.bf16.gmra.mxu2 %v99_v25  ;;  %331 = vmatmul.bf16.gmra.mxu3 %v107_v51 }
  0x91   :  { %216 = vmatmul.bf16.gmra.mxu0 %v84_v20  ;;  %256 = vmatmul.bf16.gmra.mxu1 %v92_v21 }
  0x92   :  { %296 = vmatmul.bf16.gmra.mxu2 %v100_v33  ;;  %336 = vmatmul.bf16.gmra.mxu3 %v108_v5 }
  0x9e   :  { %v182_v28 = vpop.f32.mrf.mxu0  ;;  %v1154_v29 = vpop.f32.mrf.mxu1 }
  0x9f   :  { %v539_v36 = vmul.f32 %v182_v28, %v182_v28 }
  0xa5   :  { %v1190_v58 = vpop.f32.mrf.mxu2  ;;  %v1244_v20 = vpop.f32.mrf.mxu3 }
  0xa6   :  { %v184_v37 = vpop.f32.mrf.mxu0  ;;  %v1168_v38 = vpop.f32.mrf.mxu1 }
  0xa7   :  { %v730_v39 = vpack.c.bf16 %v184_v37, %v182_v28  ;;  %v470_v40 = vadd.f32 %v184_v37, %v182_v28  ;;  %v540_v41 = vmul.f32 %v184_v37, %v184_v37  ;;  %v770_v42 = vpack.c.bf16 %v1168_v38, %v1154_v29 }
  0xa9   :  { %731 = vst [vmem:[%s1567_s2] sm:$0xff] %v730_v39   ;;  %v603_v43 = vadd.f32 %v540_v41, %v539_v36 }
  0xaa   :  { %894 = vst [vmem:[%s1567_s2 + $0x40] sm:$0xff] %v770_v42  }
  0xad   :  { %v1202_v0 = vpop.f32.mrf.mxu2  ;;  %v1256_v24 = vpop.f32.mrf.mxu3 }
  0xae   :  { %v187_v44 = vpop.f32.mrf.mxu0  ;;  %v1178_v45 = vpop.f32.mrf.mxu1  ;;  %v810_v1 = vpack.c.bf16 %v1202_v0, %v1190_v58  ;;  %v850_v26 = vpack.c.bf16 %v1256_v24, %v1244_v20 }
  0xaf   :  { %v471_v46 = vadd.f32 %v470_v40, %v187_v44  ;;  %v541_v47 = vmul.f32 %v187_v44, %v187_v44 }
  0xb0   :  { %902 = vst [vmem:[%s1567_s2 + $0x80] sm:$0xff] %v810_v1  }
  0xb1   :  { %v604_v50 = vadd.f32 %v603_v43, %v541_v47  ;;  %910 = vst [vmem:[%s1567_s2 + $0xc0] sm:$0xff] %v850_v26  }
  0xb5   :  { %v1221_v10 = vpop.f32.mrf.mxu2  ;;  %v1274_v33 = vpop.f32.mrf.mxu3 }
  0xb6   :  { %v189_v52 = vpop.f32.mrf.mxu0  ;;  %v1186_v53 = vpop.f32.mrf.mxu1 }
  0xb7   :  { %v735_v54 = vpack.c.bf16 %v189_v52, %v187_v44  ;;  %v472_v55 = vadd.f32 %v471_v46, %v189_v52  ;;  %v542_v56 = vmul.f32 %v189_v52, %v189_v52  ;;  %v775_v57 = vpack.c.bf16 %v1186_v53, %v1178_v45 }
  0xb9   :  { %887 = vst [vmem:[%s1567_s2 + $0x8] sm:$0xff] %v735_v54   ;;  %v605_v59 = vadd.f32 %v604_v50, %v542_v56 }
  0xba   :  { %895 = vst [vmem:[%s1567_s2 + $0x48] sm:$0xff] %v775_v57  }
  0xbd   :  { %v1231_v13 = vpop.f32.mrf.mxu2  ;;  %v1286_v37 = vpop.f32.mrf.mxu3 }
  0xbe   :  { %v192_v60 = vpop.f32.mrf.mxu0  ;;  %v1198_v61 = vpop.f32.mrf.mxu1  ;;  %v815_v14 = vpack.c.bf16 %v1231_v13, %v1221_v10  ;;  %v855_v40 = vpack.c.bf16 %v1286_v37, %v1274_v33 }
  0xbf   :  { %v1200_v62 = vadd.f32 %v472_v55, %v192_v60  ;;  %v543_v63 = vmul.f32 %v192_v60, %v192_v60 }
  0xc0   :  { %903 = vst [vmem:[%s1567_s2 + $0x88] sm:$0xff] %v815_v14  }
  0xc1   :  { %v1212_v4 = vadd.f32 %v605_v59, %v543_v63  ;;  %911 = vst [vmem:[%s1567_s2 + $0xc8] sm:$0xff] %v855_v40  }
  0xc5   :  { %v1242_v19 = vpop.f32.mrf.mxu2  ;;  %v1304_v47 = vpop.f32.mrf.mxu3 }
  0xc6   :  { %v194_v6 = vpop.f32.mrf.mxu0  ;;  %v1217_v7 = vpop.f32.mrf.mxu1 }
  0xc7   :  { %v740_v8 = vpack.c.bf16 %v194_v6, %v192_v60  ;;  %v780_v9 = vpack.c.bf16 %v1217_v7, %v1198_v61  ;;  %v544_v52 = vmul.f32 %v194_v6, %v194_v6  ;;  %v474_v57 = vadd.f32 %v1200_v62, %v194_v6 }
  0xc9   :  { %888 = vst [vmem:[%s1567_s2 + $0x10] sm:$0xff] %v740_v8   ;;  %v607_v59 = vadd.f32 %v1212_v4, %v544_v52 }
  0xca   :  { %896 = vst [vmem:[%s1567_s2 + $0x50] sm:$0xff] %v780_v9  }
  0xcd   :  { %v1254_v23 = vpop.f32.mrf.mxu2  ;;  %v1316_v51 = vpop.f32.mrf.mxu3 }
  0xce   :  { %v197_v11 = vpop.f32.mrf.mxu0  ;;  %v1229_v12 = vpop.f32.mrf.mxu1  ;;  %v820_v25 = vpack.c.bf16 %v1254_v23, %v1242_v19  ;;  %v860_v55 = vpack.c.bf16 %v1316_v51, %v1304_v47 }
  0xcf   :  { %v545_v56 = vmul.f32 %v197_v11, %v197_v11  ;;  %v475_v63 = vadd.f32 %v474_v57, %v197_v11 }
  0xd0   :  { %904 = vst [vmem:[%s1567_s2 + $0x90] sm:$0xff] %v820_v25  }
  0xd1   :  { %912 = vst [vmem:[%s1567_s2 + $0xd0] sm:$0xff] %v860_v55   ;;  %v608_v1 = vadd.f32 %v607_v59, %v545_v56 }
  0xd5   :  { %v1272_v32 = vpop.f32.mrf.mxu2  ;;  %v1336_v62 = vpop.f32.mrf.mxu3 }
  0xd6   :  { %v199_v15 = vpop.f32.mrf.mxu0  ;;  %v1238_v16 = vpop.f32.mrf.mxu1 }
  0xd7   :  { %v745_v17 = vpack.c.bf16 %v199_v15, %v197_v11  ;;  %v785_v18 = vpack.c.bf16 %v1238_v16, %v1229_v12  ;;  %v546_v60 = vmul.f32 %v199_v15, %v199_v15  ;;  %v476_v8 = vadd.f32 %v475_v63, %v199_v15 }
  0xd9   :  { %889 = vst [vmem:[%s1567_s2 + $0x18] sm:$0xff] %v745_v17   ;;  %v609_v6 = vadd.f32 %v608_v1, %v546_v60 }
  0xda   :  { %897 = vst [vmem:[%s1567_s2 + $0x58] sm:$0xff] %v785_v18  }
  0xdd   :  { %v1284_v36 = vpop.f32.mrf.mxu2 }
  0xde   :  { %v202_v21 = vpop.f32.mrf.mxu0  ;;  %v1252_v22 = vpop.f32.mrf.mxu1  ;;  %v825_v39 = vpack.c.bf16 %v1284_v36, %v1272_v32 }
  0xdf   :  { %v547_v2 = vmul.f32 %v202_v21, %v202_v21  ;;  %v477_v25 = vadd.f32 %v476_v8, %v202_v21 }
  0xe0   :  { %905 = vst [vmem:[%s1567_s2 + $0x98] sm:$0xff] %v825_v39  }
  0xe1   :  { %v610_v4 = vadd.f32 %v609_v6, %v547_v2 }
  0xe5   :  { %v1302_v46 = vpop.f32.mrf.mxu2 }
  0xe6   :  { %v204_v27 = vpop.f32.mrf.mxu0  ;;  %v1268_v28 = vpop.f32.mrf.mxu1 }
  0xe7   :  { %v750_v30 = vpack.c.bf16 %v204_v27, %v202_v21  ;;  %v790_v31 = vpack.c.bf16 %v1268_v28, %v1252_v22  ;;  %v548_v18 = vmul.f32 %v204_v27, %v204_v27  ;;  %v478_v15 = vadd.f32 %v477_v25, %v204_v27 }
  0xe9   :  { %890 = vst [vmem:[%s1567_s2 + $0x20] sm:$0xff] %v750_v30   ;;  %v611_v26 = vadd.f32 %v610_v4, %v548_v18 }
  0xea   :  { %898 = vst [vmem:[%s1567_s2 + $0x60] sm:$0xff] %v790_v31  }
  0xed   :  { %v1314_v50 = vpop.f32.mrf.mxu2 }
  0xee   :  { %v207_v34 = vpop.f32.mrf.mxu0  ;;  %v1282_v35 = vpop.f32.mrf.mxu1  ;;  %v830_v54 = vpack.c.bf16 %v1314_v50, %v1302_v46 }
  0xef   :  { %v549_v11 = vmul.f32 %v207_v34, %v207_v34  ;;  %v479_v31 = vadd.f32 %v478_v15, %v207_v34 }
  0xf0   :  { %906 = vst [vmem:[%s1567_s2 + $0xa0] sm:$0xff] %v830_v54   ;;  %v1348_v54 = vpop.f32.mrf.mxu3 }
  0xf1   :  { %v612_v39 = vadd.f32 %v611_v26, %v549_v11  ;;  %v865_v27 = vpack.c.bf16 %v1348_v54, %v1336_v62  ;;  %v556_v26 = vmul.f32 %v1168_v38, %v1168_v38 }
  0xf3   :  { %913 = vst [vmem:[%s1567_s2 + $0xd8] sm:$0xff] %v865_v27  }
  0xf5   :  { %v1334_v17 = vpop.f32.mrf.mxu2 }
  0xf6   :  { %v209_v41 = vpop.f32.mrf.mxu0  ;;  %v1298_v42 = vpop.f32.mrf.mxu1 }
  0xf7   :  { %v755_v43 = vpack.c.bf16 %v209_v41, %v207_v34  ;;  %v795_v44 = vpack.c.bf16 %v1298_v42, %v1282_v35  ;;  %v550_v30 = vmul.f32 %v209_v41, %v209_v41  ;;  %v480_v21 = vadd.f32 %v479_v31, %v209_v41 }
  0xf8   :  { %v1366_v4 = vpop.f32.mrf.mxu3 }
  0xf9   :  { %891 = vst [vmem:[%s1567_s2 + $0x28] sm:$0xff] %v755_v43   ;;  %v613_v55 = vadd.f32 %v612_v39, %v550_v30  ;;  %v557_v39 = vmul.f32 %v1178_v45, %v1178_v45 }
  0xfa   :  { %899 = vst [vmem:[%s1567_s2 + $0x68] sm:$0xff] %v795_v44  }
  0xfd   :  { %v1346_v52 = vpop.f32.mrf.mxu2 }
  0xfe   :  { %v212_v48 = vpop.f32.mrf.mxu0  ;;  %v1312_v49 = vpop.f32.mrf.mxu1  ;;  %v835_v57 = vpack.c.bf16 %v1346_v52, %v1334_v17 }
  0xff   :  { %v551_v40 = vmul.f32 %v212_v48, %v212_v48  ;;  %v481_v59 = vadd.f32 %v480_v21, %v212_v48 }
 0x100   :  { %907 = vst [vmem:[%s1567_s2 + $0xa8] sm:$0xff] %v835_v57   ;;  %v1388_v57 = vpop.f32.mrf.mxu3 }
 0x101   :  { %v614_v34 = vadd.f32 %v613_v55, %v551_v40  ;;  %v870_v27 = vpack.c.bf16 %v1388_v57, %v1366_v4 }
 0x103   :  { %914 = vst [vmem:[%s1567_s2 + $0xe0] sm:$0xff] %v870_v27  }
 0x105   :  { %v1364_v25 = vpop.f32.mrf.mxu2 }
 0x106   :  { %v214_v3 = vpop.f32.mrf.mxu0  ;;  %v1330_v5 = vpop.f32.mrf.mxu1 }
 0x107   :  { %v760_v9 = vpack.c.bf16 %v214_v3, %v212_v48  ;;  %v800_v14 = vpack.c.bf16 %v1330_v5, %v1312_v49  ;;  %v552_v56 = vmul.f32 %v214_v3, %v214_v3  ;;  %v482_v41 = vadd.f32 %v481_v59, %v214_v3 }
 0x108   :  { %v555_v3 = vmul.f32 %v1154_v29, %v1154_v29  ;;  %v568_v27 = vmul.f32 %v1330_v5, %v1330_v5 }
 0x109   :  { %892 = vst [vmem:[%s1567_s2 + $0x30] sm:$0xff] %v760_v9   ;;  %v615_v63 = vadd.f32 %v614_v34, %v552_v56 }
 0x10a   :  { %900 = vst [vmem:[%s1567_s2 + $0x70] sm:$0xff] %v800_v14  }
 0x10d   :  { %v1386_v56 = vpop.f32.mrf.mxu2 }
 0x10e   :  { %v217_v43 = vpop.f32.mrf.mxu0  ;;  %v1344_v44 = vpop.f32.mrf.mxu1 }
 0x10f   :  { %v553_v60 = vmul.f32 %v217_v43, %v217_v43  ;;  %v483_v1 = vadd.f32 %v482_v41, %v217_v43 }
 0x111   :  { %v616_v2 = vadd.f32 %v615_v63, %v553_v60  ;;  %v561_v63 = vmul.f32 %v1229_v12, %v1229_v12 }
 0x116   :  { %v219_v8 = vpop.f32.mrf.mxu0  ;;  %v1360_v9 = vpop.f32.mrf.mxu1 }
 0x117   :  { %v765_v14 = vpack.c.bf16 %v219_v8, %v217_v43  ;;  %v484_v6 = vadd.f32 %v483_v1, %v219_v8  ;;  %v554_v48 = vmul.f32 %v219_v8, %v219_v8  ;;  %v805_v18 = vpack.c.bf16 %v1360_v9, %v1344_v44 }
 0x119   :  { %893 = vst [vmem:[%s1567_s2 + $0x38] sm:$0xff] %v765_v14   ;;  %v485_v11 = vadd.f32 %v484_v6, %v1154_v29  ;;  %v617_v15 = vadd.f32 %v616_v2, %v554_v48  ;;  %v558_v29 = vmul.f32 %v1186_v53, %v1186_v53  ;;  %v562_v2 = vmul.f32 %v1238_v16, %v1238_v16  ;;  %v1412_v6 = vpop.f32.mrf.mxu2 }
 0x11a   :  { %901 = vst [vmem:[%s1567_s2 + $0x78] sm:$0xff] %v805_v18   ;;  %v563_v48 = vmul.f32 %v1252_v22, %v1252_v22 }
 0x11b   :  { %v486_v30 = vadd.f32 %v485_v11, %v1168_v38  ;;  %v618_v31 = vadd.f32 %v617_v15, %v555_v3  ;;  %v840_v38 = vpack.c.bf16 %v1386_v56, %v1364_v25  ;;  %v564_v11 = vmul.f32 %v1268_v28, %v1268_v28 }
 0x11d   :  { %v487_v40 = vadd.f32 %v486_v30, %v1178_v45  ;;  %v619_v43 = vadd.f32 %v618_v31, %v556_v26  ;;  %v559_v45 = vmul.f32 %v1198_v61, %v1198_v61  ;;  %908 = vst [vmem:[%s1567_s2 + $0xb0] sm:$0xff] %v840_v38   ;;  %v566_v31 = vmul.f32 %v1298_v42, %v1298_v42 }
 0x11f   :  { %v488_v21 = vadd.f32 %v487_v40, %v1186_v53  ;;  %v620_v55 = vadd.f32 %v619_v43, %v557_v39  ;;  %v560_v53 = vmul.f32 %v1217_v7, %v1217_v7 }
 0x121   :  { %v489_v59 = vadd.f32 %v488_v21, %v1198_v61  ;;  %v621_v34 = vadd.f32 %v620_v55, %v558_v29 }
 0x123   :  { %v490_v60 = vadd.f32 %v489_v59, %v1217_v7  ;;  %v622_v41 = vadd.f32 %v621_v34, %v559_v45  ;;  %v1414_v7 = vpop.f32.mrf.mxu3 }
 0x125   :  { %v623_v1 = vadd.f32 %v622_v41, %v560_v53  ;;  %v491_v61 = vadd.f32 %v490_v60, %v1229_v12  ;;  %v570_v60 = vmul.f32 %v1360_v9, %v1360_v9 }
 0x127   :  { %v492_v8 = vadd.f32 %v491_v61, %v1238_v16  ;;  %v624_v14 = vadd.f32 %v623_v1, %v561_v63  ;;  %v565_v16 = vmul.f32 %v1282_v35, %v1282_v35  ;;  %v572_v61 = vmul.f32 %v1202_v0, %v1202_v0 }
 0x129   :  { %v493_v18 = vadd.f32 %v492_v8, %v1252_v22  ;;  %v625_v3 = vadd.f32 %v624_v14, %v562_v2  ;;  %v1428_v22 = vpop.f32.mrf.mxu2  ;;  %v573_v8 = vmul.f32 %v1221_v10, %v1221_v10 }
 0x12b   :  { %v494_v12 = vadd.f32 %v493_v18, %v1268_v28  ;;  %v626_v15 = vadd.f32 %v625_v3, %v563_v48  ;;  %v1430_v43 = vpop.f32.mrf.mxu3  ;;  %v845_v28 = vpack.c.bf16 %v1428_v22, %v1412_v6  ;;  %v574_v48 = vmul.f32 %v1231_v13, %v1231_v13 }
 0x12c   :  { %v875_v29 = vpack.c.bf16 %v1430_v43, %v1414_v7 }
 0x12d   :  { %v495_v26 = vadd.f32 %v494_v12, %v1282_v35  ;;  %v627_v30 = vadd.f32 %v626_v15, %v564_v11  ;;  %v567_v35 = vmul.f32 %v1312_v49, %v1312_v49  ;;  %909 = vst [vmem:[%s1567_s2 + $0xb8] sm:$0xff] %v845_v28  }
 0x12e   :  { %915 = vst [vmem:[%s1567_s2 + $0xe8] sm:$0xff] %v875_v29   ;;  %v579_v29 = vmul.f32 %v1302_v46, %v1302_v46 }
 0x12f   :  { %v496_v39 = vadd.f32 %v495_v26, %v1298_v42  ;;  %v628_v40 = vadd.f32 %v627_v30, %v565_v16  ;;  %v577_v26 = vmul.f32 %v1272_v32, %v1272_v32 }
 0x131   :  { %v497_v21 = vadd.f32 %v496_v39, %v1312_v49  ;;  %v629_v55 = vadd.f32 %v628_v40, %v566_v31  ;;  %v569_v49 = vmul.f32 %v1344_v44, %v1344_v44 }
 0x133   :  { %v630_v42 = vadd.f32 %v629_v55, %v567_v35  ;;  %v498_v38 = vadd.f32 %v497_v21, %v1330_v5  ;;  %v1454_v41 = vpop.f32.mrf.mxu3  ;;  %v571_v5 = vmul.f32 %v1190_v58, %v1190_v58  ;;  %v580_v35 = vmul.f32 %v1314_v50, %v1314_v50 }
 0x135   :  { %v631_v45 = vadd.f32 %v630_v42, %v568_v27  ;;  %v499_v59 = vadd.f32 %v498_v38, %v1344_v44  ;;  %v581_v42 = vmul.f32 %v1334_v17, %v1334_v17 }
 0x137   :  { %v632_v34 = vadd.f32 %v631_v45, %v569_v49  ;;  %v500_v53 = vadd.f32 %v499_v59, %v1360_v9  ;;  %v582_v45 = vmul.f32 %v1346_v52, %v1346_v52 }
 0x139   :  { %v501_v63 = vadd.f32 %v500_v53, %v1190_v58  ;;  %v633_v1 = vadd.f32 %v632_v34, %v570_v60 }
 0x13b   :  { %v502_v2 = vadd.f32 %v501_v63, %v1202_v0  ;;  %v634_v44 = vadd.f32 %v633_v1, %v571_v5  ;;  %v1468_v58 = vpop.f32.mrf.mxu3  ;;  %v575_v0 = vmul.f32 %v1242_v19, %v1242_v19  ;;  %v585_v1 = vmul.f32 %v1412_v6, %v1412_v6 }
 0x13c   :  { %v880_v11 = vpack.c.bf16 %v1468_v58, %v1454_v41 }
 0x13d   :  { %v503_v14 = vadd.f32 %v502_v2, %v1221_v10  ;;  %v635_v9 = vadd.f32 %v634_v44, %v572_v61  ;;  %v576_v10 = vmul.f32 %v1254_v23, %v1254_v23  ;;  %v587_v44 = vmul.f32 %v1244_v20, %v1244_v20 }
 0x13e   :  { %916 = vst [vmem:[%s1567_s2 + $0xf0] sm:$0xff] %v880_v11  }
 0x13f   :  { %v504_v18 = vadd.f32 %v503_v14, %v1231_v13  ;;  %v636_v3 = vadd.f32 %v635_v9, %v573_v8 }
 0x141   :  { %v505_v12 = vadd.f32 %v504_v18, %v1242_v19  ;;  %v637_v15 = vadd.f32 %v636_v3, %v574_v48  ;;  %v578_v19 = vmul.f32 %v1284_v36, %v1284_v36 }
 0x143   :  { %v506_v13 = vadd.f32 %v505_v12, %v1254_v23  ;;  %v638_v16 = vadd.f32 %v637_v15, %v575_v0  ;;  %v1487_v28 = vpop.f32.mrf.mxu3 }
 0x145   :  { %v639_v30 = vadd.f32 %v638_v16, %v576_v10  ;;  %v507_v31 = vadd.f32 %v506_v13, %v1272_v32 }
 0x147   :  { %v508_v39 = vadd.f32 %v507_v31, %v1284_v36  ;;  %v640_v40 = vadd.f32 %v639_v30, %v577_v26 }
 0x149   :  { %v509_v23 = vadd.f32 %v508_v39, %v1302_v46  ;;  %v641_v21 = vadd.f32 %v640_v40, %v578_v19 }
 0x14b   :  { %v510_v55 = vadd.f32 %v509_v23, %v1314_v50  ;;  %v642_v32 = vadd.f32 %v641_v21, %v579_v29  ;;  %v339_v46 = vpop.f32.mrf.mxu3  ;;  %v583_v50 = vmul.f32 %v1364_v25, %v1364_v25 }
 0x14c   :  { %v885_v49 = vpack.c.bf16 %v339_v46, %v1487_v28 }
 0x14d   :  { %v511_v36 = vadd.f32 %v510_v55, %v1334_v17  ;;  %v643_v38 = vadd.f32 %v642_v32, %v580_v35  ;;  %v598_v35 = vmul.f32 %v1430_v43, %v1430_v43 }
 0x14e   :  { %917 = vst [vmem:[%s1567_s2 + $0xf8] sm:$0xff] %v885_v49   ;;  %v602_v49 = vmul.f32 %v339_v46, %v339_v46 }
 0x14f   :  { %v512_v27 = vadd.f32 %v511_v36, %v1346_v52  ;;  %v644_v59 = vadd.f32 %v643_v38, %v581_v42  ;;  %v584_v52 = vmul.f32 %v1386_v56, %v1386_v56  ;;  %v599_v42 = vmul.f32 %v1454_v41, %v1454_v41 }
 0x150   :  { %v600_v38 = vmul.f32 %v1468_v58, %v1468_v58 }
 0x151   :  { %v645_v34 = vadd.f32 %v644_v59, %v582_v45  ;;  %v513_v53 = vadd.f32 %v512_v27, %v1364_v25  ;;  %v586_v25 = vmul.f32 %v1428_v22, %v1428_v22  ;;  %v601_v45 = vmul.f32 %v1487_v28, %v1487_v28 }
 0x153   :  { %v646_v17 = vadd.f32 %v645_v34, %v583_v50  ;;  %v514_v60 = vadd.f32 %v513_v53, %v1386_v56  ;;  %v588_v56 = vmul.f32 %v1256_v24, %v1256_v24 }
 0x155   :  { %v647_v5 = vadd.f32 %v646_v17, %v584_v52  ;;  %v515_v63 = vadd.f32 %v514_v60, %v1412_v6  ;;  %v589_v6 = vmul.f32 %v1274_v33, %v1274_v33 }
 0x157   :  { %v648_v61 = vadd.f32 %v647_v5, %v585_v1  ;;  %v516_v2 = vadd.f32 %v515_v63, %v1428_v22  ;;  %v590_v22 = vmul.f32 %v1286_v37, %v1286_v37 }
 0x159   :  { %v517_v8 = vadd.f32 %v516_v2, %v1244_v20  ;;  %v649_v14 = vadd.f32 %v648_v61, %v586_v25  ;;  %v591_v20 = vmul.f32 %v1304_v47, %v1304_v47 }
 0x15b   :  { %v518_v9 = vadd.f32 %v517_v8, %v1256_v24  ;;  %v650_v48 = vadd.f32 %v649_v14, %v587_v44  ;;  %v592_v24 = vmul.f32 %v1316_v51, %v1316_v51 }
 0x15d   :  { %v519_v18 = vadd.f32 %v518_v9, %v1274_v33  ;;  %v651_v3 = vadd.f32 %v650_v48, %v588_v56  ;;  %v593_v33 = vmul.f32 %v1336_v62, %v1336_v62 }
 0x15f   :  { %v520_v11 = vadd.f32 %v519_v18, %v1286_v37  ;;  %v652_v0 = vadd.f32 %v651_v3, %v589_v6  ;;  %v594_v37 = vmul.f32 %v1348_v54, %v1348_v54 }
 0x161   :  { %v521_v12 = vadd.f32 %v520_v11, %v1304_v47  ;;  %v653_v15 = vadd.f32 %v652_v0, %v590_v22  ;;  %v595_v47 = vmul.f32 %v1366_v4, %v1366_v4 }
 0x163   :  { %v522_v10 = vadd.f32 %v521_v12, %v1316_v51  ;;  %v654_v13 = vadd.f32 %v653_v15, %v591_v20  ;;  %v596_v51 = vmul.f32 %v1388_v57, %v1388_v57 }
 0x165   :  { %v655_v16 = vadd.f32 %v654_v13, %v592_v24  ;;  %v523_v26 = vadd.f32 %v522_v10, %v1336_v62  ;;  %v597_v62 = vmul.f32 %v1414_v7, %v1414_v7 }
 0x167   :  { %v524_v30 = vadd.f32 %v523_v26, %v1348_v54  ;;  %v656_v31 = vadd.f32 %v655_v16, %v593_v33 }
 0x169   :  { %v525_v19 = vadd.f32 %v524_v30, %v1366_v4  ;;  %v657_v39 = vadd.f32 %v656_v31, %v594_v37 }
 0x16b   :  { %v526_v40 = vadd.f32 %v525_v19, %v1388_v57  ;;  %v658_v29 = vadd.f32 %v657_v39, %v595_v47 }
 0x16d   :  { %v527_v23 = vadd.f32 %v526_v40, %v1414_v7  ;;  %v659_v21 = vadd.f32 %v658_v29, %v596_v51 }
 0x16f   :  { %v528_v54 = vadd.f32 %v527_v23, %v1430_v43  ;;  %v660_v55 = vadd.f32 %v659_v21, %v597_v62 }
 0x171   :  { %v661_v4 = vadd.f32 %v660_v55, %v598_v35  ;;  %v529_v32 = vadd.f32 %v528_v54, %v1454_v41  ;;  %v672_v41 = vlaneseq }
 0x173   :  { %v662_v57 = vadd.f32 %v661_v4, %v599_v42  ;;  %v530_v36 = vadd.f32 %v529_v32, %v1468_v58  ;;  %v673_v1 = vshrl.u32 %v672_v41, 7 }
 0x175   :  { %v663_v7 = vadd.f32 %v662_v57, %v600_v38  ;;  %v531_v27 = vadd.f32 %v530_v36, %v1487_v28  ;;  %vm675_vm0 = vcmp.eq.s32.totalorder %v673_v1, 1  ;;  %vm674_vm1 = vcmp.eq.s32.totalorder %v673_v1, 0 }
 0x177   :  { %v664_v43 = vadd.f32 %v663_v7, %v601_v45  ;;  %v532_v59 = vadd.f32 %v531_v27, %v339_v46 }
 0x179   :  { %v533_v34 = vrot.slane %v532_v59, 4  ;;  %v665_v53 = vadd.f32 %v664_v43, %v602_v49 }
 0x17b   :  { %v534_v50 = vadd.f32 %v533_v34, %v532_v59  ;;  %v666_v17 = vrot.slane %v665_v53, 4 }
 0x17d   :  { %v535_v60 = vrot.slane %v534_v50, 2  ;;  %v667_v52 = vadd.f32 %v666_v17, %v665_v53 }
 0x17f   :  { %v536_v5 = vadd.f32 %v535_v60, %v534_v50  ;;  %v668_v63 = vrot.slane %v667_v52, 2 }
 0x181   :  { %v669_v58 = vadd.f32 %v668_v63, %v667_v52  ;;  %v537_v61 = vrot.slane %v536_v5, 1 }
 0x183   :  { %v670_v2 = vrot.slane %v669_v58, 1  ;;  %v538_v28 = vadd.f32 %v537_v61, %v536_v5 }
 0x185   :  { %v671_v25 = vadd.f32 %v670_v2, %v669_v58 }
 0x187   :  { %v676_v44 = vsel %vm675_vm0, %v671_v25, 0.0 }
 0x188   :  { %v677_v8 = vsel %vm674_vm1, %v538_v28, %v676_v44 }
 0x189   :  { %678 = vst [vmem:[%s1568_s3] sm:$0xff] %v677_v8 }

// kernel: bottleneck_forward.7
= control target key start
LH: loop header
LB: loop body
LE: loop exit
PB: predicated region body
PF: predicated region fallthrough
CT: control target
= control target key end

     0   :  { %s638_s1 = inlined_call_operand.vmem [shape: bf16[128,128], index: 1, kind: input, shape index: {}]   ;;  %s639_s2 = inlined_call_operand.vmem [shape: f32[1,128], index: 2, kind: input, shape index: {}]   ;;  %s640_s3 = inlined_call_operand.vmem [shape: f32[1,128], index: 3, kind: input, shape index: {}]   ;;  %s641_s0 = inlined_call_operand.vmem [shape: bf16[128,128], index: 0, kind: input, shape index: {}]   ;;  %s642_s4 = inlined_call_operand.vmem [shape: bf16[128,128], index: 4, kind: output, shape index: {0}]   ;;  %s643_s5 = inlined_call_operand.vmem [shape: f32[8,128], index: 5, kind: output, shape index: {1}]  }
   0x1   :  { %v372_v0 = vld [vmem:[%s638_s1 + $0x38] sm:$0xff]  ;;  %v371_v1 = vld [vmem:[%s638_s1 + $0x30] sm:$0xff]  ;;  %v370_v2 = vld [vmem:[%s638_s1 + $0x28] sm:$0xff] }
   0x2   :  { %179 = vmatpush.bf16.msra.mxu0 %v372_v0  ;;  %459 = vmatpush.bf16.msra.mxu1 %v372_v0  ;;  %v374_v3 = vld [vmem:[%s641_s0] sm:$0xff]   ;;  %v446_v5 = vld [vmem:[%s641_s0 + $0x10] sm:$0xff]   ;;  %v368_v15 = vld [vmem:[%s638_s1 + $0x18] sm:$0xff] }
   0x3   :  { %460 = vmatpush.bf16.msra.mxu2 %v372_v0  ;;  %461 = vmatpush.bf16.msra.mxu3 %v372_v0  ;;  %v369_v4 = vld [vmem:[%s638_s1 + $0x20] sm:$0xff]  ;;  %v450_v7 = vld [vmem:[%s641_s0 + $0x30] sm:$0xff]   ;;  %v375_v8 = vunpack.c.l.bf16 %v374_v3  ;;  %v376_v9 = vunpack.c.h.bf16 %v374_v3  ;;  %v383_v11 = vunpack.c.l.bf16 %v446_v5  ;;  %v384_v12 = vunpack.c.h.bf16 %v446_v5  ;;  %v366_v34 = vld [vmem:[%s638_s1 + $0x8] sm:$0xff] }
   0x4   :  { %v448_v6 = vld [vmem:[%s641_s0 + $0x20] sm:$0xff]   ;;  %v399_v16 = vunpack.c.l.bf16 %v450_v7  ;;  %v400_v17 = vunpack.c.h.bf16 %v450_v7  ;;  %v367_v25 = vld [vmem:[%s638_s1 + $0x10] sm:$0xff]  ;;  %v445_v43 = vld [vmem:[%s641_s0 + $0x8] sm:$0xff]  }
   0x5   :  { %v542_v10 = vld [vmem:[%s639_s2] ss:$0 sm:$0xff]  ;;  %v391_v13 = vunpack.c.l.bf16 %v448_v6  ;;  %v392_v14 = vunpack.c.h.bf16 %v448_v6  ;;  %v447_v44 = vld [vmem:[%s641_s0 + $0x18] sm:$0xff]   ;;  %v449_v48 = vld [vmem:[%s641_s0 + $0x28] sm:$0xff]   ;;  %v379_v51 = vunpack.c.l.bf16 %v445_v43  ;;  %v380_v52 = vunpack.c.h.bf16 %v445_v43 }
   0x6   :  { %180 = vmatpush.bf16.msra.mxu0 %v371_v1  ;;  %462 = vmatpush.bf16.msra.mxu1 %v371_v1  ;;  %v55_v18 = vmul.f32 %v542_v10, %v375_v8  ;;  %v56_v19 = vmul.f32 %v542_v10, %v376_v9  ;;  %v552_v20 = vld [vmem:[%s640_s3] ss:$0 sm:$0xff]  ;;  %v59_v21 = vmul.f32 %v542_v10, %v383_v11  ;;  %v451_v49 = vld [vmem:[%s641_s0 + $0x38] sm:$0xff]   ;;  %v387_v53 = vunpack.c.l.bf16 %v447_v44 }
   0x7   :  { %463 = vmatpush.bf16.msra.mxu2 %v371_v1  ;;  %464 = vmatpush.bf16.msra.mxu3 %v371_v1  ;;  %v60_v22 = vmul.f32 %v542_v10, %v384_v12  ;;  %v63_v23 = vmul.f32 %v542_v10, %v391_v13  ;;  %v64_v24 = vmul.f32 %v542_v10, %v392_v14  ;;  %v365_v45 = vld [vmem:[%s638_s1] sm:$0xff]  ;;  %v388_v56 = vunpack.c.h.bf16 %v447_v44 }
   0x8   :  { %v67_v26 = vmul.f32 %v542_v10, %v399_v16  ;;  %v68_v27 = vmul.f32 %v542_v10, %v400_v17  ;;  %v75_v28 = vadd.f32 %v552_v20, %v55_v18  ;;  %v76_v29 = vadd.f32 %v552_v20, %v56_v19 }
   0x9   :  { %v79_v30 = vadd.f32 %v552_v20, %v59_v21  ;;  %v80_v31 = vadd.f32 %v552_v20, %v60_v22  ;;  %v83_v32 = vadd.f32 %v552_v20, %v63_v23  ;;  %v84_v33 = vadd.f32 %v552_v20, %v64_v24 }
   0xa   :  { %181 = vmatpush.bf16.msra.mxu0 %v370_v2  ;;  %465 = vmatpush.bf16.msra.mxu1 %v370_v2  ;;  %v87_v35 = vadd.f32 %v552_v20, %v67_v26  ;;  %v88_v36 = vadd.f32 %v552_v20, %v68_v27  ;;  %v91_v37 = vmax.f32 %v75_v28, 0.0  ;;  %v92_v38 = vmax.f32 %v76_v29, 0.0 }
   0xb   :  { %466 = vmatpush.bf16.msra.mxu2 %v370_v2  ;;  %467 = vmatpush.bf16.msra.mxu3 %v370_v2  ;;  %v95_v39 = vmax.f32 %v79_v30, 0.0  ;;  %v96_v40 = vmax.f32 %v80_v31, 0.0  ;;  %v99_v41 = vmax.f32 %v83_v32, 0.0  ;;  %v100_v42 = vmax.f32 %v84_v33, 0.0 }
   0xc   :  { %v103_v46 = vmax.f32 %v87_v35, 0.0  ;;  %v104_v47 = vmax.f32 %v88_v36, 0.0  ;;  %v107_v50 = vpack.c.bf16 %v92_v38, %v91_v37  ;;  %v395_v57 = vunpack.c.l.bf16 %v449_v48 }
   0xd   :  { %v109_v54 = vpack.c.bf16 %v96_v40, %v95_v39  ;;  %v111_v55 = vpack.c.bf16 %v100_v42, %v99_v41  ;;  %v396_v59 = vunpack.c.h.bf16 %v449_v48  ;;  %v403_v60 = vunpack.c.l.bf16 %v451_v49 }
   0xe   :  { %182 = vmatpush.bf16.msra.mxu0 %v369_v4  ;;  %468 = vmatpush.bf16.msra.mxu1 %v369_v4  ;;  %v113_v58 = vpack.c.bf16 %v104_v47, %v103_v46  ;;  %v404_v61 = vunpack.c.h.bf16 %v451_v49  ;;  %v57_v62 = vmul.f32 %v542_v10, %v379_v51  ;;  %v58_v63 = vmul.f32 %v542_v10, %v380_v52 }
   0xf   :  { %469 = vmatpush.bf16.msra.mxu2 %v369_v4  ;;  %470 = vmatpush.bf16.msra.mxu3 %v369_v4  ;;  %v61_v0 = vmul.f32 %v542_v10, %v387_v53  ;;  %v62_v1 = vmul.f32 %v542_v10, %v388_v56  ;;  %v65_v2 = vmul.f32 %v542_v10, %v395_v57 }
  0x10   :  { %v66_v3 = vmul.f32 %v542_v10, %v396_v59  ;;  %v69_v4 = vmul.f32 %v542_v10, %v403_v60  ;;  %v70_v5 = vmul.f32 %v542_v10, %v404_v61  ;;  %v77_v6 = vadd.f32 %v552_v20, %v57_v62 }
  0x11   :  { %v78_v7 = vadd.f32 %v552_v20, %v58_v63  ;;  %v81_v8 = vadd.f32 %v552_v20, %v61_v0  ;;  %v82_v9 = vadd.f32 %v552_v20, %v62_v1  ;;  %v85_v11 = vadd.f32 %v552_v20, %v65_v2 }
  0x12   :  { %183 = vmatpush.bf16.msra.mxu0 %v368_v15  ;;  %471 = vmatpush.bf16.msra.mxu1 %v368_v15  ;;  %v86_v12 = vadd.f32 %v552_v20, %v66_v3  ;;  %v89_v13 = vadd.f32 %v552_v20, %v69_v4  ;;  %v90_v14 = vadd.f32 %v552_v20, %v70_v5 }
  0x13   :  { %472 = vmatpush.bf16.msra.mxu2 %v368_v15  ;;  %473 = vmatpush.bf16.msra.mxu3 %v368_v15  ;;  %v93_v15 = vmax.f32 %v77_v6, 0.0  ;;  %v94_v16 = vmax.f32 %v78_v7, 0.0  ;;  %v97_v17 = vmax.f32 %v81_v8, 0.0  ;;  %v98_v10 = vmax.f32 %v82_v9, 0.0 }
  0x14   :  { %v101_v18 = vmax.f32 %v85_v11, 0.0  ;;  %v102_v19 = vmax.f32 %v86_v12, 0.0  ;;  %v105_v21 = vmax.f32 %v89_v13, 0.0  ;;  %v106_v22 = vmax.f32 %v90_v14, 0.0 }
  0x15   :  { %v108_v23 = vpack.c.bf16 %v94_v16, %v93_v15  ;;  %v110_v24 = vpack.c.bf16 %v98_v10, %v97_v17 }
  0x16   :  { %184 = vmatpush.bf16.msra.mxu0 %v367_v25  ;;  %474 = vmatpush.bf16.msra.mxu1 %v367_v25  ;;  %v114_v26 = vpack.c.bf16 %v106_v22, %v105_v21 }
  0x17   :  { %475 = vmatpush.bf16.msra.mxu2 %v367_v25  ;;  %476 = vmatpush.bf16.msra.mxu3 %v367_v25  ;;  %v112_v25 = vpack.c.bf16 %v102_v19, %v101_v18 }
  0x1a   :  { %185 = vmatpush.bf16.msra.mxu0 %v366_v34  ;;  %477 = vmatpush.bf16.msra.mxu1 %v366_v34 }
  0x1b   :  { %478 = vmatpush.bf16.msra.mxu2 %v366_v34  ;;  %479 = vmatpush.bf16.msra.mxu3 %v366_v34 }
  0x1e   :  { %186 = vmatpush.bf16.msra.mxu0 %v365_v45  ;;  %480 = vmatpush.bf16.msra.mxu1 %v365_v45 }
  0x1f   :  { %481 = vmatpush.bf16.msra.mxu2 %v365_v45  ;;  %482 = vmatpush.bf16.msra.mxu3 %v365_v45 }
  0x21   :  { %187 = vmatmul.bf16.vlgmr.msra.gmra.mxu0 %v107_v50  ;;  %197 = vmatmul.bf16.vlgmr.msra.gmra.mxu1 %v109_v54 }
  0x22   :  { %207 = vmatmul.bf16.vlgmr.msra.gmra.mxu2 %v111_v55  ;;  %217 = vmatmul.bf16.vlgmr.msra.gmra.mxu3 %v113_v58 }
  0x31   :  { %192 = vmatmul.bf16.gmra.mxu0 %v108_v23  ;;  %202 = vmatmul.bf16.gmra.mxu1 %v110_v24 }
  0x32   :  { %212 = vmatmul.bf16.gmra.mxu2 %v112_v25  ;;  %222 = vmatmul.bf16.gmra.mxu3 %v114_v26 }
  0x9e   :  { %v188_v27 = vpop.f32.mrf.mxu0  ;;  %v198_v28 = vpop.f32.mrf.mxu1 }
  0x9f   :  { %v281_v41 = vmul.f32 %v188_v27, %v188_v27  ;;  %v285_v55 = vmul.f32 %v198_v28, %v198_v28 }
  0xa5   :  { %v208_v29 = vpop.f32.mrf.mxu2  ;;  %v605_v20 = vpop.f32.mrf.mxu3 }
  0xa6   :  { %v190_v30 = vpop.f32.mrf.mxu0  ;;  %v200_v31 = vpop.f32.mrf.mxu1  ;;  %v289_v7 = vmul.f32 %v208_v29, %v208_v29  ;;  %v293_v19 = vmul.f32 %v605_v20, %v605_v20 }
  0xa7   :  { %v408_v32 = vpack.c.bf16 %v190_v30, %v188_v27  ;;  %v418_v33 = vpack.c.bf16 %v200_v31, %v198_v28  ;;  %v282_v40 = vmul.f32 %v190_v30, %v190_v30  ;;  %v260_v43 = vadd.f32 %v190_v30, %v188_v27 }
  0xa8   :  { %v286_v58 = vmul.f32 %v200_v31, %v200_v31 }
  0xa9   :  { %409 = vst [vmem:[%s642_s4] sm:$0xff] %v408_v32   ;;  %v297_v44 = vadd.f32 %v282_v40, %v281_v41 }
  0xaa   :  { %453 = vst [vmem:[%s642_s4 + $0x10] sm:$0xff] %v418_v33  }
  0xad   :  { %v210_v34 = vpop.f32.mrf.mxu2  ;;  %v220_v35 = vpop.f32.mrf.mxu3 }
  0xae   :  { %v193_v36 = vpop.f32.mrf.mxu0  ;;  %v203_v37 = vpop.f32.mrf.mxu1  ;;  %v428_v38 = vpack.c.bf16 %v210_v34, %v208_v29  ;;  %v438_v39 = vpack.c.bf16 %v220_v35, %v605_v20  ;;  %v290_v11 = vmul.f32 %v210_v34, %v210_v34  ;;  %v294_v23 = vmul.f32 %v220_v35, %v220_v35 }
  0xaf   :  { %v283_v42 = vmul.f32 %v193_v36, %v193_v36  ;;  %v261_v45 = vadd.f32 %v260_v43, %v193_v36  ;;  %v287_v61 = vmul.f32 %v203_v37, %v203_v37 }
  0xb0   :  { %455 = vst [vmem:[%s642_s4 + $0x20] sm:$0xff] %v428_v38  }
  0xb1   :  { %457 = vst [vmem:[%s642_s4 + $0x30] sm:$0xff] %v438_v39   ;;  %v298_v48 = vadd.f32 %v297_v44, %v283_v42 }
  0xb5   :  { %v213_v46 = vpop.f32.mrf.mxu2  ;;  %v223_v47 = vpop.f32.mrf.mxu3 }
  0xb6   :  { %v195_v49 = vpop.f32.mrf.mxu0  ;;  %v205_v50 = vpop.f32.mrf.mxu1  ;;  %v291_v15 = vmul.f32 %v213_v46, %v213_v46  ;;  %v295_v27 = vmul.f32 %v223_v47, %v223_v47 }
  0xb7   :  { %v413_v51 = vpack.c.bf16 %v195_v49, %v193_v36  ;;  %v262_v52 = vadd.f32 %v261_v45, %v195_v49  ;;  %v284_v53 = vmul.f32 %v195_v49, %v195_v49  ;;  %v423_v54 = vpack.c.bf16 %v205_v50, %v203_v37 }
  0xb8   :  { %v288_v5 = vmul.f32 %v205_v50, %v205_v50 }
  0xb9   :  { %452 = vst [vmem:[%s642_s4 + $0x8] sm:$0xff] %v413_v51   ;;  %v263_v56 = vadd.f32 %v262_v52, %v198_v28  ;;  %v299_v57 = vadd.f32 %v298_v48, %v284_v53 }
  0xba   :  { %454 = vst [vmem:[%s642_s4 + $0x18] sm:$0xff] %v423_v54  }
  0xbb   :  { %v300_v59 = vadd.f32 %v299_v57, %v285_v55  ;;  %v264_v60 = vadd.f32 %v263_v56, %v200_v31 }
  0xbd   :  { %v265_v62 = vadd.f32 %v264_v60, %v203_v37  ;;  %v301_v63 = vadd.f32 %v300_v59, %v286_v58  ;;  %v215_v0 = vpop.f32.mrf.mxu2  ;;  %v225_v1 = vpop.f32.mrf.mxu3  ;;  %v318_v37 = vlaneseq }
  0xbe   :  { %v433_v2 = vpack.c.bf16 %v215_v0, %v213_v46  ;;  %v443_v3 = vpack.c.bf16 %v225_v1, %v223_v47  ;;  %v292_v18 = vmul.f32 %v215_v0, %v215_v0  ;;  %v296_v31 = vmul.f32 %v225_v1, %v225_v1 }
  0xbf   :  { %v266_v4 = vadd.f32 %v265_v62, %v205_v50  ;;  %v302_v6 = vadd.f32 %v301_v63, %v287_v61 }
  0xc0   :  { %456 = vst [vmem:[%s642_s4 + $0x28] sm:$0xff] %v433_v2  }
  0xc1   :  { %v267_v8 = vadd.f32 %v266_v4, %v208_v29  ;;  %v303_v9 = vadd.f32 %v302_v6, %v288_v5  ;;  %458 = vst [vmem:[%s642_s4 + $0x38] sm:$0xff] %v443_v3  }
  0xc3   :  { %v304_v12 = vadd.f32 %v303_v9, %v289_v7  ;;  %v268_v13 = vadd.f32 %v267_v8, %v210_v34 }
  0xc5   :  { %v269_v14 = vadd.f32 %v268_v13, %v213_v46  ;;  %v305_v16 = vadd.f32 %v304_v12, %v290_v11 }
  0xc7   :  { %v306_v17 = vadd.f32 %v305_v16, %v291_v15  ;;  %v270_v10 = vadd.f32 %v269_v14, %v215_v0 }
  0xc9   :  { %v271_v21 = vadd.f32 %v270_v10, %v605_v20  ;;  %v307_v22 = vadd.f32 %v306_v17, %v292_v18  ;;  %v319_v20 = vshrl.u32 %v318_v37, 7 }
  0xcb   :  { %v308_v24 = vadd.f32 %v307_v22, %v293_v19  ;;  %v272_v25 = vadd.f32 %v271_v21, %v220_v35  ;;  %vm321_vm0 = vcmp.eq.s32.totalorder %v319_v20, 1  ;;  %vm320_vm1 = vcmp.eq.s32.totalorder %v319_v20, 0 }
  0xcd   :  { %v273_v26 = vadd.f32 %v272_v25, %v223_v47  ;;  %v309_v28 = vadd.f32 %v308_v24, %v294_v23 }
  0xcf   :  { %v310_v29 = vadd.f32 %v309_v28, %v295_v27  ;;  %v274_v30 = vadd.f32 %v273_v26, %v225_v1 }
  0xd1   :  { %v275_v32 = vrot.slane %v274_v30, 4  ;;  %v311_v33 = vadd.f32 %v310_v29, %v296_v31 }
  0xd3   :  { %v276_v34 = vadd.f32 %v275_v32, %v274_v30  ;;  %v312_v36 = vrot.slane %v311_v33, 4 }
  0xd5   :  { %v277_v38 = vrot.slane %v276_v34, 2  ;;  %v313_v39 = vadd.f32 %v312_v36, %v311_v33 }
  0xd7   :  { %v278_v40 = vadd.f32 %v277_v38, %v276_v34  ;;  %v314_v41 = vrot.slane %v313_v39, 2 }
  0xd9   :  { %v315_v42 = vadd.f32 %v314_v41, %v313_v39  ;;  %v279_v43 = vrot.slane %v278_v40, 1 }
  0xdb   :  { %v316_v44 = vrot.slane %v315_v42, 1  ;;  %v280_v45 = vadd.f32 %v279_v43, %v278_v40 }
  0xdd   :  { %v317_v35 = vadd.f32 %v316_v44, %v315_v42 }
  0xdf   :  { %v322_v46 = vsel %vm321_vm0, %v317_v35, 0.0 }
  0xe0   :  { %v323_v47 = vsel %vm320_vm1, %v280_v45, %v322_v46 }
  0xe1   :  { %324 = vst [vmem:[%s643_s5] sm:$0xff] %v323_v47 }

// kernel: bottleneck_forward.9
= control target key start
LH: loop header
LB: loop body
LE: loop exit
PB: predicated region body
PF: predicated region fallthrough
CT: control target
= control target key end

     0   :  { %s516_s0 = inlined_call_operand.vmem [shape: bf16[128,128], index: 0, kind: input, shape index: {}]   ;;  %s517_s1 = inlined_call_operand.vmem [shape: f32[1,128], index: 1, kind: input, shape index: {}]   ;;  %s518_s2 = inlined_call_operand.vmem [shape: f32[1,128], index: 2, kind: input, shape index: {}]   ;;  %s519_s3 = inlined_call_operand.vmem [shape: bf16[128,128], index: 3, kind: input, shape index: {}]   ;;  %s520_s4 = inlined_call_operand.vmem [shape: f32[1,128], index: 4, kind: input, shape index: {}]   ;;  %s521_s5 = inlined_call_operand.vmem [shape: f32[1,128], index: 5, kind: input, shape index: {}]   ;;  %s522_s6 = inlined_call_operand.vmem [shape: f32[128,128], index: 6, kind: output, shape index: {}]  }
   0x1   :  { %v220_v0 = vld [vmem:[%s516_s0] sm:$0xff]   ;;  %v283_v12 = vld [vmem:[%s516_s0 + $0x8] sm:$0xff]   ;;  %v284_v18 = vld [vmem:[%s516_s0 + $0x10] sm:$0xff]  }
   0x2   :  { %v342_v1 = vld [vmem:[%s517_s1] ss:$0 sm:$0xff]  ;;  %v221_v2 = vunpack.c.l.bf16 %v220_v0  ;;  %v222_v5 = vunpack.c.h.bf16 %v220_v0  ;;  %v290_v13 = vld [vmem:[%s519_s3 + $0x8] sm:$0xff]   ;;  %v225_v16 = vunpack.c.l.bf16 %v283_v12  ;;  %v291_v19 = vld [vmem:[%s519_s3 + $0x10] sm:$0xff]   ;;  %v226_v22 = vunpack.c.h.bf16 %v283_v12 }
   0x3   :  { %v347_v3 = vld [vmem:[%s518_s2] ss:$0 sm:$0xff]  ;;  %v257_v17 = vunpack.c.l.bf16 %v290_v13  ;;  %v258_v23 = vunpack.c.h.bf16 %v290_v13  ;;  %v229_v30 = vunpack.c.l.bf16 %v284_v18  ;;  %v261_v31 = vunpack.c.l.bf16 %v291_v19  ;;  %v285_v40 = vld [vmem:[%s516_s0 + $0x18] sm:$0xff]   ;;  %v287_v12 = vld [vmem:[%s516_s0 + $0x28] sm:$0xff]  }
   0x4   :  { %v252_v4 = vld [vmem:[%s519_s3] sm:$0xff]   ;;  %v59_v9 = vmul.f32 %v342_v1, %v221_v2  ;;  %v60_v11 = vmul.f32 %v342_v1, %v222_v5  ;;  %v61_v26 = vmul.f32 %v342_v1, %v225_v16  ;;  %v62_v28 = vmul.f32 %v342_v1, %v226_v22  ;;  %v292_v41 = vld [vmem:[%s519_s3 + $0x18] sm:$0xff]  }
   0x5   :  { %v253_v6 = vunpack.c.l.bf16 %v252_v4  ;;  %v355_v7 = vld [vmem:[%s520_s4] ss:$0 sm:$0xff]  ;;  %v254_v8 = vunpack.c.h.bf16 %v252_v4  ;;  %v63_v38 = vmul.f32 %v342_v1, %v229_v30  ;;  %v230_v45 = vunpack.c.h.bf16 %v284_v18  ;;  %v288_v30 = vld [vmem:[%s516_s0 + $0x30] sm:$0xff]  }
   0x6   :  { %v361_v10 = vld [vmem:[%s521_s5] ss:$0 sm:$0xff]  ;;  %v79_v20 = vadd.f32 %v347_v3, %v59_v9  ;;  %v80_v21 = vadd.f32 %v347_v3, %v60_v11  ;;  %v133_v27 = vmul.f32 %v355_v7, %v257_v17  ;;  %v134_v29 = vmul.f32 %v355_v7, %v258_v23 }
   0x7   :  { %v131_v14 = vmul.f32 %v355_v7, %v253_v6  ;;  %v132_v15 = vmul.f32 %v355_v7, %v254_v8  ;;  %v81_v34 = vadd.f32 %v347_v3, %v61_v26  ;;  %v82_v36 = vadd.f32 %v347_v3, %v62_v28  ;;  %v286_v54 = vld [vmem:[%s516_s0 + $0x20] sm:$0xff]  }
   0x8   :  { %v153_v35 = vadd.f32 %v361_v10, %v133_v27  ;;  %v154_v37 = vadd.f32 %v361_v10, %v134_v29  ;;  %v135_v39 = vmul.f32 %v355_v7, %v261_v31  ;;  %v83_v47 = vadd.f32 %v347_v3, %v63_v38  ;;  %v293_v59 = vld [vmem:[%s519_s3 + $0x20] sm:$0xff]  }
   0x9   :  { %v151_v24 = vadd.f32 %v361_v10, %v131_v14  ;;  %v152_v25 = vadd.f32 %v361_v10, %v132_v15  ;;  %v262_v49 = vunpack.c.h.bf16 %v291_v19  ;;  %v64_v51 = vmul.f32 %v342_v1, %v230_v45 }
   0xa   :  { %v169_v44 = vadd.f32 %v153_v35, %v81_v34  ;;  %v170_v46 = vadd.f32 %v154_v37, %v82_v36  ;;  %v155_v48 = vadd.f32 %v361_v10, %v135_v39  ;;  %v233_v52 = vunpack.c.l.bf16 %v285_v40  ;;  %v295_v35 = vld [vmem:[%s519_s3 + $0x30] sm:$0xff]  }
   0xb   :  { %v167_v32 = vadd.f32 %v151_v24, %v79_v20  ;;  %v168_v33 = vadd.f32 %v152_v25, %v80_v21  ;;  %v265_v53 = vunpack.c.l.bf16 %v292_v41  ;;  %v136_v57 = vmul.f32 %v355_v7, %v262_v49  ;;  %v294_v21 = vld [vmem:[%s519_s3 + $0x28] sm:$0xff]  }
   0xc   :  { %v185_v50 = vmax.f32 %v169_v44, 0.0  ;;  %v186_v55 = vmax.f32 %v170_v46, 0.0  ;;  %v171_v56 = vadd.f32 %v155_v48, %v83_v47  ;;  %v234_v58 = vunpack.c.h.bf16 %v285_v40  ;;  %v289_v48 = vld [vmem:[%s516_s0 + $0x38] sm:$0xff]  }
   0xd   :  { %v183_v42 = vmax.f32 %v167_v32, 0.0  ;;  %v184_v43 = vmax.f32 %v168_v33, 0.0  ;;  %v84_v60 = vadd.f32 %v347_v3, %v64_v51  ;;  %v65_v61 = vmul.f32 %v342_v1, %v233_v52 }
   0xe   :  { %201 = vst [vmem:[%s522_s6 + $0x10] sm:$0xff] %v185_v50  ;;  %v137_v62 = vmul.f32 %v355_v7, %v265_v53  ;;  %v266_v63 = vunpack.c.h.bf16 %v292_v41  ;;  %v187_v0 = vmax.f32 %v171_v56, 0.0  ;;  %v156_v2 = vadd.f32 %v361_v10, %v136_v57  ;;  %v296_v53 = vld [vmem:[%s519_s3 + $0x38] sm:$0xff]  }
   0xf   :  { %199 = vst [vmem:[%s522_s6] sm:$0xff] %v183_v42  ;;  %v66_v4 = vmul.f32 %v342_v1, %v234_v58  ;;  %v237_v5 = vunpack.c.l.bf16 %v286_v54  ;;  %v85_v6 = vadd.f32 %v347_v3, %v65_v61  ;;  %v269_v11 = vunpack.c.l.bf16 %v293_v59 }
  0x10   :  { %200 = vst [vmem:[%s522_s6 + $0x8] sm:$0xff] %v184_v43  ;;  %v157_v8 = vadd.f32 %v361_v10, %v137_v62  ;;  %v138_v9 = vmul.f32 %v355_v7, %v266_v63  ;;  %v172_v13 = vadd.f32 %v156_v2, %v84_v60  ;;  %v238_v16 = vunpack.c.h.bf16 %v286_v54 }
  0x11   :  { %202 = vst [vmem:[%s522_s6 + $0x18] sm:$0xff] %v186_v55  ;;  %v86_v14 = vadd.f32 %v347_v3, %v66_v4  ;;  %v67_v15 = vmul.f32 %v342_v1, %v237_v5  ;;  %v139_v19 = vmul.f32 %v355_v7, %v269_v11  ;;  %v270_v20 = vunpack.c.h.bf16 %v293_v59 }
  0x12   :  { %203 = vst [vmem:[%s522_s6 + $0x20] sm:$0xff] %v187_v0  ;;  %v173_v17 = vadd.f32 %v157_v8, %v85_v6  ;;  %v158_v18 = vadd.f32 %v361_v10, %v138_v9  ;;  %v188_v22 = vmax.f32 %v172_v13, 0.0  ;;  %v68_v24 = vmul.f32 %v342_v1, %v238_v16 }
  0x13   :  { %v87_v23 = vadd.f32 %v347_v3, %v67_v15  ;;  %v241_v25 = vunpack.c.l.bf16 %v287_v12  ;;  %v159_v28 = vadd.f32 %v361_v10, %v139_v19  ;;  %v140_v29 = vmul.f32 %v355_v7, %v270_v20 }
  0x14   :  { %v189_v26 = vmax.f32 %v173_v17, 0.0  ;;  %v174_v27 = vadd.f32 %v158_v18, %v86_v14  ;;  %204 = vst [vmem:[%s522_s6 + $0x28] sm:$0xff] %v188_v22  ;;  %v88_v31 = vadd.f32 %v347_v3, %v68_v24  ;;  %v273_v33 = vunpack.c.l.bf16 %v294_v21 }
  0x15   :  { %v69_v32 = vmul.f32 %v342_v1, %v241_v25  ;;  %v242_v34 = vunpack.c.h.bf16 %v287_v12  ;;  %v175_v37 = vadd.f32 %v159_v28, %v87_v23  ;;  %v160_v38 = vadd.f32 %v361_v10, %v140_v29 }
  0x16   :  { %205 = vst [vmem:[%s522_s6 + $0x30] sm:$0xff] %v189_v26  ;;  %v190_v36 = vmax.f32 %v174_v27, 0.0  ;;  %v274_v39 = vunpack.c.h.bf16 %v294_v21  ;;  %v141_v41 = vmul.f32 %v355_v7, %v273_v33  ;;  %v245_v43 = vunpack.c.l.bf16 %v288_v30 }
  0x17   :  { %v89_v40 = vadd.f32 %v347_v3, %v69_v32  ;;  %v70_v42 = vmul.f32 %v342_v1, %v242_v34  ;;  %v191_v44 = vmax.f32 %v175_v37, 0.0  ;;  %v176_v45 = vadd.f32 %v160_v38, %v88_v31 }
  0x18   :  { %206 = vst [vmem:[%s522_s6 + $0x38] sm:$0xff] %v190_v36  ;;  %v142_v46 = vmul.f32 %v355_v7, %v274_v39  ;;  %v277_v47 = vunpack.c.l.bf16 %v295_v35  ;;  %v161_v49 = vadd.f32 %v361_v10, %v141_v41  ;;  %v71_v51 = vmul.f32 %v342_v1, %v245_v43 }
  0x19   :  { %v90_v50 = vadd.f32 %v347_v3, %v70_v42  ;;  %v246_v52 = vunpack.c.h.bf16 %v288_v30  ;;  %207 = vst [vmem:[%s522_s6 + $0x40] sm:$0xff] %v191_v44  ;;  %v192_v54 = vmax.f32 %v176_v45, 0.0  ;;  %v278_v57 = vunpack.c.h.bf16 %v295_v35 }
  0x1a   :  { %v162_v55 = vadd.f32 %v361_v10, %v142_v46  ;;  %v143_v56 = vmul.f32 %v355_v7, %v277_v47  ;;  %v177_v58 = vadd.f32 %v161_v49, %v89_v40  ;;  %v91_v59 = vadd.f32 %v347_v3, %v71_v51 }
  0x1b   :  { %v72_v60 = vmul.f32 %v342_v1, %v246_v52  ;;  %v249_v61 = vunpack.c.l.bf16 %v289_v48  ;;  %208 = vst [vmem:[%s522_s6 + $0x48] sm:$0xff] %v192_v54  ;;  %v144_v0 = vmul.f32 %v355_v7, %v278_v57  ;;  %v281_v2 = vunpack.c.l.bf16 %v296_v53 }
  0x1c   :  { %v178_v62 = vadd.f32 %v162_v55, %v90_v50  ;;  %v163_v63 = vadd.f32 %v361_v10, %v143_v56  ;;  %v193_v4 = vmax.f32 %v177_v58, 0.0  ;;  %v250_v8 = vunpack.c.h.bf16 %v289_v48 }
  0x1d   :  { %v92_v5 = vadd.f32 %v347_v3, %v72_v60  ;;  %v73_v6 = vmul.f32 %v342_v1, %v249_v61  ;;  %v164_v12 = vadd.f32 %v361_v10, %v144_v0  ;;  %v145_v13 = vmul.f32 %v355_v7, %v281_v2 }
  0x1e   :  { %v194_v9 = vmax.f32 %v178_v62, 0.0  ;;  %v179_v11 = vadd.f32 %v163_v63, %v91_v59  ;;  %209 = vst [vmem:[%s522_s6 + $0x50] sm:$0xff] %v193_v4  ;;  %v74_v15 = vmul.f32 %v342_v1, %v250_v8  ;;  %v282_v16 = vunpack.c.h.bf16 %v296_v53 }
  0x1f   :  { %v93_v14 = vadd.f32 %v347_v3, %v73_v6  ;;  %v180_v18 = vadd.f32 %v164_v12, %v92_v5  ;;  %v165_v19 = vadd.f32 %v361_v10, %v145_v13 }
  0x20   :  { %210 = vst [vmem:[%s522_s6 + $0x58] sm:$0xff] %v194_v9  ;;  %v195_v17 = vmax.f32 %v179_v11, 0.0  ;;  %v94_v20 = vadd.f32 %v347_v3, %v74_v15  ;;  %v146_v21 = vmul.f32 %v355_v7, %v282_v16 }
  0x21   :  { %v196_v22 = vmax.f32 %v180_v18, 0.0  ;;  %v181_v23 = vadd.f32 %v165_v19, %v93_v14 }
  0x22   :  { %211 = vst [vmem:[%s522_s6 + $0x60] sm:$0xff] %v195_v17  ;;  %v166_v1 = vadd.f32 %v361_v10, %v146_v21 }
  0x23   :  { %212 = vst [vmem:[%s522_s6 + $0x68] sm:$0xff] %v196_v22  ;;  %v197_v24 = vmax.f32 %v181_v23, 0.0 }
  0x24   :  { %v182_v25 = vadd.f32 %v166_v1, %v94_v20 }
  0x25   :  { %213 = vst [vmem:[%s522_s6 + $0x70] sm:$0xff] %v197_v24 }
  0x26   :  { %v198_v3 = vmax.f32 %v182_v25, 0.0 }
  0x28   :  { %214 = vst [vmem:[%s522_s6 + $0x78] sm:$0xff] %v198_v3 }

// kernel: bottleneck_forward.8
= control target key start
LH: loop header
LB: loop body
LE: loop exit
PB: predicated region body
PF: predicated region fallthrough
CT: control target
= control target key end

     0   :  { %s491_s1 = inlined_call_operand.vmem [shape: bf16[128,128], index: 1, kind: input, shape index: {}]   ;;  %s492_s0 = inlined_call_operand.vmem [shape: f32[128,128], index: 0, kind: input, shape index: {}]   ;;  %s493_s2 = inlined_call_operand.vmem [shape: bf16[128,128], index: 2, kind: output, shape index: {0}]   ;;  %s494_s3 = inlined_call_operand.vmem [shape: f32[8,128], index: 3, kind: output, shape index: {1}]  }
   0x1   :  { %v294_v0 = vld [vmem:[%s491_s1 + $0x38] sm:$0xff]  ;;  %v293_v1 = vld [vmem:[%s491_s1 + $0x30] sm:$0xff]  ;;  %v292_v2 = vld [vmem:[%s491_s1 + $0x28] sm:$0xff] }
   0x2   :  { %101 = vmatpush.bf16.msra.mxu0 %v294_v0  ;;  %342 = vmatpush.bf16.msra.mxu1 %v294_v0  ;;  %v291_v3 = vld [vmem:[%s491_s1 + $0x20] sm:$0xff]  ;;  %v290_v4 = vld [vmem:[%s491_s1 + $0x18] sm:$0xff]  ;;  %v289_v5 = vld [vmem:[%s491_s1 + $0x10] sm:$0xff] }
   0x3   :  { %343 = vmatpush.bf16.msra.mxu2 %v294_v0  ;;  %344 = vmatpush.bf16.msra.mxu3 %v294_v0  ;;  %v288_v6 = vld [vmem:[%s491_s1 + $0x8] sm:$0xff]  ;;  %v287_v7 = vld [vmem:[%s491_s1] sm:$0xff]  ;;  %v15_v20 = vld [vmem:[%s492_s0 + $0x10] sm:$0xff] }
   0x4   :  { %v13_v8 = vld [vmem:[%s492_s0] sm:$0xff]  ;;  %v14_v9 = vld [vmem:[%s492_s0 + $0x8] sm:$0xff]  ;;  %v16_v21 = vld [vmem:[%s492_s0 + $0x18] sm:$0xff] }
   0x5   :  { %v17_v10 = vld [vmem:[%s492_s0 + $0x20] sm:$0xff]  ;;  %v18_v11 = vld [vmem:[%s492_s0 + $0x28] sm:$0xff]  ;;  %v29_v16 = vpack.c.bf16 %v14_v9, %v13_v8  ;;  %v19_v22 = vld [vmem:[%s492_s0 + $0x30] sm:$0xff]  ;;  %v30_v28 = vpack.c.bf16 %v16_v21, %v15_v20 }
   0x6   :  { %102 = vmatpush.bf16.msra.mxu0 %v293_v1  ;;  %345 = vmatpush.bf16.msra.mxu1 %v293_v1  ;;  %v21_v12 = vld [vmem:[%s492_s0 + $0x40] sm:$0xff]  ;;  %v22_v13 = vld [vmem:[%s492_s0 + $0x48] sm:$0xff]  ;;  %v31_v17 = vpack.c.bf16 %v18_v11, %v17_v10  ;;  %v20_v23 = vld [vmem:[%s492_s0 + $0x38] sm:$0xff] }
   0x7   :  { %346 = vmatpush.bf16.msra.mxu2 %v293_v1  ;;  %347 = vmatpush.bf16.msra.mxu3 %v293_v1  ;;  %v25_v14 = vld [vmem:[%s492_s0 + $0x60] sm:$0xff]  ;;  %v26_v15 = vld [vmem:[%s492_s0 + $0x68] sm:$0xff]  ;;  %v33_v18 = vpack.c.bf16 %v22_v13, %v21_v12  ;;  %v23_v24 = vld [vmem:[%s492_s0 + $0x50] sm:$0xff]  ;;  %v32_v29 = vpack.c.bf16 %v20_v23, %v19_v22 }
   0x8   :  { %v35_v19 = vpack.c.bf16 %v26_v15, %v25_v14  ;;  %v24_v25 = vld [vmem:[%s492_s0 + $0x58] sm:$0xff]  ;;  %v27_v26 = vld [vmem:[%s492_s0 + $0x70] sm:$0xff] }
   0x9   :  { %v28_v27 = vld [vmem:[%s492_s0 + $0x78] sm:$0xff]  ;;  %v34_v30 = vpack.c.bf16 %v24_v25, %v23_v24 }
   0xa   :  { %103 = vmatpush.bf16.msra.mxu0 %v292_v2  ;;  %348 = vmatpush.bf16.msra.mxu1 %v292_v2  ;;  %v36_v31 = vpack.c.bf16 %v28_v27, %v27_v26 }
   0xb   :  { %349 = vmatpush.bf16.msra.mxu2 %v292_v2  ;;  %350 = vmatpush.bf16.msra.mxu3 %v292_v2 }
   0xe   :  { %104 = vmatpush.bf16.msra.mxu0 %v291_v3  ;;  %351 = vmatpush.bf16.msra.mxu1 %v291_v3 }
   0xf   :  { %352 = vmatpush.bf16.msra.mxu2 %v291_v3  ;;  %353 = vmatpush.bf16.msra.mxu3 %v291_v3 }
  0x12   :  { %105 = vmatpush.bf16.msra.mxu0 %v290_v4  ;;  %354 = vmatpush.bf16.msra.mxu1 %v290_v4 }
  0x13   :  { %355 = vmatpush.bf16.msra.mxu2 %v290_v4  ;;  %356 = vmatpush.bf16.msra.mxu3 %v290_v4 }
  0x16   :  { %106 = vmatpush.bf16.msra.mxu0 %v289_v5  ;;  %357 = vmatpush.bf16.msra.mxu1 %v289_v5 }
  0x17   :  { %358 = vmatpush.bf16.msra.mxu2 %v289_v5  ;;  %359 = vmatpush.bf16.msra.mxu3 %v289_v5 }
  0x1a   :  { %107 = vmatpush.bf16.msra.mxu0 %v288_v6  ;;  %360 = vmatpush.bf16.msra.mxu1 %v288_v6 }
  0x1b   :  { %361 = vmatpush.bf16.msra.mxu2 %v288_v6  ;;  %362 = vmatpush.bf16.msra.mxu3 %v288_v6 }
  0x1e   :  { %108 = vmatpush.bf16.msra.mxu0 %v287_v7  ;;  %363 = vmatpush.bf16.msra.mxu1 %v287_v7 }
  0x1f   :  { %364 = vmatpush.bf16.msra.mxu2 %v287_v7  ;;  %365 = vmatpush.bf16.msra.mxu3 %v287_v7 }
  0x21   :  { %109 = vmatmul.bf16.vlgmr.msra.gmra.mxu0 %v29_v16  ;;  %119 = vmatmul.bf16.vlgmr.msra.gmra.mxu1 %v31_v17 }
  0x22   :  { %129 = vmatmul.bf16.vlgmr.msra.gmra.mxu2 %v33_v18  ;;  %139 = vmatmul.bf16.vlgmr.msra.gmra.mxu3 %v35_v19 }
  0x31   :  { %114 = vmatmul.bf16.gmra.mxu0 %v30_v28  ;;  %124 = vmatmul.bf16.gmra.mxu1 %v32_v29 }
  0x32   :  { %134 = vmatmul.bf16.gmra.mxu2 %v34_v30  ;;  %144 = vmatmul.bf16.gmra.mxu3 %v36_v31 }
  0x9e   :  { %v110_v32 = vpop.f32.mrf.mxu0  ;;  %v120_v33 = vpop.f32.mrf.mxu1 }
  0x9f   :  { %v203_v47 = vmul.f32 %v110_v32, %v110_v32  ;;  %v207_v61 = vmul.f32 %v120_v33, %v120_v33 }
  0xa5   :  { %v130_v34 = vpop.f32.mrf.mxu2  ;;  %v458_v35 = vpop.f32.mrf.mxu3 }
  0xa6   :  { %v112_v36 = vpop.f32.mrf.mxu0  ;;  %v122_v37 = vpop.f32.mrf.mxu1  ;;  %v211_v13 = vmul.f32 %v130_v34, %v130_v34  ;;  %v215_v25 = vmul.f32 %v458_v35, %v458_v35 }
  0xa7   :  { %v298_v38 = vpack.c.bf16 %v112_v36, %v110_v32  ;;  %v308_v39 = vpack.c.bf16 %v122_v37, %v120_v33  ;;  %v204_v46 = vmul.f32 %v112_v36, %v112_v36  ;;  %v182_v49 = vadd.f32 %v112_v36, %v110_v32 }
  0xa8   :  { %v208_v0 = vmul.f32 %v122_v37, %v122_v37 }
  0xa9   :  { %299 = vst [vmem:[%s493_s2] sm:$0xff] %v298_v38   ;;  %v219_v50 = vadd.f32 %v204_v46, %v203_v47 }
  0xaa   :  { %336 = vst [vmem:[%s493_s2 + $0x10] sm:$0xff] %v308_v39  }
  0xad   :  { %v132_v40 = vpop.f32.mrf.mxu2  ;;  %v142_v41 = vpop.f32.mrf.mxu3 }
  0xae   :  { %v115_v42 = vpop.f32.mrf.mxu0  ;;  %v125_v43 = vpop.f32.mrf.mxu1  ;;  %v318_v44 = vpack.c.bf16 %v132_v40, %v130_v34  ;;  %v328_v45 = vpack.c.bf16 %v142_v41, %v458_v35  ;;  %v212_v16 = vmul.f32 %v132_v40, %v132_v40  ;;  %v216_v28 = vmul.f32 %v142_v41, %v142_v41 }
  0xaf   :  { %v205_v48 = vmul.f32 %v115_v42, %v115_v42  ;;  %v183_v51 = vadd.f32 %v182_v49, %v115_v42  ;;  %v209_v3 = vmul.f32 %v125_v43, %v125_v43 }
  0xb0   :  { %338 = vst [vmem:[%s493_s2 + $0x20] sm:$0xff] %v318_v44  }
  0xb1   :  { %340 = vst [vmem:[%s493_s2 + $0x30] sm:$0xff] %v328_v45   ;;  %v220_v54 = vadd.f32 %v219_v50, %v205_v48 }
  0xb5   :  { %v135_v52 = vpop.f32.mrf.mxu2  ;;  %v145_v53 = vpop.f32.mrf.mxu3 }
  0xb6   :  { %v117_v55 = vpop.f32.mrf.mxu0  ;;  %v127_v56 = vpop.f32.mrf.mxu1  ;;  %v213_v20 = vmul.f32 %v135_v52, %v135_v52  ;;  %v217_v32 = vmul.f32 %v145_v53, %v145_v53 }
  0xb7   :  { %v303_v57 = vpack.c.bf16 %v117_v55, %v115_v42  ;;  %v184_v58 = vadd.f32 %v183_v51, %v117_v55  ;;  %v206_v59 = vmul.f32 %v117_v55, %v117_v55  ;;  %v313_v60 = vpack.c.bf16 %v127_v56, %v125_v43 }
  0xb8   :  { %v210_v11 = vmul.f32 %v127_v56, %v127_v56 }
  0xb9   :  { %335 = vst [vmem:[%s493_s2 + $0x8] sm:$0xff] %v303_v57   ;;  %v185_v62 = vadd.f32 %v184_v58, %v120_v33  ;;  %v221_v63 = vadd.f32 %v220_v54, %v206_v59 }
  0xba   :  { %337 = vst [vmem:[%s493_s2 + $0x18] sm:$0xff] %v313_v60  }
  0xbb   :  { %v222_v1 = vadd.f32 %v221_v63, %v207_v61  ;;  %v186_v2 = vadd.f32 %v185_v62, %v122_v37 }
  0xbd   :  { %v187_v4 = vadd.f32 %v186_v2, %v125_v43  ;;  %v223_v5 = vadd.f32 %v222_v1, %v208_v0  ;;  %v137_v6 = vpop.f32.mrf.mxu2  ;;  %v147_v7 = vpop.f32.mrf.mxu3  ;;  %v240_v43 = vlaneseq }
  0xbe   :  { %v323_v8 = vpack.c.bf16 %v137_v6, %v135_v52  ;;  %v333_v9 = vpack.c.bf16 %v147_v7, %v145_v53  ;;  %v214_v24 = vmul.f32 %v137_v6, %v137_v6  ;;  %v218_v37 = vmul.f32 %v147_v7, %v147_v7 }
  0xbf   :  { %v188_v10 = vadd.f32 %v187_v4, %v127_v56  ;;  %v224_v12 = vadd.f32 %v223_v5, %v209_v3 }
  0xc0   :  { %339 = vst [vmem:[%s493_s2 + $0x28] sm:$0xff] %v323_v8  }
  0xc1   :  { %v189_v14 = vadd.f32 %v188_v10, %v130_v34  ;;  %v225_v15 = vadd.f32 %v224_v12, %v210_v11  ;;  %341 = vst [vmem:[%s493_s2 + $0x38] sm:$0xff] %v333_v9  }
  0xc3   :  { %v226_v17 = vadd.f32 %v225_v15, %v211_v13  ;;  %v190_v18 = vadd.f32 %v189_v14, %v132_v40 }
  0xc5   :  { %v191_v19 = vadd.f32 %v190_v18, %v135_v52  ;;  %v227_v21 = vadd.f32 %v226_v17, %v212_v16 }
  0xc7   :  { %v228_v22 = vadd.f32 %v227_v21, %v213_v20  ;;  %v192_v23 = vadd.f32 %v191_v19, %v137_v6 }
  0xc9   :  { %v193_v26 = vadd.f32 %v192_v23, %v458_v35  ;;  %v229_v27 = vadd.f32 %v228_v22, %v214_v24  ;;  %v241_v35 = vshrl.u32 %v240_v43, 7 }
  0xcb   :  { %v230_v29 = vadd.f32 %v229_v27, %v215_v25  ;;  %v194_v30 = vadd.f32 %v193_v26, %v142_v41  ;;  %vm243_vm0 = vcmp.eq.s32.totalorder %v241_v35, 1  ;;  %vm242_vm1 = vcmp.eq.s32.totalorder %v241_v35, 0 }
  0xcd   :  { %v195_v31 = vadd.f32 %v194_v30, %v145_v53  ;;  %v231_v33 = vadd.f32 %v230_v29, %v216_v28 }
  0xcf   :  { %v232_v34 = vadd.f32 %v231_v33, %v217_v32  ;;  %v196_v36 = vadd.f32 %v195_v31, %v147_v7 }
  0xd1   :  { %v197_v38 = vrot.slane %v196_v36, 4  ;;  %v233_v39 = vadd.f32 %v232_v34, %v218_v37 }
  0xd3   :  { %v198_v40 = vadd.f32 %v197_v38, %v196_v36  ;;  %v234_v42 = vrot.slane %v233_v39, 4 }
  0xd5   :  { %v199_v44 = vrot.slane %v198_v40, 2  ;;  %v235_v45 = vadd.f32 %v234_v42, %v233_v39 }
  0xd7   :  { %v200_v46 = vadd.f32 %v199_v44, %v198_v40  ;;  %v236_v47 = vrot.slane %v235_v45, 2 }
  0xd9   :  { %v237_v48 = vadd.f32 %v236_v47, %v235_v45  ;;  %v201_v49 = vrot.slane %v200_v46, 1 }
  0xdb   :  { %v238_v50 = vrot.slane %v237_v48, 1  ;;  %v202_v51 = vadd.f32 %v201_v49, %v200_v46 }
  0xdd   :  { %v239_v41 = vadd.f32 %v238_v50, %v237_v48 }
  0xdf   :  { %v244_v52 = vsel %vm243_vm0, %v239_v41, 0.0 }
  0xe0   :  { %v245_v53 = vsel %vm242_vm1, %v202_v51, %v244_v52 }
  0xe1   :  { %246 = vst [vmem:[%s494_s3] sm:$0xff] %v245_v53 }

// kernel: bottleneck_forward.6
= control target key start
LH: loop header
LB: loop body
LE: loop exit
PB: predicated region body
PF: predicated region fallthrough
CT: control target
= control target key end

     0   :  { %s3846_s12 = smov 0   ;;  %s3848_s13 = smov 0   ;;  %s4561_s0 = inlined_call_operand.vmem [shape: bf16[2,9,9,512], index: 0, kind: input, shape index: {}]   ;;  %s4562_s1 = inlined_call_operand.vmem [shape: bf16[4,512,128], index: 1, kind: input, shape index: {}]   ;;  %s4563_s2 = inlined_call_operand.vmem [shape: bf16[2,64,128], index: 2, kind: output, shape index: {0}]   ;;  %s4564_s3 = inlined_call_operand.vmem [shape: f32[2,8,128], index: 3, kind: output, shape index: {1}]  }
   0x1   :  { %s3850_s14 = smov 0  }
   0x2 LB: > { %s26_s15 = sadd.s32 1, %s3820_s13  ;;  %p2706_p0 = scmp.ge.s32.totalorder %s3824_s14, 1  ;;  %s3824_s14 = sphi %s3850_s14, %s14_s14   ;;  %s3820_s13 = sphi %s3848_s13, %s4568_s13   ;;  %s3816_s12 = sphi %s3846_s12, %s4567_s12  }
   0x3   : > { %p28_p1 = scmp.ge.s32.totalorder %s26_s15, 2  ;;  %p156_p2 = scmp.lt.s32.totalorder %s3824_s14, 3 }
   0x5   : > { %s4570_s15 = smov (%p28_p1, %s26_s15), 0  ;;  %p157_p3 = pnand %p2706_p0, %p156_p2 }
   0x6   : > { %p186_p4 = scmp.lt.s32.totalorder (!%p157_p3), %s3816_s12, 1 }
   0x7   : > { %160 = sbr.rel (%p157_p3) target bundleno = 451 (0x1c3), region = 28 }
   0xc   : > { %v3649_v0 = vld [vmem:[%s4562_s1 + $0x138] sm:$0xff]  ;;  %v3648_v4 = vld [vmem:[%s4562_s1 + $0x130] sm:$0xff]  ;;  %s4572_s12 = smov (!%p186_p4, %s3816_s12), 1  ;;  %v3647_v8 = vld [vmem:[%s4562_s1 + $0x128] sm:$0xff]  ;;  %vm304_vm0 = vsmask.f32 3328 }
   0xd   : > { %v3657_v1 = vld [vmem:[%s4562_s1 + $0x178] sm:$0xff]  ;;  %852 = vmatpush.bf16.msra.mxu0 %v3649_v0  ;;  %v3656_v5 = vld [vmem:[%s4562_s1 + $0x170] sm:$0xff]  ;;  %s3777_s5 = smul.u32 288, %s4572_s12  ;;  %v3655_v9 = vld [vmem:[%s4562_s1 + $0x168] sm:$0xff]  ;;  %vm305_vm1 = vsmask.f32 7440 }
   0xe   : > { %v3665_v2 = vld [vmem:[%s4562_s1 + $0x1b8] sm:$0xff]  ;;  %881 = vmatpush.bf16.msra.mxu1 %v3657_v1  ;;  %v3664_v6 = vld [vmem:[%s4562_s1 + $0x1b0] sm:$0xff]  ;;  %v3663_v10 = vld [vmem:[%s4562_s1 + $0x1a8] sm:$0xff]  ;;  %s2710_s9 = sshll.u32 %s4572_s12, 3 }
   0xf   : > { %v3673_v3 = vld [vmem:[%s4562_s1 + $0x1f8] sm:$0xff]  ;;  %910 = vmatpush.bf16.msra.mxu2 %v3665_v2  ;;  %v3672_v7 = vld [vmem:[%s4562_s1 + $0x1f0] sm:$0xff]  ;;  %v3671_v11 = vld [vmem:[%s4562_s1 + $0x1e8] sm:$0xff]  ;;  %s3906_s20 = scalar_lea.vmem %s4561_s0, %s3777_s5  ;;  %s202_s16 = scalar_lea.vmem %s4564_s3, %s2710_s9 }
  0x10   : > { %939 = vmatpush.bf16.msra.mxu3 %v3673_v3  ;;  %v3646_v12 = vld [vmem:[%s4562_s1 + $0x120] sm:$0xff]  ;;  %v288_v18 = vld [vmem:[%s3906_s20 + $0x10] sm:$0x11]  ;;  %v209_v25 = vld [vmem:[%s3906_s20 + $0x8] sm:$0xff] }
  0x11   : > { %853 = vmatpush.bf16.msra.mxu0 %v3648_v4  ;;  %v3654_v13 = vld [vmem:[%s4562_s1 + $0x160] sm:$0xff]  ;;  %v290_v19 = vld [vmem:[%s3906_s20 + $0x30] sm:$0x11]  ;;  %v317_v22 = vshll.u32 %v288_v18, 16  ;;  %v3645_v26 = vld [vmem:[%s4562_s1 + $0x118] sm:$0xff]  ;;  %v322_v39 = vshrl.u32 %v209_v25, 16 }
  0x12   : > { %882 = vmatpush.bf16.msra.mxu1 %v3656_v5  ;;  %v3662_v14 = vld [vmem:[%s4562_s1 + $0x1a0] sm:$0xff]  ;;  %v345_v28 = vshll.u32 %v290_v19, 16  ;;  %v211_v29 = vld [vmem:[%s3906_s20 + $0x28] sm:$0xff]  ;;  %v289_v30 = vld [vmem:[%s3906_s20 + $0x18] sm:$0x11]  ;;  %v325_v40 = vshll.u32 %v209_v25, 16 }
  0x13   : > { %911 = vmatpush.bf16.msra.mxu2 %v3664_v6  ;;  %v3670_v15 = vld [vmem:[%s4562_s1 + $0x1e0] sm:$0xff]  ;;  %v3653_v31 = vld [vmem:[%s4562_s1 + $0x158] sm:$0xff]  ;;  %v319_v38 = vrot.slane %v317_v22, 5  ;;  %v331_v41 = vshll.u32 %v289_v30, 16  ;;  %v350_v44 = vshrl.u32 %v211_v29, 16  ;;  %v353_v45 = vshll.u32 %v211_v29, 16  ;;  %vm3942_vm2 = vmor %vm304_vm0, %vm305_vm1 }
  0x14   : > { %940 = vmatpush.bf16.msra.mxu3 %v3672_v7  ;;  %v208_v16 = vld [vmem:[%s3906_s20] sm:$0xff]  ;;  %v291_v35 = vld [vmem:[%s3906_s20 + $0x38] sm:$0x11]  ;;  %v347_v47 = vrot.slane %v345_v28, 5  ;;  %v324_v48 = vrot.slane %v322_v39, 4  ;;  %v327_v49 = vrot.slane %v325_v40, 5 }
  0x15   : > { %854 = vmatpush.bf16.msra.mxu0 %v3647_v8  ;;  %v210_v17 = vld [vmem:[%s3906_s20 + $0x20] sm:$0xff]  ;;  %v308_v20 = vshrl.u32 %v208_v16, 16  ;;  %v311_v21 = vshll.u32 %v208_v16, 16  ;;  %v3661_v36 = vld [vmem:[%s4562_s1 + $0x198] sm:$0xff]  ;;  %v359_v50 = vshll.u32 %v291_v35, 16  ;;  %v3644_v52 = vld [vmem:[%s4562_s1 + $0x110] sm:$0xff] }
  0x16   : > { %883 = vmatpush.bf16.msra.mxu1 %v3655_v9  ;;  %v336_v23 = vshrl.u32 %v210_v17, 16  ;;  %v339_v24 = vshll.u32 %v210_v17, 16  ;;  %v3669_v37 = vld [vmem:[%s4562_s1 + $0x1d8] sm:$0xff]  ;;  %v212_v51 = vld [vmem:[%s3906_s20 + $0x40] sm:$0xff]  ;;  %v3652_v53 = vld [vmem:[%s4562_s1 + $0x150] sm:$0xff]  ;;  %v352_v56 = vrot.slane %v350_v44, 4  ;;  %v328_v60 = vor.u32 %v327_v49, %v324_v48 }
  0x17   : > { %912 = vmatpush.bf16.msra.mxu2 %v3663_v10  ;;  %v310_v27 = vrot.slane %v308_v20, 4  ;;  %v313_v32 = vrot.slane %v311_v21, 5  ;;  %v355_v57 = vrot.slane %v353_v45, 5  ;;  %v3660_v58 = vld [vmem:[%s4562_s1 + $0x190] sm:$0xff]  ;;  %v333_v61 = vrot.slane %v331_v41, 5  ;;  %v214_v2 = vld [vmem:[%s3906_s20 + $0x60] sm:$0xff] }
  0x18   : > { %941 = vmatpush.bf16.msra.mxu3 %v3671_v11  ;;  %v338_v33 = vrot.slane %v336_v23, 4  ;;  %v341_v34 = vrot.slane %v339_v24, 5  ;;  %v3668_v59 = vld [vmem:[%s4562_s1 + $0x1d0] sm:$0xff]  ;;  %v364_v62 = vshrl.u32 %v212_v51, 16  ;;  %v361_v1 = vrot.slane %v359_v50, 5  ;;  %v3643_v5 = vld [vmem:[%s4562_s1 + $0x108] sm:$0xff] }
  0x19   : > { %855 = vmatpush.bf16.msra.mxu0 %v3646_v12  ;;  %v314_v42 = vor.u32 %v313_v32, %v310_v27  ;;  %v356_v0 = vor.u32 %v355_v57, %v352_v56  ;;  %v367_v3 = vshll.u32 %v212_v51, 16  ;;  %v3651_v6 = vld [vmem:[%s4562_s1 + $0x148] sm:$0xff]  ;;  %v329_v7 = vrot.slane %v328_v60, 4  ;;  %v292_v18 = vld [vmem:[%s3906_s20 + $0x50] sm:$0x11]  ;;  %v3650_v27 = vld [vmem:[%s4562_s1 + $0x140] sm:$0xff] }
  0x1a   : > { %884 = vmatpush.bf16.msra.mxu1 %v3654_v13  ;;  %v342_v43 = vor.u32 %v341_v34, %v338_v33  ;;  %v3659_v9 = vld [vmem:[%s4562_s1 + $0x188] sm:$0xff]  ;;  %v366_v12 = vrot.slane %v364_v62, 4  ;;  %v395_v19 = vshll.u32 %v214_v2, 16  ;;  %v294_v25 = vld [vmem:[%s3906_s20 + $0x70] sm:$0x11]  ;;  %v3658_v28 = vld [vmem:[%s4562_s1 + $0x180] sm:$0xff] }
  0x1b   : > { %913 = vmatpush.bf16.msra.mxu2 %v3662_v14  ;;  %v315_v54 = vrot.slane %v314_v42, 4  ;;  %v357_v8 = vrot.slane %v356_v0, 4  ;;  %v3667_v10 = vld [vmem:[%s4562_s1 + $0x1c8] sm:$0xff]  ;;  %v369_v13 = vrot.slane %v367_v3, 5  ;;  %v392_v14 = vshrl.u32 %v214_v2, 16  ;;  %v3666_v33 = vld [vmem:[%s4562_s1 + $0x1c0] sm:$0xff] }
  0x1c   : > { %942 = vmatpush.bf16.msra.mxu3 %v3670_v15  ;;  %v343_v55 = vrot.slane %v342_v43, 4  ;;  %v334_v16 = vsel %vm3942_vm2, %v329_v7, %v333_v61  ;;  %v213_v20 = vld [vmem:[%s3906_s20 + $0x48] sm:$0xff]  ;;  %v397_v32 = vrot.slane %v395_v19, 5  ;;  %v373_v35 = vshll.u32 %v292_v18, 16  ;;  %v3633_v39 = vld [vmem:[%s4562_s1 + $0xb8] sm:$0xff]  ;;  %v3632_v60 = vld [vmem:[%s4562_s1 + $0xb0] sm:$0xff] }
  0x1d   : > { %856 = vmatpush.bf16.msra.mxu0 %v3645_v26  ;;  %v320_v63 = vsel %vm3942_vm2, %v315_v54, %v319_v38  ;;  %v362_v17 = vsel %vm3942_vm2, %v357_v8, %v361_v1  ;;  %v598_v23 = vunpack.c.l.b16 %v334_v16  ;;  %v3642_v26 = vld [vmem:[%s4562_s1 + $0x100] sm:$0xff]  ;;  %v599_v29 = vunpack.c.h.b16 %v334_v16  ;;  %v3641_v40 = vld [vmem:[%s4562_s1 + $0xf8] sm:$0xff]  ;;  %v3640_v61 = vld [vmem:[%s4562_s1 + $0xf0] sm:$0xff] }
  0x1e   : > { %885 = vmatpush.bf16.msra.mxu1 %v3653_v31  ;;  %v348_v4 = vsel %vm3942_vm2, %v343_v55, %v347_v47  ;;  %v596_v11 = vunpack.c.l.b16 %v320_v63  ;;  %v597_v21 = vunpack.c.h.b16 %v320_v63  ;;  %v602_v24 = vunpack.c.l.b16 %v362_v17  ;;  %v295_v43 = vld [vmem:[%s3906_s20 + $0x78] sm:$0x11]  ;;  %v216_v3 = vld [vmem:[%s3906_s20 + $0x80] sm:$0xff]  ;;  %v3616_v7 = vld [vmem:[%s4562_s1 + $0x30] sm:$0xff] }
  0x1f   : > { %914 = vmatpush.bf16.msra.mxu2 %v3661_v36  ;;  %v600_v15 = vunpack.c.l.b16 %v348_v4  ;;  %v601_v22 = vunpack.c.h.b16 %v348_v4  ;;  %v603_v30 = vunpack.c.h.b16 %v362_v17  ;;  %v394_v31 = vrot.slane %v392_v14, 4  ;;  %v215_v36 = vld [vmem:[%s3906_s20 + $0x68] sm:$0xff]  ;;  %v3617_v54 = vld [vmem:[%s4562_s1 + $0x38] sm:$0xff]  ;;  %v3624_v8 = vld [vmem:[%s4562_s1 + $0x70] sm:$0xff] }
  0x20   : > { %943 = vmatpush.bf16.msra.mxu3 %v3669_v37  ;;  %v370_v34 = vor.u32 %v369_v13, %v366_v12  ;;  %v293_v37 = vld [vmem:[%s3906_s20 + $0x58] sm:$0x11]  ;;  %v378_v38 = vshrl.u32 %v213_v20, 16  ;;  %v401_v42 = vshll.u32 %v294_v25, 16  ;;  %v381_v44 = vshll.u32 %v213_v20, 16  ;;  %v217_v12 = vld [vmem:[%s3906_s20 + $0x88] sm:$0xff] }
  0x21   : > { %857 = vmatpush.bf16.msra.mxu0 %v3644_v52  ;;  %v398_v41 = vor.u32 %v397_v32, %v394_v31  ;;  %v628_v45 = vpack.c.b16 %v600_v15, %v596_v11  ;;  %v629_v47 = vpack.c.b16 %v601_v22, %v597_v21  ;;  %v630_v48 = vpack.c.b16 %v602_v24, %v598_v23  ;;  %v3625_v55 = vld [vmem:[%s4562_s1 + $0x78] sm:$0xff]  ;;  %v3631_v14 = vld [vmem:[%s4562_s1 + $0xa8] sm:$0xff]  ;;  %v3630_v32 = vld [vmem:[%s4562_s1 + $0xa0] sm:$0xff] }
  0x22   : > { %886 = vmatpush.bf16.msra.mxu1 %v3652_v53  ;;  %v380_v49 = vrot.slane %v378_v38, 4  ;;  %v631_v50 = vpack.c.b16 %v603_v30, %v599_v29  ;;  %v383_v51 = vrot.slane %v381_v44, 5  ;;  %v387_v52 = vshll.u32 %v293_v37, 16  ;;  %v3639_v15 = vld [vmem:[%s4562_s1 + $0xe8] sm:$0xff]  ;;  %v298_v44 = vld [vmem:[%s3906_s20 + $0xb0] sm:$0x11] }
  0x23   : > { %915 = vmatpush.bf16.msra.mxu2 %v3660_v58  ;;  %v406_v53 = vshrl.u32 %v215_v36, 16  ;;  %v371_v56 = vrot.slane %v370_v34, 4  ;;  %v375_v57 = vrot.slane %v373_v35, 5  ;;  %v409_v58 = vshll.u32 %v215_v36, 16  ;;  %v219_v21 = vld [vmem:[%s3906_s20 + $0xa8] sm:$0xff] }
  0x24   : > { %944 = vmatpush.bf16.msra.mxu3 %v3668_v59  ;;  %v415_v59 = vshll.u32 %v295_v43, 16  ;;  %v399_v62 = vrot.slane %v398_v41, 4  ;;  %v403_v63 = vrot.slane %v401_v42, 5  ;;  %v384_v0 = vor.u32 %v383_v51, %v380_v49  ;;  %v3623_v29 = vld [vmem:[%s4562_s1 + $0x68] sm:$0xff]  ;;  %v3622_v49 = vld [vmem:[%s4562_s1 + $0x60] sm:$0xff] }
  0x25   : > { %858 = vmatpush.bf16.msra.mxu0 %v3643_v5  ;;  %v408_v1 = vrot.slane %v406_v53, 4  ;;  %v411_v2 = vrot.slane %v409_v58, 5  ;;  %v389_v5 = vrot.slane %v387_v52, 5  ;;  %v420_v16 = vshrl.u32 %v216_v3, 16  ;;  %v3637_v58 = vld [vmem:[%s4562_s1 + $0xd8] sm:$0xff] }
  0x26   : > { %887 = vmatpush.bf16.msra.mxu1 %v3651_v6  ;;  %v385_v4 = vrot.slane %v384_v0, 4  ;;  %v218_v6 = vld [vmem:[%s3906_s20 + $0xa0] sm:$0xff]  ;;  %v417_v11 = vrot.slane %v415_v59, 5  ;;  %v404_v13 = vsel %vm3942_vm2, %v399_v62, %v403_v63  ;;  %v423_v17 = vshll.u32 %v216_v3, 16 }
  0x27   : > { %916 = vmatpush.bf16.msra.mxu2 %v3659_v9  ;;  %v376_v9 = vsel %vm3942_vm2, %v371_v56, %v375_v57  ;;  %v448_v19 = vshrl.u32 %v218_v6, 16  ;;  %v451_v20 = vshll.u32 %v218_v6, 16  ;;  %v434_v24 = vshrl.u32 %v217_v12, 16  ;;  %v3629_v57 = vld [vmem:[%s4562_s1 + $0x98] sm:$0xff] }
  0x28   : > { %945 = vmatpush.bf16.msra.mxu3 %v3667_v10  ;;  %v412_v10 = vor.u32 %v411_v2, %v408_v1  ;;  %v604_v22 = vunpack.c.l.b16 %v376_v9  ;;  %v390_v23 = vsel %vm3942_vm2, %v385_v4, %v389_v5  ;;  %v608_v25 = vunpack.c.l.b16 %v404_v13  ;;  %v3613_v4 = vld [vmem:[%s4562_s1 + $0x18] sm:$0xff] }
  0x29   : > { %859 = vmatpush.bf16.msra.mxu0 %v3642_v26  ;;  %v605_v26 = vunpack.c.h.b16 %v376_v9  ;;  %v437_v30 = vshll.u32 %v217_v12, 16  ;;  %v609_v31 = vunpack.c.h.b16 %v404_v13  ;;  %v422_v34 = vrot.slane %v420_v16, 4  ;;  %v3621_v5 = vld [vmem:[%s4562_s1 + $0x58] sm:$0xff]  ;;  %v220_v16 = vld [vmem:[%s3906_s20 + $0xc0] sm:$0xff] }
  0x2a   : > { %888 = vmatpush.bf16.msra.mxu1 %v3650_v27  ;;  %v413_v18 = vrot.slane %v412_v10, 4  ;;  %v425_v35 = vrot.slane %v423_v17, 5  ;;  %v462_v36 = vshrl.u32 %v219_v21, 16  ;;  %v606_v37 = vunpack.c.l.b16 %v390_v23 }
  0x2b   : > { %917 = vmatpush.bf16.msra.mxu2 %v3658_v28  ;;  %v3615_v28 = vld [vmem:[%s4562_s1 + $0x28] sm:$0xff]  ;;  %v607_v38 = vunpack.c.h.b16 %v390_v23  ;;  %v453_v41 = vrot.slane %v451_v20, 5  ;;  %v465_v51 = vshll.u32 %v219_v21, 16  ;;  %v632_v52 = vpack.c.b16 %v608_v25, %v604_v22  ;;  %v222_v20 = vld [vmem:[%s3906_s20 + $0xe0] sm:$0xff] }
  0x2c   : > { %946 = vmatpush.bf16.msra.mxu3 %v3666_v33  ;;  %860 = vmatmul.bf16.vlgmr.msra.gmra.mxu0 %v628_v45  ;;  %v418_v27 = vsel %vm3942_vm2, %v413_v18, %v417_v11  ;;  %v3638_v33 = vld [vmem:[%s4562_s1 + $0xe0] sm:$0xff]  ;;  %v436_v45 = vrot.slane %v434_v24, 4  ;;  %v633_v53 = vpack.c.b16 %v609_v31, %v605_v26  ;;  %v464_v56 = vrot.slane %v462_v36, 4  ;;  %v221_v21 = vld [vmem:[%s3906_s20 + $0xc8] sm:$0xff] }
  0x2d   : > { %889 = vmatmul.bf16.vlgmr.msra.gmra.mxu1 %v629_v47  ;;  %1240 = vmatpush.bf16.msrb.mxu0 %v3617_v54  ;;  %v610_v42 = vunpack.c.l.b16 %v418_v27  ;;  %v611_v43 = vunpack.c.h.b16 %v418_v27  ;;  %v439_v47 = vrot.slane %v437_v30, 5  ;;  %v426_v59 = vor.u32 %v425_v35, %v422_v34  ;;  %v223_v22 = vld [vmem:[%s3906_s20 + $0xe8] sm:$0xff] }
  0x2e   : > { %918 = vmatmul.bf16.vlgmr.msra.gmra.mxu2 %v630_v48  ;;  %1269 = vmatpush.bf16.msrb.mxu1 %v3625_v55  ;;  %v3614_v48 = vld [vmem:[%s4562_s1 + $0x20] sm:$0xff]  ;;  %v299_v55 = vld [vmem:[%s3906_s20 + $0xb8] sm:$0x11]  ;;  %v467_v62 = vrot.slane %v465_v51, 5  ;;  %v3627_v23 = vld [vmem:[%s4562_s1 + $0x88] sm:$0xff]  ;;  %v476_v27 = vshrl.u32 %v220_v16, 16 }
  0x2f   : > { %1298 = vmatpush.bf16.msrb.mxu2 %v3633_v39  ;;  %947 = vmatmul.bf16.vlgmr.msra.gmra.mxu3 %v631_v50  ;;  %v296_v39 = vld [vmem:[%s3906_s20 + $0x90] sm:$0x11]  ;;  %v297_v50 = vld [vmem:[%s3906_s20 + $0x98] sm:$0x11]  ;;  %v634_v63 = vpack.c.b16 %v610_v42, %v606_v37  ;;  %v635_v0 = vpack.c.b16 %v611_v43, %v607_v38  ;;  %v440_v1 = vor.u32 %v439_v47, %v436_v45  ;;  %v471_v3 = vshll.u32 %v299_v55, 16  ;;  %v3635_v24 = vld [vmem:[%s4562_s1 + $0xc8] sm:$0xff] }
  0x30   : > { %1327 = vmatpush.bf16.msrb.mxu3 %v3641_v40  ;;  %v450_v40 = vrot.slane %v448_v19, 4  ;;  %v429_v54 = vshll.u32 %v296_v39, 16  ;;  %v443_v2 = vshll.u32 %v297_v50, 16  ;;  %v468_v6 = vor.u32 %v467_v62, %v464_v56  ;;  %v3620_v19 = vld [vmem:[%s4562_s1 + $0x50] sm:$0xff]  ;;  %v3611_v37 = vld [vmem:[%s4562_s1 + $0x8] sm:$0xff]  ;;  %v3626_v43 = vld [vmem:[%s4562_s1 + $0x80] sm:$0xff] }
  0x31   : > { %1241 = vmatpush.bf16.msrb.mxu0 %v3616_v7  ;;  %v3628_v7 = vld [vmem:[%s4562_s1 + $0x90] sm:$0xff]  ;;  %v427_v9 = vrot.slane %v426_v59, 4  ;;  %v441_v13 = vrot.slane %v440_v1, 4  ;;  %v473_v18 = vrot.slane %v471_v3, 5  ;;  %v504_v30 = vshrl.u32 %v222_v20, 16  ;;  %v3619_v38 = vld [vmem:[%s4562_s1 + $0x48] sm:$0xff] }
  0x32   : > { %1270 = vmatpush.bf16.msrb.mxu1 %v3624_v8  ;;  %v3636_v8 = vld [vmem:[%s4562_s1 + $0xd0] sm:$0xff]  ;;  %v431_v10 = vrot.slane %v429_v54, 5  ;;  %v469_v17 = vrot.slane %v468_v6, 4  ;;  %v507_v31 = vshll.u32 %v222_v20, 16  ;;  %v493_v34 = vshll.u32 %v221_v21, 16 }
  0x33   : > { %1299 = vmatpush.bf16.msrb.mxu2 %v3632_v60  ;;  %v454_v60 = vor.u32 %v453_v41, %v450_v40  ;;  %v518_v35 = vshrl.u32 %v223_v22, 16  ;;  %v521_v36 = vshll.u32 %v223_v22, 16  ;;  %v506_v54 = vrot.slane %v504_v30, 4  ;;  %v301_v62 = vld [vmem:[%s3906_s20 + $0xd8] sm:$0x11] }
  0x34   : > { %1328 = vmatpush.bf16.msrb.mxu3 %v3640_v61  ;;  %v457_v61 = vshll.u32 %v298_v44, 16  ;;  %v432_v25 = vsel %vm3942_vm2, %v427_v9, %v431_v10  ;;  %v3634_v44 = vld [vmem:[%s4562_s1 + $0xc0] sm:$0xff]  ;;  %v509_v55 = vrot.slane %v507_v31, 5  ;;  %v499_v9 = vshll.u32 %v301_v62, 16 }
  0x35   : > { %1242 = vmatpush.bf16.msrb.mxu0 %v3615_v28  ;;  %v455_v11 = vrot.slane %v454_v60, 4  ;;  %v479_v28 = vshll.u32 %v220_v16, 16  ;;  %v612_v39 = vunpack.c.l.b16 %v432_v25  ;;  %v613_v41 = vunpack.c.h.b16 %v432_v25  ;;  %v3610_v60 = vld [vmem:[%s4562_s1] sm:$0xff]  ;;  %v3713_v16 = vld [vmem:[%s4562_s1 + $0x2b8] sm:$0xff]  ;;  %v3720_v25 = vld [vmem:[%s4562_s1 + $0x2f0] sm:$0xff] }
  0x36   : > { %1271 = vmatpush.bf16.msrb.mxu1 %v3623_v29  ;;  %v459_v12 = vrot.slane %v457_v61, 5  ;;  %v523_v59 = vrot.slane %v521_v36, 5  ;;  %v3618_v61 = vld [vmem:[%s4562_s1 + $0x40] sm:$0xff]  ;;  %v510_v6 = vor.u32 %v509_v55, %v506_v54  ;;  %v501_v20 = vrot.slane %v499_v9, 5 }
  0x37   : > { %1300 = vmatpush.bf16.msrb.mxu2 %v3631_v14  ;;  %v445_v14 = vrot.slane %v443_v2, 5  ;;  %v3596_v54 = vld [vmem:[%s3906_s20 + $0x1c] sm:$0xf0]  ;;  %v3594_v55 = vld [vmem:[%s3906_s20 + $0x4] sm:$0xf] }
  0x38   : > { %1329 = vmatpush.bf16.msrb.mxu3 %v3639_v15  ;;  %v3612_v15 = vld [vmem:[%s4562_s1 + $0x10] sm:$0xff]  ;;  %v460_v26 = vsel %vm3942_vm2, %v455_v11, %v459_v12  ;;  %v2921_v9 = vld [vmem:[%s3906_s20 + $0x40] sm:$0xf] }
  0x39   : > { %1243 = vmatpush.bf16.msrb.mxu0 %v3614_v48  ;;  %v446_v29 = vsel %vm3942_vm2, %v441_v13, %v445_v14  ;;  %v616_v40 = vunpack.c.l.b16 %v460_v26  ;;  %v617_v42 = vunpack.c.h.b16 %v460_v26  ;;  %v478_v48 = vrot.slane %v476_v27, 4  ;;  %v3696_v26 = vld [vmem:[%s4562_s1 + $0x230] sm:$0xff] }
  0x3a   : > { %1272 = vmatpush.bf16.msrb.mxu1 %v3622_v49  ;;  %v614_v45 = vunpack.c.l.b16 %v446_v29  ;;  %v615_v47 = vunpack.c.h.b16 %v446_v29  ;;  %v481_v49 = vrot.slane %v479_v28, 5  ;;  %v511_v14 = vrot.slane %v510_v6, 4  ;;  %v3704_v27 = vld [vmem:[%s4562_s1 + $0x270] sm:$0xff] }
  0x3b   : > { %1301 = vmatpush.bf16.msrb.mxu2 %v3630_v32  ;;  %v490_v32 = vshrl.u32 %v221_v21, 16  ;;  %v637_v1 = vpack.c.b16 %v617_v42, %v613_v41  ;;  %v3716_v6 = vld [vmem:[%s4562_s1 + $0x2d0] sm:$0xff] }
  0x3c   : > { %1330 = vmatpush.bf16.msrb.mxu3 %v3638_v33  ;;  %865 = vmatmul.bf16.gmra.mxu0 %v632_v52  ;;  %v474_v33 = vsel %vm3942_vm2, %v469_v17, %v473_v18  ;;  %v300_v52 = vld [vmem:[%s3906_s20 + $0xd0] sm:$0x11]  ;;  %v482_v2 = vor.u32 %v481_v49, %v478_v48  ;;  %v3721_v17 = vld [vmem:[%s4562_s1 + $0x2f8] sm:$0xff]  ;;  %v3703_v48 = vld [vmem:[%s4562_s1 + $0x268] sm:$0xff] }
  0x3d   : > { %894 = vmatmul.bf16.gmra.mxu1 %v633_v53  ;;  %1244 = vmatpush.bf16.msrb.mxu0 %v3613_v4  ;;  %v618_v50 = vunpack.c.l.b16 %v474_v33  ;;  %v619_v51 = vunpack.c.h.b16 %v474_v33  ;;  %v302_v53 = vld [vmem:[%s3906_s20 + $0xf0] sm:$0x11]  ;;  %v492_v56 = vrot.slane %v490_v32, 4  ;;  %v485_v3 = vshll.u32 %v300_v52, 16  ;;  %v3697_v18 = vld [vmem:[%s4562_s1 + $0x238] sm:$0xff]  ;;  %v3710_v49 = vld [vmem:[%s4562_s1 + $0x2a0] sm:$0xff] }
  0x3e   : > { %923 = vmatmul.bf16.gmra.mxu2 %v634_v63  ;;  %1273 = vmatpush.bf16.msrb.mxu1 %v3621_v5  ;;  %v303_v63 = vld [vmem:[%s3906_s20 + $0xf8] sm:$0x11]  ;;  %v483_v13 = vrot.slane %v482_v2, 4  ;;  %v3702_v52 = vld [vmem:[%s4562_s1 + $0x260] sm:$0xff] }
  0x3f   : > { %1302 = vmatpush.bf16.msrb.mxu2 %v3629_v57  ;;  %952 = vmatmul.bf16.gmra.mxu3 %v635_v0  ;;  %v495_v57 = vrot.slane %v493_v34, 5  ;;  %v636_v0 = vpack.c.b16 %v616_v40, %v612_v39  ;;  %v638_v4 = vpack.c.b16 %v618_v50, %v614_v45  ;;  %v639_v5 = vpack.c.b16 %v619_v51, %v615_v47  ;;  %v3719_v45 = vld [vmem:[%s4562_s1 + $0x2e8] sm:$0xff]  ;;  %v3718_v50 = vld [vmem:[%s4562_s1 + $0x2e0] sm:$0xff]  ;;  %v3717_v2 = vld [vmem:[%s4562_s1 + $0x2d8] sm:$0xff] }
  0x40   : > { %1331 = vmatpush.bf16.msrb.mxu3 %v3637_v58  ;;  %v520_v58 = vrot.slane %v518_v35, 4  ;;  %v527_v11 = vshll.u32 %v303_v63, 16  ;;  %v487_v12 = vrot.slane %v485_v3, 5  ;;  %v3695_v47 = vld [vmem:[%s4562_s1 + $0x228] sm:$0xff]  ;;  %v3694_v51 = vld [vmem:[%s4562_s1 + $0x220] sm:$0xff]  ;;  %v3693_v3 = vld [vmem:[%s4562_s1 + $0x218] sm:$0xff] }
  0x41   : > { %1245 = vmatpush.bf16.msrb.mxu0 %v3612_v15 }
  0x42   : > { %1274 = vmatpush.bf16.msrb.mxu1 %v3620_v19  ;;  %v524_v10 = vor.u32 %v523_v59, %v520_v58  ;;  %v529_v22 = vrot.slane %v527_v11, 5  ;;  %v488_v28 = vsel %vm3942_vm2, %v483_v13, %v487_v12  ;;  %v3597_v58 = vld [vmem:[%s3906_s20 + $0x24] sm:$0xf0]  ;;  %v3595_v59 = vld [vmem:[%s3906_s20 + $0xc] sm:$0xf] }
  0x43   : > { %1303 = vmatpush.bf16.msrb.mxu2 %v3628_v7  ;;  %v513_v7 = vshll.u32 %v302_v53, 16  ;;  %v620_v32 = vunpack.c.l.b16 %v488_v28  ;;  %v621_v34 = vunpack.c.h.b16 %v488_v28  ;;  %v2905_v53 = vld [vmem:[%s3906_s20] sm:$0xf]  ;;  %v3598_v11 = vld [vmem:[%s3906_s20 + $0x44] sm:$0xf] }
  0x44   : > { %1332 = vmatpush.bf16.msrb.mxu3 %v3636_v8  ;;  %v496_v8 = vor.u32 %v495_v57, %v492_v56  ;;  %v525_v21 = vrot.slane %v524_v10, 4  ;;  %v2907_v56 = vld [vmem:[%s3906_s20 + $0x20] sm:$0xf0]  ;;  %v2913_v57 = vld [vmem:[%s3906_s20 + $0x8] sm:$0xf] }
  0x45   : > { %1246 = vmatpush.bf16.msrb.mxu0 %v3611_v37  ;;  %v515_v15 = vrot.slane %v513_v7, 5  ;;  %v2910_v62 = vor.u32 %v3594_v55, %v2907_v56  ;;  %v2914_v63 = vor.u32 %v3597_v58, %v2913_v57  ;;  %v3692_v7 = vld [vmem:[%s4562_s1 + $0x210] sm:$0xff]  ;;  %v3600_v10 = vld [vmem:[%s3906_s20 + $0x5c] sm:$0xf0]  ;;  %v2923_v12 = vld [vmem:[%s3906_s20 + $0x60] sm:$0xf0] }
  0x46   : > { %1275 = vmatpush.bf16.msrb.mxu1 %v3619_v38  ;;  %v497_v19 = vrot.slane %v496_v8, 4  ;;  %v530_v31 = vsel %vm3942_vm2, %v525_v21, %v529_v22  ;;  %v3700_v8 = vld [vmem:[%s4562_s1 + $0x250] sm:$0xff]  ;;  %v2929_v13 = vld [vmem:[%s3906_s20 + $0x48] sm:$0xf]  ;;  %v3698_v28 = vld [vmem:[%s4562_s1 + $0x240] sm:$0xff] }
  0x47   : > { %1304 = vmatpush.bf16.msrb.mxu2 %v3627_v23  ;;  %v3705_v23 = vld [vmem:[%s4562_s1 + $0x278] sm:$0xff]  ;;  %v516_v29 = vsel %vm3942_vm2, %v511_v14, %v515_v15  ;;  %v626_v37 = vunpack.c.l.b16 %v530_v31  ;;  %v627_v39 = vunpack.c.h.b16 %v530_v31  ;;  %v3601_v14 = vld [vmem:[%s3906_s20 + $0x64] sm:$0xf0]  ;;  %v3599_v15 = vld [vmem:[%s3906_s20 + $0x4c] sm:$0xf] }
  0x48   : > { %1333 = vmatpush.bf16.msrb.mxu3 %v3635_v24  ;;  %v3712_v24 = vld [vmem:[%s4562_s1 + $0x2b0] sm:$0xff]  ;;  %v502_v30 = vsel %vm3942_vm2, %v497_v19, %v501_v20  ;;  %v624_v33 = vunpack.c.l.b16 %v516_v29  ;;  %v625_v35 = vunpack.c.h.b16 %v516_v29  ;;  %v2930_v19 = vor.u32 %v3601_v14, %v2929_v13  ;;  %v3707_v21 = vld [vmem:[%s4562_s1 + $0x288] sm:$0xff]  ;;  %v2937_v29 = vld [vmem:[%s3906_s20 + $0x80] sm:$0xf] }
  0x49   : > { %1247 = vmatpush.bf16.msrb.mxu0 %v3610_v60  ;;  %v622_v36 = vunpack.c.l.b16 %v502_v30  ;;  %v623_v38 = vunpack.c.h.b16 %v502_v30  ;;  %v2915_v60 = vld [vmem:[%s3906_s20 + $0x28] sm:$0xf0]  ;;  %v3604_v30 = vld [vmem:[%s3906_s20 + $0x9c] sm:$0xf0]  ;;  %v3602_v31 = vld [vmem:[%s3906_s20 + $0x84] sm:$0xf] }
  0x4a   : > { %1276 = vmatpush.bf16.msrb.mxu1 %v3618_v61  ;;  %v640_v40 = vpack.c.b16 %v624_v33, %v620_v32  ;;  %v641_v41 = vpack.c.b16 %v625_v35, %v621_v34  ;;  %v2906_v61 = vor.u32 %v3596_v54, %v2905_v53  ;;  %v3715_v22 = vld [vmem:[%s4562_s1 + $0x2c8] sm:$0xff]  ;;  %v2939_v32 = vld [vmem:[%s3906_s20 + $0xa0] sm:$0xf0] }
  0x4b   : > { %1305 = vmatpush.bf16.msrb.mxu2 %v3626_v43  ;;  %v642_v42 = vpack.c.b16 %v626_v37, %v622_v36  ;;  %v643_v43 = vpack.c.b16 %v627_v39, %v623_v38  ;;  %v2945_v33 = vld [vmem:[%s3906_s20 + $0x88] sm:$0xf]  ;;  %v3603_v35 = vld [vmem:[%s3906_s20 + $0x8c] sm:$0xf]  ;;  %v2938_v37 = vor.u32 %v3604_v30, %v2937_v29  ;;  %v2942_v38 = vor.u32 %v3602_v31, %v2939_v32  ;;  %v3725_v30 = vld [vmem:[%s4562_s1 + $0x318] sm:$0xff] }
  0x4c   : > { %1334 = vmatpush.bf16.msrb.mxu3 %v3634_v44  ;;  %870 = vmatmul.bf16.gmra.mxu0 %v636_v0  ;;  %v3711_v44 = vld [vmem:[%s4562_s1 + $0x2a8] sm:$0xff]  ;;  %v2918_v0 = vor.u32 %v3595_v59, %v2915_v60  ;;  %v3728_v60 = vld [vmem:[%s4562_s1 + $0x330] sm:$0xff]  ;;  %v3733_v31 = vld [vmem:[%s4562_s1 + $0x358] sm:$0xff] }
  0x4d   : > { %899 = vmatmul.bf16.gmra.mxu1 %v637_v1  ;;  %1713 = vmatpush.bf16.msra.mxu0 %v3697_v18  ;;  %v3709_v1 = vld [vmem:[%s4562_s1 + $0x298] sm:$0xff]  ;;  %v2926_v18 = vor.u32 %v3598_v11, %v2923_v12  ;;  %v3605_v34 = vld [vmem:[%s3906_s20 + $0xa4] sm:$0xf0]  ;;  %v2947_v36 = vld [vmem:[%s3906_s20 + $0xa8] sm:$0xf0] }
  0x4e   : > { %928 = vmatmul.bf16.gmra.mxu2 %v638_v4  ;;  %1742 = vmatpush.bf16.msra.mxu1 %v3705_v23  ;;  %v3701_v4 = vld [vmem:[%s4562_s1 + $0x258] sm:$0xff]  ;;  %v3691_v23 = vld [vmem:[%s4562_s1 + $0x208] sm:$0xff]  ;;  %v2946_v39 = vor.u32 %v3605_v34, %v2945_v33  ;;  %v3740_v32 = vld [vmem:[%s4562_s1 + $0x390] sm:$0xff] }
  0x4f   : > { %957 = vmatmul.bf16.gmra.mxu3 %v639_v5  ;;  %1771 = vmatpush.bf16.msra.mxu2 %v3713_v16  ;;  %v3708_v5 = vld [vmem:[%s4562_s1 + $0x290] sm:$0xff]  ;;  %v2931_v16 = vld [vmem:[%s3906_s20 + $0x68] sm:$0xf0]  ;;  %v3609_v53 = vld [vmem:[%s3906_s20 + $0xe4] sm:$0xf0] }
  0x50   : > { %1800 = vmatpush.bf16.msra.mxu3 %v3721_v17  ;;  %v2922_v17 = vor.u32 %v3600_v10, %v2921_v9  ;;  %v2934_v20 = vor.u32 %v3599_v15, %v2931_v16  ;;  %v3607_v54 = vld [vmem:[%s3906_s20 + $0xcc] sm:$0xf]  ;;  %v3677_v9 = vld [vmem:[%s3906_s20 + $0x44] sm:$0xf0]  ;;  %v3193_v33 = vld [vmem:[%s3906_s20 + $0x60] sm:$0xf] }
  0x51   : > { %1714 = vmatpush.bf16.msra.mxu0 %v3696_v26  ;;  %v3714_v26 = vld [vmem:[%s4562_s1 + $0x2c0] sm:$0xff]  ;;  %v2963_v55 = vld [vmem:[%s3906_s20 + $0xe8] sm:$0xf0] }
  0x52   : > { %1743 = vmatpush.bf16.msra.mxu1 %v3704_v27  ;;  %v3690_v27 = vld [vmem:[%s4562_s1 + $0x200] sm:$0xff]  ;;  %v2966_v59 = vor.u32 %v3607_v54, %v2963_v55  ;;  %v3675_v10 = vld [vmem:[%s3906_s20 + $0x2c] sm:$0xf]  ;;  %v3724_v54 = vld [vmem:[%s4562_s1 + $0x310] sm:$0xff] }
  0x53   : > { %1772 = vmatpush.bf16.msra.mxu2 %v3712_v24  ;;  %v3699_v24 = vld [vmem:[%s4562_s1 + $0x248] sm:$0xff]  ;;  %v3680_v34 = vld [vmem:[%s3906_s20 + $0x7c] sm:$0xf0]  ;;  %v3732_v55 = vld [vmem:[%s4562_s1 + $0x350] sm:$0xff] }
  0x54   : > { %1801 = vmatpush.bf16.msra.mxu3 %v3720_v25  ;;  %v3706_v25 = vld [vmem:[%s4562_s1 + $0x280] sm:$0xff]  ;;  %v3187_v11 = vld [vmem:[%s3906_s20 + $0x48] sm:$0xf0] }
  0x55   : > { %1715 = vmatpush.bf16.msra.mxu0 %v3695_v47  ;;  %v2953_v47 = vld [vmem:[%s3906_s20 + $0xc0] sm:$0xf] }
  0x56   : > { %1744 = vmatpush.bf16.msra.mxu1 %v3703_v48  ;;  %v3608_v48 = vld [vmem:[%s3906_s20 + $0xdc] sm:$0xf0] }
  0x57   : > { %1773 = vmatpush.bf16.msra.mxu2 %v3711_v44  ;;  %v3737_v44 = vld [vmem:[%s4562_s1 + $0x378] sm:$0xff]  ;;  %v2954_v56 = vor.u32 %v3608_v48, %v2953_v47 }
  0x58   : > { %1802 = vmatpush.bf16.msra.mxu3 %v3719_v45  ;;  %v3744_v45 = vld [vmem:[%s4562_s1 + $0x3b0] sm:$0xff] }
  0x59   : > { %1716 = vmatpush.bf16.msra.mxu0 %v3694_v51  ;;  %v2955_v51 = vld [vmem:[%s3906_s20 + $0xe0] sm:$0xf0] }
  0x5a   : > { %1745 = vmatpush.bf16.msra.mxu1 %v3702_v52  ;;  %v2961_v52 = vld [vmem:[%s3906_s20 + $0xc8] sm:$0xf] }
  0x5b   : > { %1774 = vmatpush.bf16.msra.mxu2 %v3710_v49  ;;  %v3752_v49 = vld [vmem:[%s4562_s1 + $0x3f0] sm:$0xff]  ;;  %v2962_v58 = vor.u32 %v3609_v53, %v2961_v52 }
  0x5c   : > { %875 = vmatmul.bf16.gmra.mxu0 %v640_v40  ;;  %1803 = vmatpush.bf16.msra.mxu3 %v3718_v50  ;;  %v2950_v40 = vor.u32 %v3603_v35, %v2947_v36  ;;  %v3606_v50 = vld [vmem:[%s3906_s20 + $0xc4] sm:$0xf]  ;;  %v3748_v35 = vld [vmem:[%s4562_s1 + $0x3d0] sm:$0xff] }
  0x5d   : > { %904 = vmatmul.bf16.gmra.mxu1 %v641_v41  ;;  %1717 = vmatpush.bf16.msra.mxu0 %v3693_v3  ;;  %v3745_v41 = vld [vmem:[%s4562_s1 + $0x3b8] sm:$0xff]  ;;  %v2958_v57 = vor.u32 %v3606_v50, %v2955_v51  ;;  %v3177_v3 = vld [vmem:[%s3906_s20 + $0x20] sm:$0xf]  ;;  %v3678_v36 = vld [vmem:[%s3906_s20 + $0x64] sm:$0xf] }
  0x5e   : > { %933 = vmatmul.bf16.gmra.mxu2 %v642_v42  ;;  %1746 = vmatpush.bf16.msra.mxu1 %v3701_v4  ;;  %v3753_v42 = vld [vmem:[%s4562_s1 + $0x3f8] sm:$0xff]  ;;  %v3676_v4 = vld [vmem:[%s3906_s20 + $0x3c] sm:$0xf0] }
  0x5f   : > { %962 = vmatmul.bf16.gmra.mxu3 %v643_v43  ;;  %1775 = vmatpush.bf16.msra.mxu2 %v3709_v1  ;;  %v3729_v43 = vld [vmem:[%s4562_s1 + $0x338] sm:$0xff]  ;;  %v3735_v1 = vld [vmem:[%s4562_s1 + $0x368] sm:$0xff]  ;;  %v3178_v12 = vor.u32 %v3676_v4, %v3177_v3  ;;  %v3738_v3 = vld [vmem:[%s4562_s1 + $0x380] sm:$0xff] }
  0x60   : > { %1804 = vmatpush.bf16.msra.mxu3 %v3717_v2  ;;  %v3742_v2 = vld [vmem:[%s4562_s1 + $0x3a0] sm:$0xff] }
  0x61   : > { %1718 = vmatpush.bf16.msra.mxu0 %v3692_v7  ;;  %v3179_v7 = vld [vmem:[%s3906_s20 + $0x40] sm:$0xf0]  ;;  %v3209_v4 = vld [vmem:[%s3906_s20 + $0xa0] sm:$0xf] }
  0x62   : > { %1747 = vmatpush.bf16.msra.mxu1 %v3700_v8  ;;  %v3185_v8 = vld [vmem:[%s3906_s20 + $0x28] sm:$0xf] }
  0x63   : > { %1776 = vmatpush.bf16.msra.mxu2 %v3708_v5  ;;  %v3750_v5 = vld [vmem:[%s4562_s1 + $0x3e0] sm:$0xff]  ;;  %v3186_v16 = vor.u32 %v3677_v9, %v3185_v8  ;;  %v3217_v9 = vld [vmem:[%s3906_s20 + $0xa8] sm:$0xf] }
  0x64   : > { %1805 = vmatpush.bf16.msra.mxu3 %v3716_v6  ;;  %v3674_v6 = vld [vmem:[%s3906_s20 + $0x24] sm:$0xf] }
  0x65   : > { %1719 = vmatpush.bf16.msra.mxu0 %v3691_v23  ;;  %v3182_v13 = vor.u32 %v3674_v6, %v3179_v7  ;;  %v3746_v6 = vld [vmem:[%s4562_s1 + $0x3c0] sm:$0xff] }
  0x66   : > { %1748 = vmatpush.bf16.msra.mxu1 %v3699_v24  ;;  %v3682_v7 = vld [vmem:[%s3906_s20 + $0xa4] sm:$0xf] }
  0x67   : > { %1777 = vmatpush.bf16.msra.mxu2 %v3707_v21  ;;  %v3741_v21 = vld [vmem:[%s4562_s1 + $0x398] sm:$0xff]  ;;  %v3211_v8 = vld [vmem:[%s3906_s20 + $0xc0] sm:$0xf0] }
  0x68   : > { %1806 = vmatpush.bf16.msra.mxu3 %v3715_v22  ;;  %v3749_v22 = vld [vmem:[%s4562_s1 + $0x3d8] sm:$0xff] }
  0x69   : > { %1720 = vmatpush.bf16.msra.mxu0 %v3690_v27 }
  0x6a   : > { %1749 = vmatpush.bf16.msra.mxu1 %v3698_v28 }
  0x6b   : > { %1778 = vmatpush.bf16.msra.mxu2 %v3706_v25 }
  0x6c   : > { %1248 = vmatmul.bf16.vlgmr.msrb.gmra.mxu0 %v2906_v61  ;;  %1807 = vmatpush.bf16.msra.mxu3 %v3714_v26  ;;  %v3736_v61 = vld [vmem:[%s4562_s1 + $0x370] sm:$0xff] }
  0x6d   : > { %1277 = vmatmul.bf16.vlgmr.msrb.gmra.mxu1 %v2910_v62  ;;  %2414 = vmatpush.bf16.msrb.mxu0 %v3729_v43  ;;  %v3743_v62 = vld [vmem:[%s4562_s1 + $0x3a8] sm:$0xff] }
  0x6e   : > { %1306 = vmatmul.bf16.vlgmr.msrb.gmra.mxu2 %v2914_v63  ;;  %2443 = vmatpush.bf16.msrb.mxu1 %v3737_v44  ;;  %v3751_v63 = vld [vmem:[%s4562_s1 + $0x3e8] sm:$0xff]  ;;  %v3194_v44 = vor.u32 %v3680_v34, %v3193_v33 }
  0x6f   : > { %1335 = vmatmul.bf16.vlgmr.msrb.gmra.mxu3 %v2918_v0  ;;  %2472 = vmatpush.bf16.msrb.mxu2 %v3745_v41  ;;  %v3727_v0 = vld [vmem:[%s4562_s1 + $0x328] sm:$0xff] }
  0x70   : > { %2501 = vmatpush.bf16.msrb.mxu3 %v3753_v42  ;;  %v3203_v41 = vld [vmem:[%s3906_s20 + $0x88] sm:$0xf0] }
  0x71   : > { %2415 = vmatpush.bf16.msrb.mxu0 %v3728_v60  ;;  %v3372_v34 = vld [vmem:[%s3906_s20 + $0x48] sm:$0xff] }
  0x72   : > { %2444 = vmatpush.bf16.msrb.mxu1 %v3736_v61 }
  0x73   : > { %2473 = vmatpush.bf16.msrb.mxu2 %v3744_v45 }
  0x74   : > { %2502 = vmatpush.bf16.msrb.mxu3 %v3752_v49 }
  0x75   : > { %2416 = vmatpush.bf16.msrb.mxu0 %v3727_v0 }
  0x76   : > { %2445 = vmatpush.bf16.msrb.mxu1 %v3735_v1  ;;  %v3723_v1 = vld [vmem:[%s4562_s1 + $0x308] sm:$0xff] }
  0x77   : > { %2474 = vmatpush.bf16.msrb.mxu2 %v3743_v62 }
  0x78   : > { %2503 = vmatpush.bf16.msrb.mxu3 %v3751_v63 }
  0x7b   : > { %2475 = vmatpush.bf16.msrb.mxu2 %v3742_v2  ;;  %v3731_v2 = vld [vmem:[%s4562_s1 + $0x348] sm:$0xff] }
  0x7c   : > { %1253 = vmatmul.bf16.gmra.mxu0 %v2922_v17  ;;  %2504 = vmatpush.bf16.msrb.mxu3 %v3750_v5  ;;  %v3190_v17 = vor.u32 %v3675_v10, %v3187_v11  ;;  %v3684_v5 = vld [vmem:[%s3906_s20 + $0xbc] sm:$0xf0]  ;;  %v3685_v10 = vld [vmem:[%s3906_s20 + $0xc4] sm:$0xf0]  ;;  %v3683_v11 = vld [vmem:[%s3906_s20 + $0xac] sm:$0xf] }
  0x7d   : > { %1282 = vmatmul.bf16.gmra.mxu1 %v2926_v18 }
  0x7e   : > { %1311 = vmatmul.bf16.gmra.mxu2 %v2930_v19  ;;  %v3726_v19 = vld [vmem:[%s4562_s1 + $0x320] sm:$0xff] }
  0x7f   : > { %1340 = vmatmul.bf16.gmra.mxu3 %v2934_v20  ;;  %v3734_v20 = vld [vmem:[%s4562_s1 + $0x360] sm:$0xff]  ;;  %2417 = vmatpush.bf16.msrb.mxu0 %v3726_v19 }
  0x80   : > { %2446 = vmatpush.bf16.msrb.mxu1 %v3734_v20  ;;  %2476 = vmatpush.bf16.msrb.mxu2 %v3741_v21  ;;  %v3367_v19 = vld [vmem:[%s3906_s20 + $0x20] sm:$0xff] }
  0x81   : > { %2505 = vmatpush.bf16.msrb.mxu3 %v3749_v22 }
  0x83   : > { %2418 = vmatpush.bf16.msrb.mxu0 %v3725_v30  ;;  %v1873_v30 = vshll.u32 %v3367_v19, 16 }
  0x84   : > { %2447 = vmatpush.bf16.msrb.mxu1 %v3733_v31  ;;  %2477 = vmatpush.bf16.msrb.mxu2 %v3740_v32  ;;  %v3368_v31 = vld [vmem:[%s3906_s20 + $0x28] sm:$0xff] }
  0x85   : > { %2506 = vmatpush.bf16.msrb.mxu3 %v3748_v35  ;;  %v1884_v35 = vshrl.u32 %v3368_v31, 16 }
  0x87   : > { %2419 = vmatpush.bf16.msrb.mxu0 %v3724_v54 }
  0x88   : > { %2448 = vmatpush.bf16.msrb.mxu1 %v3732_v55 }
  0x8b   : > { %2420 = vmatpush.bf16.msrb.mxu0 %v3723_v1  ;;  %v3374_v1 = vld [vmem:[%s3906_s20 + $0x58] sm:$0x11] }
  0x8c   : > { %1258 = vmatmul.bf16.gmra.mxu0 %v2938_v37  ;;  %v3195_v37 = vld [vmem:[%s3906_s20 + $0x80] sm:$0xf0]  ;;  %2449 = vmatpush.bf16.msrb.mxu1 %v3731_v2 }
  0x8d   : > { %1287 = vmatmul.bf16.gmra.mxu1 %v2942_v38  ;;  %v3201_v38 = vld [vmem:[%s3906_s20 + $0x68] sm:$0xf]  ;;  %v3198_v45 = vor.u32 %v3678_v36, %v3195_v37  ;;  %v1887_v36 = vshll.u32 %v3368_v31, 16  ;;  %v3379_v31 = vld [vmem:[%s3906_s20 + $0x80] sm:$0xff] }
  0x8e   : > { %1316 = vmatmul.bf16.gmra.mxu2 %v2946_v39  ;;  %v3681_v39 = vld [vmem:[%s3906_s20 + $0x84] sm:$0xf0] }
  0x8f   : > { %1345 = vmatmul.bf16.gmra.mxu3 %v2950_v40  ;;  %v3679_v40 = vld [vmem:[%s3906_s20 + $0x6c] sm:$0xf]  ;;  %v3202_v50 = vor.u32 %v3681_v39, %v3201_v38  ;;  %v1875_v38 = vrot.slane %v1873_v30, 5  ;;  %v1912_v39 = vshrl.u32 %v3372_v34, 16  ;;  %v1889_v54 = vrot.slane %v1887_v36, 5 }
  0x90   : > { %v3206_v51 = vor.u32 %v3679_v40, %v3203_v41 }
  0x9c   : > { %1263 = vmatmul.bf16.gmra.mxu0 %v2954_v56  ;;  %v3739_v56 = vld [vmem:[%s4562_s1 + $0x388] sm:$0xff] }
  0x9d   : > { %1292 = vmatmul.bf16.gmra.mxu1 %v2958_v57  ;;  %v3747_v57 = vld [vmem:[%s4562_s1 + $0x3c8] sm:$0xff]  ;;  %2478 = vmatpush.bf16.msrb.mxu2 %v3739_v56  ;;  %v3225_v56 = vld [vmem:[%s3906_s20 + $0xe0] sm:$0xf] }
  0x9e   : > { %1321 = vmatmul.bf16.gmra.mxu2 %v2962_v58  ;;  %2507 = vmatpush.bf16.msrb.mxu3 %v3747_v57  ;;  %v3688_v57 = vld [vmem:[%s3906_s20 + $0xfc] sm:$0xf0] }
  0x9f   : > { %1350 = vmatmul.bf16.gmra.mxu3 %v2966_v59 }
  0xa1   : > { %2479 = vmatpush.bf16.msrb.mxu2 %v3738_v3  ;;  %v3686_v3 = vld [vmem:[%s3906_s20 + $0xe4] sm:$0xf] }
  0xa2   : > { %2508 = vmatpush.bf16.msrb.mxu3 %v3746_v6  ;;  %v3226_v6 = vor.u32 %v3688_v57, %v3225_v56 }
  0xa9   : > { %v861_v14 = vpop.f32.mrf.mxu0 }
  0xaa   : > { %v890_v15 = vpop.f32.mrf.mxu1 }
  0xab   : > { %v891_v18 = vadd.f32 %v890_v15, %v861_v14  ;;  %v3210_v15 = vor.u32 %v3684_v5, %v3209_v4  ;;  %v3227_v4 = vld [vmem:[%s3906_s20 + $0x100] sm:$0xf0]  ;;  %v3233_v5 = vld [vmem:[%s3906_s20 + $0xe8] sm:$0xf] }
  0xac   : > { %1721 = vmatmul.bf16.vlgmr.msra.gmra.mxu0 %v3178_v12  ;;  %v3219_v12 = vld [vmem:[%s3906_s20 + $0xc8] sm:$0xf0] }
  0xad   : > { %1750 = vmatmul.bf16.vlgmr.msra.gmra.mxu1 %v3182_v13 }
  0xae   : > { %1779 = vmatmul.bf16.vlgmr.msra.gmra.mxu2 %v3186_v16  ;;  %v3214_v16 = vor.u32 %v3682_v7, %v3211_v8  ;;  %v3689_v7 = vld [vmem:[%s3906_s20 + $0x104] sm:$0xf0]  ;;  %v3687_v8 = vld [vmem:[%s3906_s20 + $0xec] sm:$0xf] }
  0xaf   : > { %1808 = vmatmul.bf16.vlgmr.msra.gmra.mxu3 %v3190_v17  ;;  %v3722_v17 = vld [vmem:[%s4562_s1 + $0x300] sm:$0xff] }
  0xb0   : > { %2421 = vmatpush.bf16.msrb.mxu0 %v3722_v17  ;;  %v3230_v17 = vor.u32 %v3686_v3, %v3227_v4 }
  0xb1   : > { %v919_v23 = vpop.f32.mrf.mxu2  ;;  %v863_v26 = vpop.f32.mrf.mxu0 }
  0xb2   : > { %v948_v24 = vpop.f32.mrf.mxu3  ;;  %v920_v25 = vadd.f32 %v919_v23, %v891_v18  ;;  %v892_v27 = vpop.f32.mrf.mxu1  ;;  %v3730_v18 = vld [vmem:[%s4562_s1 + $0x340] sm:$0xff]  ;;  %v3218_v23 = vor.u32 %v3685_v10, %v3217_v9  ;;  %v3235_v9 = vld [vmem:[%s3906_s20 + $0x108] sm:$0xf0] }
  0xb3   : > { %v893_v28 = vadd.f32 %v892_v27, %v863_v26  ;;  %2450 = vmatpush.bf16.msrb.mxu1 %v3730_v18 }
  0xb4   : > { %v4324_v29 = vadd.f32 %v948_v24, %v920_v25  ;;  %v3222_v24 = vor.u32 %v3683_v11, %v3219_v12  ;;  %v3371_v25 = vld [vmem:[%s3906_s20 + $0x40] sm:$0xff] }
  0xb5   : > { %v1898_v32 = vshrl.u32 %v3371_v25, 16  ;;  %v1901_v33 = vshll.u32 %v3371_v25, 16  ;;  %v3238_v25 = vor.u32 %v3687_v8, %v3235_v9 }
  0xb9   : > { %v921_v42 = vpop.f32.mrf.mxu2  ;;  %v866_v48 = vpop.f32.mrf.mxu0 }
  0xba   : > { %v950_v43 = vpop.f32.mrf.mxu3  ;;  %v922_v47 = vadd.f32 %v921_v42, %v893_v28  ;;  %v895_v49 = vpop.f32.mrf.mxu1  ;;  %v1870_v28 = vshrl.u32 %v3367_v19, 16  ;;  %v3369_v42 = vld [vmem:[%s3906_s20 + $0x30] sm:$0x11] }
  0xbb   : > { %v896_v52 = vadd.f32 %v895_v49, %v866_v48 }
  0xbc   : > { %v4346_v53 = vadd.f32 %v950_v43, %v922_v47  ;;  %1726 = vmatmul.bf16.gmra.mxu0 %v3194_v44  ;;  %v1872_v37 = vrot.slane %v1870_v28, 4  ;;  %v1900_v43 = vrot.slane %v1898_v32, 4  ;;  %v1903_v44 = vrot.slane %v1901_v33, 5 }
  0xbd   : > { %1755 = vmatmul.bf16.gmra.mxu1 %v3198_v45  ;;  %v1915_v45 = vshll.u32 %v3372_v34, 16 }
  0xbe   : > { %1784 = vmatmul.bf16.gmra.mxu2 %v3202_v50  ;;  %v3373_v50 = vld [vmem:[%s3906_s20 + $0x50] sm:$0x11] }
  0xbf   : > { %1813 = vmatmul.bf16.gmra.mxu3 %v3206_v51  ;;  %v1917_v2 = vrot.slane %v1915_v45, 5 }
  0xc1   : > { %v924_v58 = vpop.f32.mrf.mxu2  ;;  %v868_v61 = vpop.f32.mrf.mxu0 }
  0xc2   : > { %v953_v59 = vpop.f32.mrf.mxu3  ;;  %v925_v60 = vadd.f32 %v924_v58, %v896_v52  ;;  %v897_v62 = vpop.f32.mrf.mxu1  ;;  %v1886_v52 = vrot.slane %v1884_v35, 4  ;;  %v1876_v58 = vor.u32 %v1875_v38, %v1872_v37 }
  0xc3   : > { %v898_v63 = vadd.f32 %v897_v62, %v868_v61  ;;  %v1904_v61 = vor.u32 %v1903_v44, %v1900_v43  ;;  %v1907_v62 = vshll.u32 %v3373_v50, 16 }
  0xc4   : > { %v4360_v0 = vadd.f32 %v953_v59, %v925_v60  ;;  %v1879_v59 = vshll.u32 %v3369_v42, 16  ;;  %v1914_v60 = vrot.slane %v1912_v39, 4  ;;  %v1890_v10 = vor.u32 %v1889_v54, %v1886_v52  ;;  %v3376_v42 = vld [vmem:[%s3906_s20 + $0x68] sm:$0xff]  ;;  %v3377_v54 = vld [vmem:[%s3906_s20 + $0x70] sm:$0x11] }
  0xc5   : > { %v1877_v11 = vrot.slane %v1876_v58, 4  ;;  %v1905_v18 = vrot.slane %v1904_v61, 4  ;;  %v1909_v19 = vrot.slane %v1907_v62, 5  ;;  %v1940_v58 = vshrl.u32 %v3376_v42, 16  ;;  %v3381_v62 = vld [vmem:[%s3906_s20 + $0x90] sm:$0x11] }
  0xc6   : > { %v1881_v12 = vrot.slane %v1879_v59, 5  ;;  %v1891_v30 = vrot.slane %v1890_v10, 4 }
  0xc7   : > { %v1910_v36 = vsel %vm3942_vm2, %v1905_v18, %v1909_v19  ;;  %v3382_v18 = vld [vmem:[%s3906_s20 + $0x98] sm:$0x11] }
  0xc8   : > { %v1882_v33 = vsel %vm3942_vm2, %v1877_v11, %v1881_v12  ;;  %v2162_v44 = vunpack.c.l.b16 %v1910_v36  ;;  %v1935_v12 = vshll.u32 %v3377_v54, 16 }
  0xc9   : > { %v926_v13 = vpop.f32.mrf.mxu2  ;;  %v871_v21 = vpop.f32.mrf.mxu0  ;;  %v2158_v43 = vunpack.c.l.b16 %v1882_v33  ;;  %v2159_v45 = vunpack.c.h.b16 %v1882_v33 }
  0xca   : > { %v955_v14 = vpop.f32.mrf.mxu3  ;;  %v927_v20 = vadd.f32 %v926_v13, %v898_v63  ;;  %v900_v22 = vpop.f32.mrf.mxu1  ;;  %v3370_v63 = vld [vmem:[%s3906_s20 + $0x38] sm:$0x11] }
  0xcb   : > { %v901_v26 = vadd.f32 %v900_v22, %v871_v21  ;;  %v1893_v13 = vshll.u32 %v3370_v63, 16 }
  0xcc   : > { %v4390_v27 = vadd.f32 %v955_v14, %v927_v20  ;;  %1731 = vmatmul.bf16.gmra.mxu0 %v3210_v15  ;;  %v1921_v14 = vshll.u32 %v3374_v1, 16  ;;  %v1918_v20 = vor.u32 %v1917_v2, %v1914_v60  ;;  %v1943_v2 = vshll.u32 %v3376_v42, 16 }
  0xcd   : > { %1760 = vmatmul.bf16.gmra.mxu1 %v3214_v16  ;;  %v1895_v34 = vrot.slane %v1893_v13, 5  ;;  %v1963_v13 = vshll.u32 %v3381_v62, 16 }
  0xce   : > { %1789 = vmatmul.bf16.gmra.mxu2 %v3218_v23  ;;  %v1923_v35 = vrot.slane %v1921_v14, 5  ;;  %v1919_v37 = vrot.slane %v1918_v20, 4 }
  0xcf   : > { %1818 = vmatmul.bf16.gmra.mxu3 %v3222_v24  ;;  %v3234_v24 = vor.u32 %v3689_v7, %v3233_v5  ;;  %v1965_v33 = vrot.slane %v1963_v13, 5 }
  0xd0   : > { %v1924_v52 = vsel %vm3942_vm2, %v1919_v37, %v1923_v35  ;;  %v3387_v35 = vld [vmem:[%s3906_s20 + $0xc0] sm:$0xff] }
  0xd1   : > { %v929_v40 = vpop.f32.mrf.mxu2  ;;  %v873_v48 = vpop.f32.mrf.mxu0  ;;  %v2164_v8 = vunpack.c.l.b16 %v1924_v52  ;;  %v2165_v10 = vunpack.c.h.b16 %v1924_v52  ;;  %v3384_v52 = vld [vmem:[%s3906_s20 + $0xa8] sm:$0xff] }
  0xd2   : > { %v958_v41 = vpop.f32.mrf.mxu3  ;;  %v930_v47 = vadd.f32 %v929_v40, %v901_v26  ;;  %v902_v49 = vpop.f32.mrf.mxu1  ;;  %v3375_v26 = vld [vmem:[%s3906_s20 + $0x60] sm:$0xff]  ;;  %v1954_v40 = vshrl.u32 %v3379_v31, 16 }
  0xd3   : > { %v903_v51 = vadd.f32 %v902_v49, %v873_v48  ;;  %v1926_v38 = vshrl.u32 %v3375_v26, 16  ;;  %v1929_v39 = vshll.u32 %v3375_v26, 16  ;;  %v1896_v48 = vsel %vm3942_vm2, %v1891_v30, %v1895_v34  ;;  %v3380_v49 = vld [vmem:[%s3906_s20 + $0x88] sm:$0xff] }
  0xd4   : > { %v4396_v55 = vadd.f32 %v958_v41, %v930_v47  ;;  %v1957_v41 = vshll.u32 %v3379_v31, 16  ;;  %v2163_v47 = vunpack.c.h.b16 %v1910_v36  ;;  %v1956_v63 = vrot.slane %v1954_v40, 4 }
  0xd5   : > { %v1928_v56 = vrot.slane %v1926_v38, 4  ;;  %v1931_v57 = vrot.slane %v1929_v39, 5  ;;  %v2160_v4 = vunpack.c.l.b16 %v1896_v48  ;;  %v1968_v5 = vshrl.u32 %v3380_v49, 16 }
  0xd6   : > { %v1959_v1 = vrot.slane %v1957_v41, 5  ;;  %v2161_v9 = vunpack.c.h.b16 %v1896_v48  ;;  %v1937_v31 = vrot.slane %v1935_v12, 5  ;;  %v1977_v41 = vshll.u32 %v3382_v18, 16 }
  0xd7   : > { %v1932_v11 = vor.u32 %v1931_v57, %v1928_v56  ;;  %v1970_v19 = vrot.slane %v1968_v5, 4  ;;  %v2010_v48 = vshrl.u32 %v3387_v35, 16  ;;  %v3388_v57 = vld [vmem:[%s3906_s20 + $0xc8] sm:$0xff] }
  0xd8   : > { %v1960_v14 = vor.u32 %v1959_v1, %v1956_v63  ;;  %v3385_v63 = vld [vmem:[%s3906_s20 + $0xb0] sm:$0x11] }
  0xd9   : > { %v931_v15 = vpop.f32.mrf.mxu2  ;;  %v876_v22 = vpop.f32.mrf.mxu0  ;;  %v1933_v30 = vrot.slane %v1932_v11, 4  ;;  %v2012_v1 = vrot.slane %v2010_v48, 4  ;;  %v2027_v11 = vshll.u32 %v3388_v57, 16 }
  0xda   : > { %v960_v16 = vpop.f32.mrf.mxu3  ;;  %v932_v21 = vadd.f32 %v931_v15, %v903_v51  ;;  %v905_v23 = vpop.f32.mrf.mxu1  ;;  %v3378_v15 = vld [vmem:[%s3906_s20 + $0x78] sm:$0x11]  ;;  %v1961_v39 = vrot.slane %v1960_v14, 4 }
  0xdb   : > { %v906_v28 = vadd.f32 %v905_v23, %v876_v22  ;;  %v2191_v22 = vpack.c.b16 %v2163_v47, %v2159_v45  ;;  %v2192_v23 = vpack.c.b16 %v2164_v8, %v2160_v4  ;;  %v1949_v34 = vshll.u32 %v3378_v15, 16  ;;  %v3389_v8 = vld [vmem:[%s3906_s20 + $0xd0] sm:$0x11] }
  0xdc   : > { %v4410_v32 = vadd.f32 %v960_v16, %v932_v21  ;;  %1736 = vmatmul.bf16.gmra.mxu0 %v3226_v6  ;;  %v1971_v6 = vshll.u32 %v3380_v49, 16  ;;  %v1942_v16 = vrot.slane %v1940_v58, 4  ;;  %v2190_v21 = vpack.c.b16 %v2162_v44, %v2158_v43 }
  0xdd   : > { %1765 = vmatmul.bf16.gmra.mxu1 %v3230_v17  ;;  %v1945_v17 = vrot.slane %v1943_v2, 5  ;;  %v2013_v49 = vshll.u32 %v3387_v35, 16  ;;  %v1951_v56 = vrot.slane %v1949_v34, 5 }
  0xde   : > { %1794 = vmatmul.bf16.gmra.mxu2 %v3234_v24  ;;  %v1973_v20 = vrot.slane %v1971_v6, 5  ;;  %v2193_v24 = vpack.c.b16 %v2165_v10, %v2161_v9  ;;  %v1999_v9 = vshll.u32 %v3384_v52, 16  ;;  %v2024_v10 = vshrl.u32 %v3388_v57, 16 }
  0xdf   : > { %1823 = vmatmul.bf16.gmra.mxu3 %v3238_v25  ;;  %v3383_v25 = vld [vmem:[%s3906_s20 + $0xa0] sm:$0xff]  ;;  %v1946_v40 = vor.u32 %v1945_v17, %v1942_v16  ;;  %v2015_v2 = vrot.slane %v2013_v49, 5 }
  0xe0   : > { %v1974_v43 = vor.u32 %v1973_v20, %v1970_v19  ;;  %v1982_v44 = vshrl.u32 %v3383_v25, 16  ;;  %v1985_v45 = vshll.u32 %v3383_v25, 16  ;;  %v3386_v25 = vld [vmem:[%s3906_s20 + $0xb8] sm:$0x11] }
  0xe1   : > { %v934_v50 = vpop.f32.mrf.mxu2  ;;  %v878_v60 = vpop.f32.mrf.mxu0  ;;  %v1947_v54 = vrot.slane %v1946_v40, 4 }
  0xe2   : > { %v963_v51 = vpop.f32.mrf.mxu3  ;;  %v935_v59 = vadd.f32 %v934_v50, %v906_v28  ;;  %v907_v61 = vpop.f32.mrf.mxu1  ;;  %v1975_v58 = vrot.slane %v1974_v43, 4 }
  0xe3   : > { %v908_v3 = vadd.f32 %v907_v61, %v878_v60  ;;  %v1984_v60 = vrot.slane %v1982_v44, 4  ;;  %v1987_v61 = vrot.slane %v1985_v45, 5  ;;  %v1952_v17 = vsel %vm3942_vm2, %v1947_v54, %v1951_v56 }
  0xe4   : > { %v4424_v7 = vadd.f32 %v963_v51, %v935_v59  ;;  %v1938_v51 = vsel %vm3942_vm2, %v1933_v30, %v1937_v31  ;;  %v1979_v59 = vrot.slane %v1977_v41, 5  ;;  %v2001_v30 = vrot.slane %v1999_v9, 5 }
  0xe5   : > { %v2166_v62 = vunpack.c.l.b16 %v1938_v51  ;;  %v2167_v6 = vunpack.c.h.b16 %v1938_v51  ;;  %v1988_v20 = vor.u32 %v1987_v61, %v1984_v60  ;;  %v2026_v31 = vrot.slane %v2024_v10, 4 }
  0xe6   : > { %v1980_v19 = vsel %vm3942_vm2, %v1975_v58, %v1979_v59  ;;  %v2168_v34 = vunpack.c.l.b16 %v1952_v17 }
  0xe7   : > { %v2172_v35 = vunpack.c.l.b16 %v1980_v19  ;;  %v1989_v40 = vrot.slane %v1988_v20, 4 }
  0xe9   : > { %v936_v26 = vpop.f32.mrf.mxu2  ;;  %v1249_v37 = vpop.f32.mrf.mxu0  ;;  %v2196_v56 = vpack.c.b16 %v2172_v35, %v2168_v34 }
  0xea   : > { %v965_v28 = vpop.f32.mrf.mxu3  ;;  %v937_v36 = vadd.f32 %v936_v26, %v908_v3  ;;  %v1278_v38 = vpop.f32.mrf.mxu1  ;;  %v1250_v42 = vadd.f32 %v1249_v37, %v4324_v29  ;;  %v1966_v29 = vsel %vm3942_vm2, %v1961_v39, %v1965_v33  ;;  %v1996_v3 = vshrl.u32 %v3384_v52, 16  ;;  %v3390_v37 = vld [vmem:[%s3906_s20 + $0xd8] sm:$0x11] }
  0xeb   : > { %v2170_v15 = vunpack.c.l.b16 %v1966_v29  ;;  %v2171_v16 = vunpack.c.h.b16 %v1966_v29  ;;  %v2029_v33 = vrot.slane %v2027_v11, 5  ;;  %v2005_v39 = vshll.u32 %v3386_v25, 16  ;;  %v3396_v11 = vld [vmem:[%s3906_s20 + $0x108] sm:$0xff] }
  0xec   : > { %v4431_v47 = vadd.f32 %v965_v28, %v937_v36  ;;  %v1279_v50 = vadd.f32 %v1278_v38, %v1250_v42  ;;  %2422 = vmatmul.bf16.vlgmr.msrb.gmra.mxu0 %v2190_v21  ;;  %v1991_v21 = vshll.u32 %v3385_v63, 16  ;;  %v1998_v26 = vrot.slane %v1996_v3, 4 }
  0xed   : > { %2451 = vmatmul.bf16.vlgmr.msrb.gmra.mxu1 %v2191_v22  ;;  %v2169_v36 = vunpack.c.h.b16 %v1952_v17  ;;  %v2194_v38 = vpack.c.b16 %v2170_v15, %v2166_v62  ;;  %v2195_v48 = vpack.c.b16 %v2171_v16, %v2167_v6  ;;  %v2033_v51 = vshll.u32 %v3390_v37, 16 }
  0xee   : > { %2480 = vmatmul.bf16.vlgmr.msrb.gmra.mxu2 %v2192_v23  ;;  %v2016_v23 = vor.u32 %v2015_v2, %v2012_v1  ;;  %v1993_v41 = vrot.slane %v1991_v21, 5  ;;  %v2002_v49 = vor.u32 %v2001_v30, %v1998_v26  ;;  %v2007_v62 = vrot.slane %v2005_v39, 5  ;;  %v3393_v39 = vld [vmem:[%s3906_s20 + $0xf0] sm:$0x11] }
  0xef   : > { %2509 = vmatmul.bf16.vlgmr.msrb.gmra.mxu3 %v2193_v24  ;;  %v2019_v24 = vshll.u32 %v3389_v8, 16  ;;  %v2035_v3 = vrot.slane %v2033_v51, 5  ;;  %v2083_v30 = vshll.u32 %v3396_v11, 16  ;;  %v3398_v51 = vld [vmem:[%s3906_s20 + $0x118] sm:$0x11] }
  0xf0   : > { %v2017_v42 = vrot.slane %v2016_v23, 4  ;;  %v1994_v60 = vsel %vm3942_vm2, %v1989_v40, %v1993_v41  ;;  %v2003_v1 = vrot.slane %v2002_v49, 4  ;;  %v3397_v40 = vld [vmem:[%s3906_s20 + $0x110] sm:$0x11] }
  0xf1   : > { %v1307_v4 = vpop.f32.mrf.mxu2  ;;  %v1251_v13 = vpop.f32.mrf.mxu0  ;;  %v2021_v43 = vrot.slane %v2019_v24, 5  ;;  %v2174_v6 = vunpack.c.l.b16 %v1994_v60  ;;  %v2175_v9 = vunpack.c.h.b16 %v1994_v60 }
  0xf2   : > { %v1336_v5 = vpop.f32.mrf.mxu3  ;;  %v1308_v12 = vadd.f32 %v1307_v4, %v1279_v50  ;;  %v1280_v14 = vpop.f32.mrf.mxu1  ;;  %v1252_v18 = vadd.f32 %v1251_v13, %v4346_v53  ;;  %v2173_v53 = vunpack.c.h.b16 %v1980_v19  ;;  %v2030_v50 = vor.u32 %v2029_v33, %v2026_v31  ;;  %v3391_v4 = vld [vmem:[%s3906_s20 + $0xe0] sm:$0xff] }
  0xf3   : > { %v2022_v61 = vsel %vm3942_vm2, %v2017_v42, %v2021_v43  ;;  %v2038_v16 = vshrl.u32 %v3391_v4, 16  ;;  %v2041_v17 = vshll.u32 %v3391_v4, 16  ;;  %v3394_v43 = vld [vmem:[%s3906_s20 + $0xf8] sm:$0x11] }
  0xf4   : > { %v4446_v22 = vadd.f32 %v1336_v5, %v1308_v12  ;;  %v1281_v28 = vadd.f32 %v1280_v14, %v1252_v18  ;;  %v2197_v57 = vpack.c.b16 %v2173_v53, %v2169_v36  ;;  %v2031_v2 = vrot.slane %v2030_v50, 4  ;;  %v3392_v5 = vld [vmem:[%s3906_s20 + $0xe8] sm:$0xff] }
  0xf5   : > { %v2178_v8 = vunpack.c.l.b16 %v2022_v61  ;;  %v2179_v10 = vunpack.c.h.b16 %v2022_v61  ;;  %v2008_v14 = vsel %vm3942_vm2, %v2003_v1, %v2007_v62  ;;  %v2052_v24 = vshrl.u32 %v3392_v5, 16 }
  0xf6   : > { %v2036_v15 = vsel %vm3942_vm2, %v2031_v2, %v2035_v3  ;;  %v2055_v26 = vshll.u32 %v3392_v5, 16  ;;  %v2176_v33 = vunpack.c.l.b16 %v2008_v14  ;;  %v2177_v35 = vunpack.c.h.b16 %v2008_v14 }
  0xf7   : > { %v2180_v34 = vunpack.c.l.b16 %v2036_v15  ;;  %v2181_v53 = vunpack.c.h.b16 %v2036_v15  ;;  %v2040_v37 = vrot.slane %v2038_v16, 4  ;;  %v2198_v49 = vpack.c.b16 %v2178_v8, %v2174_v6 }
  0xf8   : > { %v2199_v50 = vpack.c.b16 %v2179_v10, %v2175_v9  ;;  %v2075_v1 = vshll.u32 %v3397_v40, 16  ;;  %v2061_v2 = vshll.u32 %v3394_v43, 16  ;;  %v2089_v5 = vshll.u32 %v3398_v51, 16 }
  0xf9   : > { %v1309_v44 = vpop.f32.mrf.mxu2  ;;  %v1254_v29 = vpop.f32.mrf.mxu0 }
  0xfa   : > { %v1338_v45 = vpop.f32.mrf.mxu3  ;;  %v1310_v52 = vadd.f32 %v1309_v44, %v1281_v28  ;;  %v1283_v54 = vpop.f32.mrf.mxu1  ;;  %v1255_v58 = vadd.f32 %v1254_v29, %v4360_v0  ;;  %v3395_v0 = vld [vmem:[%s3906_s20 + $0x100] sm:$0xff]  ;;  %v2080_v28 = vshrl.u32 %v3396_v11, 16  ;;  %v2057_v44 = vrot.slane %v2055_v26, 5  ;;  %s3593_s20 = sshll.u32 %s4572_s12, 5 }
  0xfb   : > { %v2066_v21 = vshrl.u32 %v3395_v0, 16  ;;  %v2069_v23 = vshll.u32 %v3395_v0, 16  ;;  %v2063_v14 = vrot.slane %v2061_v2, 5  ;;  %v2091_v16 = vrot.slane %v2089_v5, 5  ;;  %s4526_s8 = scalar_lea.vmem %s4563_s2, %s3593_s20 }
  0xfc   : > { %v4451_v59 = vadd.f32 %v1338_v45, %v1310_v52  ;;  %v1284_v63 = vadd.f32 %v1283_v54, %v1255_v58  ;;  %2427 = vmatmul.bf16.gmra.mxu0 %v2194_v38  ;;  %v2043_v38 = vrot.slane %v2041_v17, 5  ;;  %v2082_v45 = vrot.slane %v2080_v28, 4 }
  0xfd   : > { %2456 = vmatmul.bf16.gmra.mxu1 %v2195_v48  ;;  %v2068_v41 = vrot.slane %v2066_v21, 4  ;;  %v2071_v42 = vrot.slane %v2069_v23, 5  ;;  %v2085_v48 = vrot.slane %v2083_v30, 5  ;;  %v2200_v54 = vpack.c.b16 %v2180_v34, %v2176_v33 }
  0xfe   : > { %2485 = vmatmul.bf16.gmra.mxu2 %v2196_v56  ;;  %v2201_v56 = vpack.c.b16 %v2181_v53, %v2177_v35  ;;  %v2047_v58 = vshll.u32 %v3393_v39, 16 }
  0xff   : > { %2514 = vmatmul.bf16.gmra.mxu3 %v2197_v57  ;;  %v2044_v57 = vor.u32 %v2043_v38, %v2040_v37  ;;  %v2086_v0 = vor.u32 %v2085_v48, %v2082_v45 }
 0x100   : > { %v2049_v10 = vrot.slane %v2047_v58, 5 }
 0x101   : > { %v1312_v12 = vpop.f32.mrf.mxu2  ;;  %v1256_v19 = vpop.f32.mrf.mxu0  ;;  %v2045_v9 = vrot.slane %v2044_v57, 4  ;;  %v2087_v15 = vrot.slane %v2086_v0, 4 }
 0x102   : > { %v1341_v13 = vpop.f32.mrf.mxu3  ;;  %v1313_v18 = vadd.f32 %v1312_v12, %v1284_v63  ;;  %v1285_v20 = vpop.f32.mrf.mxu1  ;;  %v1257_v25 = vadd.f32 %v1256_v19, %v4390_v27  ;;  %v2054_v27 = vrot.slane %v2052_v24, 4  ;;  %v2072_v63 = vor.u32 %v2071_v42, %v2068_v41 }
 0x103   : > { %v2077_v12 = vrot.slane %v2075_v1, 5  ;;  %v2092_v26 = vsel %vm3942_vm2, %v2087_v15, %v2091_v16 }
 0x104   : > { %v4466_v31 = vadd.f32 %v1341_v13, %v1313_v18  ;;  %v1286_v36 = vadd.f32 %v1285_v20, %v1257_v25  ;;  %v2058_v4 = vor.u32 %v2057_v44, %v2054_v27  ;;  %v2073_v11 = vrot.slane %v2072_v63, 4 }
 0x105   : > { %v2050_v18 = vsel %vm3942_vm2, %v2045_v9, %v2049_v10  ;;  %v2188_v37 = vunpack.c.l.b16 %v2092_v26  ;;  %v2189_v39 = vunpack.c.h.b16 %v2092_v26 }
 0x106   : > { %v2059_v13 = vrot.slane %v2058_v4, 4  ;;  %v2078_v23 = vsel %vm3942_vm2, %v2073_v11, %v2077_v12  ;;  %v2182_v30 = vunpack.c.l.b16 %v2050_v18  ;;  %v2183_v35 = vunpack.c.h.b16 %v2050_v18 }
 0x107   : > { %v2186_v34 = vunpack.c.l.b16 %v2078_v23 }
 0x108   : > { %v2064_v25 = vsel %vm3942_vm2, %v2059_v13, %v2063_v14 }
 0x109   : > { %v1314_v52 = vpop.f32.mrf.mxu2  ;;  %v1259_v61 = vpop.f32.mrf.mxu0  ;;  %v2184_v53 = vunpack.c.l.b16 %v2064_v25  ;;  %v2185_v38 = vunpack.c.h.b16 %v2064_v25 }
 0x10a   : > { %v1343_v29 = vpop.f32.mrf.mxu3  ;;  %v1315_v60 = vadd.f32 %v1314_v52, %v1286_v36  ;;  %v1288_v62 = vpop.f32.mrf.mxu1  ;;  %v1260_v3 = vadd.f32 %v1259_v61, %v4396_v55  ;;  %v2187_v36 = vunpack.c.h.b16 %v2078_v23 }
 0x10b   : > { %v2204_v46 = vpack.c.b16 %v2188_v37, %v2184_v53  ;;  %v2205_v45 = vpack.c.b16 %v2189_v39, %v2185_v38 }
 0x10c   : > { %v4473_v6 = vadd.f32 %v1343_v29, %v1315_v60  ;;  %v1289_v8 = vadd.f32 %v1288_v62, %v1260_v3  ;;  %2432 = vmatmul.bf16.gmra.mxu0 %v2198_v49  ;;  %v2203_v42 = vpack.c.b16 %v2187_v36, %v2183_v35 }
 0x10d   : > { %2461 = vmatmul.bf16.gmra.mxu1 %v2199_v50 }
 0x10e   : > { %2490 = vmatmul.bf16.gmra.mxu2 %v2200_v54 }
 0x10f   : > { %2519 = vmatmul.bf16.gmra.mxu3 %v2201_v56 }
 0x111   : > { %v1317_v17 = vpop.f32.mrf.mxu2  ;;  %v1261_v20 = vpop.f32.mrf.mxu0 }
 0x112   : > { %v1346_v55 = vpop.f32.mrf.mxu3  ;;  %v1318_v19 = vadd.f32 %v1317_v17, %v1289_v8  ;;  %v1290_v21 = vpop.f32.mrf.mxu1  ;;  %v1262_v24 = vadd.f32 %v1261_v20, %v4410_v32  ;;  %v2202_v32 = vpack.c.b16 %v2186_v34, %v2182_v30 }
 0x114   : > { %v4484_v28 = vadd.f32 %v1346_v55, %v1318_v19  ;;  %v1291_v33 = vadd.f32 %v1290_v21, %v1262_v24 }
 0x119   : > { %v1319_v40 = vpop.f32.mrf.mxu2  ;;  %v1264_v27 = vpop.f32.mrf.mxu0 }
 0x11a   : > { %v1348_v41 = vpop.f32.mrf.mxu3  ;;  %v1320_v43 = vadd.f32 %v1319_v40, %v1291_v33  ;;  %v1293_v44 = vpop.f32.mrf.mxu1  ;;  %v1265_v48 = vadd.f32 %v1264_v27, %v4424_v7 }
 0x11c   : > { %v4487_v49 = vadd.f32 %v1348_v41, %v1320_v43  ;;  %v1294_v50 = vadd.f32 %v1293_v44, %v1265_v48  ;;  %2437 = vmatmul.bf16.gmra.mxu0 %v2202_v32 }
 0x11d   : > { %2466 = vmatmul.bf16.gmra.mxu1 %v2203_v42 }
 0x11e   : > { %2495 = vmatmul.bf16.gmra.mxu2 %v2204_v46 }
 0x11f   : > { %2524 = vmatmul.bf16.gmra.mxu3 %v2205_v45 }
 0x121   : > { %v1322_v51 = vpop.f32.mrf.mxu2  ;;  %v1266_v54 = vpop.f32.mrf.mxu0 }
 0x122   : > { %v1351_v52 = vpop.f32.mrf.mxu3  ;;  %v1323_v29 = vadd.f32 %v1322_v51, %v1294_v50  ;;  %v1295_v56 = vpop.f32.mrf.mxu1  ;;  %v1267_v57 = vadd.f32 %v1266_v54, %v4431_v47 }
 0x124   : > { %v1352_v58 = vadd.f32 %v1351_v52, %v1323_v29  ;;  %v1296_v60 = vadd.f32 %v1295_v56, %v1267_v57 }
 0x129   : > { %v1324_v61 = vpop.f32.mrf.mxu2  ;;  %v1722_v7 = vpop.f32.mrf.mxu0 }
 0x12a   : > { %v1353_v62 = vpop.f32.mrf.mxu3  ;;  %v1325_v63 = vadd.f32 %v1324_v61, %v1296_v60  ;;  %v1751_v1 = vpop.f32.mrf.mxu1 }
 0x12b   : > { %v1752_v2 = vadd.f32 %v1751_v1, %v1722_v7 }
 0x12c   : > { %v4490_v3 = vadd.f32 %v1353_v62, %v1325_v63 }
 0x131   : > { %v1780_v4 = vpop.f32.mrf.mxu2  ;;  %v1724_v8 = vpop.f32.mrf.mxu0 }
 0x132   : > { %v1809_v0 = vpop.f32.mrf.mxu3  ;;  %v1781_v5 = vadd.f32 %v1780_v4, %v1752_v2  ;;  %v1753_v9 = vpop.f32.mrf.mxu1 }
 0x133   : > { %v1754_v56 = vadd.f32 %v1753_v9, %v1724_v8 }
 0x134   : > { %v1810_v10 = vadd.f32 %v1809_v0, %v1781_v5 }
 0x136   : > { %v1829_v11 = vadd.f32 %v1810_v10, %v4446_v22 }
 0x139   : > { %v1782_v12 = vpop.f32.mrf.mxu2  ;;  %v1727_v13 = vpop.f32.mrf.mxu0 }
 0x13a   : > { %v1811_v47 = vpop.f32.mrf.mxu3  ;;  %v1756_v14 = vpop.f32.mrf.mxu1  ;;  %v1783_v61 = vadd.f32 %v1782_v12, %v1754_v56 }
 0x13b   : > { %v1757_v15 = vadd.f32 %v1756_v14, %v1727_v13 }
 0x13c   : > { %v1812_v63 = vadd.f32 %v1811_v47, %v1783_v61 }
 0x13e   : > { %v1830_v10 = vadd.f32 %v1812_v63, %v4451_v59 }
 0x141   : > { %v1785_v16 = vpop.f32.mrf.mxu2  ;;  %v1729_v18 = vpop.f32.mrf.mxu0 }
 0x142   : > { %v1814_v17 = vpop.f32.mrf.mxu3  ;;  %v1786_v55 = vadd.f32 %v1785_v16, %v1757_v15  ;;  %v1758_v19 = vpop.f32.mrf.mxu1 }
 0x144   : > { %v1815_v20 = vadd.f32 %v1814_v17, %v1786_v55 }
 0x146   : > { %v4494_v21 = vadd.f32 %v1815_v20, %v4466_v31  ;;  %v1759_v20 = vadd.f32 %v1758_v19, %v1729_v18 }
 0x149   : > { %v4496_v23 = vpop.f32.mrf.mxu2  ;;  %v1732_v25 = vpop.f32.mrf.mxu0 }
 0x14a   : > { %v4498_v24 = vpop.f32.mrf.mxu3  ;;  %v1761_v22 = vpop.f32.mrf.mxu1 }
 0x14b   : > { %v1762_v26 = vadd.f32 %v1761_v22, %v1732_v25 }
 0x151   : > { %v1790_v30 = vpop.f32.mrf.mxu2  ;;  %v4500_v35 = vpop.f32.mrf.mxu0 }
 0x152   : > { %v1819_v33 = vpop.f32.mrf.mxu3  ;;  %v1791_v34 = vadd.f32 %v1790_v30, %v1762_v26  ;;  %v4502_v36 = vpop.f32.mrf.mxu1  ;;  %v1788_v26 = vadd.f32 %v4496_v23, %v1759_v20 }
 0x153   : > { %v1764_v56 = vadd.f32 %v4502_v36, %v4500_v35 }
 0x154   : > { %v1820_v53 = vadd.f32 %v1819_v33, %v1791_v34  ;;  %v1817_v34 = vadd.f32 %v4498_v24, %v1788_v26 }
 0x156   : > { %v4505_v37 = vadd.f32 %v1820_v53, %v4484_v28 }
 0x159   : > { %v4507_v31 = vpop.f32.mrf.mxu2  ;;  %v1737_v39 = vpop.f32.mrf.mxu0 }
 0x15a   : > { %v4509_v38 = vpop.f32.mrf.mxu3  ;;  %v1766_v40 = vpop.f32.mrf.mxu1  ;;  %v1793_v63 = vadd.f32 %v4507_v31, %v1764_v56 }
 0x15b   : > { %v1767_v41 = vadd.f32 %v1766_v40, %v1737_v39 }
 0x161   : > { %v1795_v32 = vpop.f32.mrf.mxu2  ;;  %v4511_v27 = vpop.f32.mrf.mxu0 }
 0x162   : > { %v1824_v42 = vpop.f32.mrf.mxu3  ;;  %v1796_v43 = vadd.f32 %v1795_v32, %v1767_v41  ;;  %v4513_v44 = vpop.f32.mrf.mxu1 }
 0x164   : > { %v1825_v46 = vadd.f32 %v1824_v42, %v1796_v43 }
 0x166   : > { %v4515_v45 = vadd.f32 %v1825_v46, %v1352_v58  ;;  %v1832_v46 = vadd.f32 %v1817_v34, %v4473_v6 }
 0x169   : > { %v4517_v48 = vpop.f32.mrf.mxu2  ;;  %v2423_v50 = vpop.f32.mrf.mxu0 }
 0x16a   : > { %v4519_v28 = vpop.f32.mrf.mxu3  ;;  %v2452_v51 = vpop.f32.mrf.mxu1 }
 0x16b   : > { %v2453_v52 = vadd.f32 %v2452_v51, %v2423_v50 }
 0x171   : > { %v2481_v29 = vpop.f32.mrf.mxu2  ;;  %v2425_v57 = vpop.f32.mrf.mxu0 }
 0x172   : > { %v2510_v54 = vpop.f32.mrf.mxu3  ;;  %v2454_v60 = vpop.f32.mrf.mxu1  ;;  %v2482_v62 = vadd.f32 %v2481_v29, %v2453_v52 }
 0x173   : > { %v2455_v1 = vadd.f32 %v2454_v60, %v2425_v57 }
 0x174   : > { %v2511_v7 = vadd.f32 %v2510_v54, %v2482_v62 }
 0x176   : > { %v2530_v13 = vadd.f32 %v2511_v7, %v1829_v11 }
 0x178   : > { %v2567_v8 = vmul.f32 %v2530_v13, %v2530_v13 }
 0x179   : > { %v2483_v58 = vpop.f32.mrf.mxu2  ;;  %v2428_v0 = vpop.f32.mrf.mxu0 }
 0x17a   : > { %v2512_v2 = vpop.f32.mrf.mxu3  ;;  %v2484_v4 = vadd.f32 %v2483_v58, %v2455_v1  ;;  %v2457_v5 = vpop.f32.mrf.mxu1  ;;  %v1822_v1 = vadd.f32 %v4509_v38, %v1793_v63 }
 0x17b   : > { %v2458_v16 = vadd.f32 %v2457_v5, %v2428_v0 }
 0x17c   : > { %v2513_v14 = vadd.f32 %v2512_v2, %v2484_v4 }
 0x17e   : > { %v2531_v15 = vadd.f32 %v2513_v14, %v1830_v10  ;;  %v1834_v14 = vadd.f32 %v1822_v1, %v4487_v49 }
 0x180   : > { %v3757_v9 = vpack.c.bf16 %v2531_v15, %v2530_v13  ;;  %v2554_v12 = vadd.f32 %v2531_v15, %v2530_v13  ;;  %v2568_v47 = vmul.f32 %v2531_v15, %v2531_v15 }
 0x181   : > { %v2486_v17 = vpop.f32.mrf.mxu2  ;;  %v2430_v25 = vpop.f32.mrf.mxu0 }
 0x182   : > { %v2515_v55 = vpop.f32.mrf.mxu3  ;;  %3758 = vst [vmem:[%s4526_s8] sm:$0xff] %v3757_v9   ;;  %v2575_v59 = vadd.f32 %v2568_v47, %v2567_v8  ;;  %v2487_v11 = vadd.f32 %v2486_v17, %v2458_v16  ;;  %v2459_v22 = vpop.f32.mrf.mxu1  ;;  %v1769_v47 = vadd.f32 %v4513_v44, %v4511_v27 }
 0x183   : > { %v2460_v40 = vadd.f32 %v2459_v22, %v2430_v25 }
 0x184   : > { %v2516_v30 = vadd.f32 %v2515_v55, %v2487_v11  ;;  %v1798_v20 = vadd.f32 %v4517_v48, %v1769_v47 }
 0x186   : > { %v2532_v33 = vadd.f32 %v2516_v30, %v4494_v21  ;;  %v1827_v22 = vadd.f32 %v4519_v28, %v1798_v20 }
 0x188   : > { %v2555_v53 = vadd.f32 %v2554_v12, %v2532_v33  ;;  %v2569_v39 = vmul.f32 %v2532_v33, %v2532_v33  ;;  %v1836_v44 = vadd.f32 %v1827_v22, %v4490_v3 }
 0x189   : > { %v2488_v41 = vpop.f32.mrf.mxu2  ;;  %v2433_v19 = vpop.f32.mrf.mxu0 }
 0x18a   : > { %v2517_v32 = vpop.f32.mrf.mxu3  ;;  %v2576_v42 = vadd.f32 %v2575_v59, %v2569_v39  ;;  %v2489_v18 = vadd.f32 %v2488_v41, %v2460_v40  ;;  %v2462_v43 = vpop.f32.mrf.mxu1 }
 0x18b   : > { %v2463_v23 = vadd.f32 %v2462_v43, %v2433_v19  ;;  %v2588_v43 = vlaneseq }
 0x18c   : > { %v2518_v50 = vadd.f32 %v2517_v32, %v2489_v18 }
 0x18e   : > { %v2533_v51 = vadd.f32 %v2518_v50, %v1832_v46 }
 0x190   : > { %v3762_v52 = vpack.c.bf16 %v2533_v51, %v2532_v33  ;;  %v2556_v29 = vadd.f32 %v2555_v53, %v2533_v51  ;;  %v2570_v21 = vmul.f32 %v2533_v51, %v2533_v51 }
 0x191   : > { %v2491_v54 = vpop.f32.mrf.mxu2  ;;  %v2435_v61 = vpop.f32.mrf.mxu0 }
 0x192   : > { %v2520_v24 = vpop.f32.mrf.mxu3  ;;  %3774 = vst [vmem:[%s4526_s8 + $0x8] sm:$0xff] %v3762_v52   ;;  %v2577_v57 = vadd.f32 %v2576_v42, %v2570_v21  ;;  %v2492_v60 = vadd.f32 %v2491_v54, %v2463_v23  ;;  %v2464_v62 = vpop.f32.mrf.mxu1  ;;  %v2589_v52 = vshrl.u32 %v2588_v43, 7 }
 0x193   : > { %v2465_v4 = vadd.f32 %v2464_v62, %v2435_v61 }
 0x194   : > { %v2521_v7 = vadd.f32 %v2520_v24, %v2492_v60  ;;  %vm2591_vm3 = vcmp.eq.s32.totalorder %v2589_v52, 1  ;;  %vm2590_vm4 = vcmp.eq.s32.totalorder %v2589_v52, 0 }
 0x196   : > { %v2534_v6 = vadd.f32 %v2521_v7, %v4505_v37 }
 0x198   : > { %v2557_v58 = vadd.f32 %v2556_v29, %v2534_v6  ;;  %v2571_v2 = vmul.f32 %v2534_v6, %v2534_v6 }
 0x199   : > { %v2493_v0 = vpop.f32.mrf.mxu2  ;;  %v2438_v36 = vpop.f32.mrf.mxu0 }
 0x19a   : > { %v2522_v5 = vpop.f32.mrf.mxu3  ;;  %v2578_v10 = vadd.f32 %v2577_v57, %v2571_v2  ;;  %v2494_v35 = vadd.f32 %v2493_v0, %v2465_v4  ;;  %v2467_v13 = vpop.f32.mrf.mxu1 }
 0x19b   : > { %v2468_v31 = vadd.f32 %v2467_v13, %v2438_v36 }
 0x19c   : > { %v2523_v15 = vadd.f32 %v2522_v5, %v2494_v35 }
 0x19e   : > { %v2535_v16 = vadd.f32 %v2523_v15, %v1834_v14 }
 0x1a0   : > { %v3767_v8 = vpack.c.bf16 %v2535_v16, %v2534_v6  ;;  %v2558_v9 = vadd.f32 %v2557_v58, %v2535_v16  ;;  %v2572_v37 = vmul.f32 %v2535_v16, %v2535_v16 }
 0x1a1   : > { %v2496_v12 = vpop.f32.mrf.mxu2  ;;  %v2440_v11 = vpop.f32.mrf.mxu0 }
 0x1a2   : > { %v2525_v38 = vpop.f32.mrf.mxu3  ;;  %3775 = vst [vmem:[%s4526_s8 + $0x10] sm:$0xff] %v3767_v8   ;;  %v2579_v17 = vadd.f32 %v2578_v10, %v2572_v37  ;;  %v2497_v55 = vadd.f32 %v2496_v12, %v2468_v31  ;;  %v2469_v25 = vpop.f32.mrf.mxu1 }
 0x1a3   : > { %v2470_v33 = vadd.f32 %v2469_v25, %v2440_v11 }
 0x1a4   : > { %v2526_v59 = vadd.f32 %v2525_v38, %v2497_v55 }
 0x1a6   : > { %v2536_v49 = vadd.f32 %v2526_v59, %v4515_v45 }
 0x1a8   : > { %v2559_v26 = vadd.f32 %v2558_v9, %v2536_v49  ;;  %v2573_v30 = vmul.f32 %v2536_v49, %v2536_v49 }
 0x1a9   : > { %v2498_v34 = vpop.f32.mrf.mxu2 }
 0x1aa   : > { %v2580_v53 = vadd.f32 %v2579_v17, %v2573_v30  ;;  %v2499_v39 = vadd.f32 %v2498_v34, %v2470_v33  ;;  %v2527_v27 = vpop.f32.mrf.mxu3 }
 0x1ac   : > { %v2528_v40 = vadd.f32 %v2527_v27, %v2499_v39 }
 0x1ae   : > { %v2537_v41 = vadd.f32 %v2528_v40, %v1836_v44 }
 0x1b0   : > { %v3772_v48 = vpack.c.bf16 %v2537_v41, %v2536_v49  ;;  %v2560_v32 = vadd.f32 %v2559_v26, %v2537_v41  ;;  %v2574_v42 = vmul.f32 %v2537_v41, %v2537_v41 }
 0x1b2   : > { %3776 = vst [vmem:[%s4526_s8 + $0x18] sm:$0xff] %v3772_v48   ;;  %v2561_v18 = vrot.slane %v2560_v32, 4  ;;  %v2581_v45 = vadd.f32 %v2580_v53, %v2574_v42 }
 0x1b4   : > { %v2562_v19 = vadd.f32 %v2561_v18, %v2560_v32  ;;  %v2582_v28 = vrot.slane %v2581_v45, 4 }
 0x1b6   : > { %v2563_v46 = vrot.slane %v2562_v19, 2  ;;  %v2583_v50 = vadd.f32 %v2582_v28, %v2581_v45 }
 0x1b8   : > { %v2564_v51 = vadd.f32 %v2563_v46, %v2562_v19  ;;  %v2584_v23 = vrot.slane %v2583_v50, 2 }
 0x1ba   : > { %v2585_v29 = vadd.f32 %v2584_v23, %v2583_v50  ;;  %v2565_v21 = vrot.slane %v2564_v51, 1 }
 0x1bc   : > { %v2586_v3 = vrot.slane %v2585_v29, 1  ;;  %v2566_v24 = vadd.f32 %v2565_v21, %v2564_v51 }
 0x1be   : > { %v2587_v54 = vadd.f32 %v2586_v3, %v2585_v29 }
 0x1c0   : > { %v2592_v56 = vsel %vm2591_vm3, %v2587_v54, 0.0 }
 0x1c1   : > { %v2593_v57 = vsel %vm2590_vm4, %v2566_v24, %v2592_v56 }
 0x1c2   : > { %2594 = vst [vmem:[%s202_s16] sm:$0xff] %v2593_v57 }
 0x1c3 PF: > { %s14_s14 = sadd.s32 1, %s3824_s14   ;;  %s4567_s12 = smov %s3820_s13 }
 0x1c4   : > { %p11_p5 = scmp.ge.s32.totalorder %s14_s14, 4   ;;  %s4568_s13 = smov %s4570_s15 }
 0x1c6   :  { %13 = sbr.rel (!%p11_p5) target bundleno = 2 (0x2), region = 75 }

</bundles_post_ra>
